<compile_context>
chip_gen: v7x
topology: tpu7x:2x2x1
jax: 0.10.0
libtpu: 0.0.40
codegen_flags: <defaults>
</compile_context>

<pallas_src>
import jax
import jax.numpy as jnp
import numpy as np
from jax.experimental import pallas as pl
from jax.experimental.pallas import tpu as pltpu

EPS = 1e-5


def _make_residual_kernel(N, H, W, C, LP):
    WC = W * C
    NS = 4 * C - 1               # distinct lane shifts: s = 1 .. NS
    HP = H + 2
    inv_cnt = 1.0 / float(N * H * W)

    def pad_rows_lanes(x):
        # (N, H, WC) -> (N, H+2, LP): zero row top/bottom; 2*C zero lanes on
        # the left (conv pad column -1 lives at lanes [C, 2C)); zeros on the
        # right cover pad column W.  Built in registers (no VMEM scratch).
        zrow = jnp.zeros((N, 1, WC), jnp.float32)
        xr = jnp.concatenate([zrow, x, zrow], axis=1)
        zl = jnp.zeros((N, HP, 2 * C), jnp.float32)
        zr = jnp.zeros((N, HP, LP - 2 * C - WC), jnp.float32)
        return jnp.concatenate([zl, xr, zr], axis=2)

    def conv3x3(x, w_ref, which):
        xp = pad_rows_lanes(x)                              # (N, H+2, LP)
        acc = jnp.zeros((N, H, WC), jnp.float32)
        for ky in range(3):
            rows = xp[:, ky:ky + H, :]                      # (N, H, LP)
            for si in range(NS):
                s = si + 1
                acc = acc + rows[:, :, s:s + WC] * w_ref[which, ky, si, :]
        return acc

    def bn_fold(y, gamma, beta, pool):
        # Per-channel mean of v, tiled back across all W*C lanes, via one
        # small matmul with the channel-pooling matrix.
        def ch_mean(v):
            r = jnp.sum(v, axis=(0, 1)).reshape(1, WC)
            return jnp.dot(r, pool, preferred_element_type=jnp.float32) * inv_cnt
        mean = ch_mean(y)
        var = ch_mean(y * y) - mean * mean                  # biased variance
        scale = gamma * jax.lax.rsqrt(var + EPS)            # folded BN
        shift = beta - mean * scale
        return y * scale + shift                            # 2 VALU ops / elt

    def kernel(x_ref, w_ref, bn_ref, pool_ref, out_ref):
        x = x_ref[...]
        bn = bn_ref[...]
        pool = pool_ref[...]

        h = conv3x3(x, w_ref, 0)
        h = jnp.maximum(bn_fold(h, bn[0:1, :], bn[1:2, :], pool), 0.0)
        h = conv3x3(h, w_ref, 1)
        h = bn_fold(h, bn[2:3, :], bn[3:4, :], pool)
        out_ref[...] = jnp.maximum(x + h, 0.0)              # residual + ReLU

    return kernel


def _lane_weights(w_oihw, C, W):
    """PyTorch (Cout,Cin,3,3) weights -> lane-dense table (3, 4C-1, W*C).

    table[ky, s-1, w*C + co] = w[co, ci, ky, kx] for the unique (kx, ci) with
    s = (kx+1)*C + ci - co, and 0 where no valid tap exists.
    """
    NS = 4 * C - 1
    wk = jnp.transpose(w_oihw, (2, 3, 1, 0)).astype(jnp.float32)   # (ky,kx,ci,co)
    s = np.arange(1, NS + 1)[:, None]                              # (NS, 1)
    co = np.arange(C)[None, :]                                     # (1, C)
    t = s + co                                                     # (NS, C)
    ci = t % C
    kx = t // C - 1
    valid = jnp.asarray(((kx >= 0) & (kx <= 2)).astype(np.float32))
    kxc = np.clip(kx, 0, 2)
    cob = np.broadcast_to(co, kxc.shape)
    tbl = wk[:, kxc, ci, cob] * valid                              # (3, NS, C)
    return jnp.tile(tbl, (1, 1, W))                                # (3, NS, W*C)


def residual_forward(x_nchw, params):
    """PyTorch `Residual.forward` equivalent.  x_nchw: (N, C, H, W) float32."""
    w1, b1, g1, be1, w2, b2, g2, be2 = params
    N, C, H, W = x_nchw.shape
    WC = W * C
    NS = 4 * C - 1
    LP = ((NS + WC + 127) // 128) * 128     # padded lane width used in-kernel

    # NCHW -> lane-dense (N, H, W*C), channel fastest along lanes (wrapper glue).
    x = jnp.transpose(x_nchw, (0, 2, 3, 1)).reshape(N, H, WC).astype(jnp.float32)

    # Both convs' weights in one packed lane-dense table.  Conv biases b1/b2
    # are intentionally unused: a bias before training-mode BN cancels exactly.
    wv = jnp.stack([_lane_weights(w1, C, W), _lane_weights(w2, C, W)], axis=0)

    # BN affine params, channel-tiled along lanes, packed into one array.
    tile_c = lambda v: jnp.tile(v.astype(jnp.float32), (W,))
    bn = jnp.stack([tile_c(g1), tile_c(be1), tile_c(g2), tile_c(be2)], axis=0)

    # Channel-pooling matrix: pool[i, j] = 1 iff lanes i and j hold the same channel.
    lane = np.arange(WC)
    pool = jnp.asarray(lane[:, None] % C == lane[None, :] % C, dtype=jnp.float32)

    vmem = pl.BlockSpec(memory_space=pltpu.MemorySpace.VMEM)
    out = pl.pallas_call(
        _make_residual_kernel(N, H, W, C, LP),
        out_shape=jax.ShapeDtypeStruct((N, H, WC), jnp.float32),
        in_specs=[vmem, vmem, vmem, vmem],
        out_specs=vmem,
    )(x, wv, bn, pool)

    # lane-dense (N, H, W*C) -> NCHW (wrapper glue).
    return jnp.transpose(out.reshape(N, H, W, C), (0, 3, 1, 2))


def _reference(x_nchw, params):
    """Pure-JAX reference matching PyTorch training-mode semantics."""
    w1, b1, g1, be1, w2, b2, g2, be2 = params

    def conv_bn(x, w, b, g, be):
        y = jax.lax.conv_general_dilated(
            x, w, window_strides=(1, 1), padding=((1, 1), (1, 1)),
            dimension_numbers=("NCHW", "OIHW", "NCHW")) + b.reshape(1, -1, 1, 1)
        mean = y.mean(axis=(0, 2, 3), keepdims=True)
        var = ((y - mean) ** 2).mean(axis=(0, 2, 3), keepdims=True)
        return ((y - mean) / jnp.sqrt(var + EPS)) * g.reshape(1, -1, 1, 1) \
            + be.reshape(1, -1, 1, 1)

    h = jax.nn.relu(conv_bn(x_nchw, w1, b1, g1, be1))
    h = conv_bn(h, w2, b2, g2, be2)
    return jax.nn.relu(x_nchw + h)


if __name__ == "__main__":
    key = jax.random.PRNGKey(0)
    N, C, H, W = 2, 4, 16, 16
    ks = jax.random.split(key, 9)

    x = jax.random.normal(ks[0], (N, C, H, W), jnp.float32)
    # Deterministic synthetic parameters (shapes from nn.Conv2d / nn.BatchNorm2d).
    w1 = 0.1 * jax.random.normal(ks[1], (C, C, 3, 3), jnp.float32)
    b1 = 0.01 * jax.random.normal(ks[2], (C,), jnp.float32)
    g1 = 1.0 + 0.1 * jax.random.normal(ks[3], (C,), jnp.float32)
    be1 = 0.1 * jax.random.normal(ks[4], (C,), jnp.float32)
    w2 = 0.1 * jax.random.normal(ks[5], (C, C, 3, 3), jnp.float32)
    b2 = 0.01 * jax.random.normal(ks[6], (C,), jnp.float32)
    g2 = 1.0 + 0.1 * jax.random.normal(ks[7], (C,), jnp.float32)
    be2 = 0.1 * jax.random.normal(ks[8], (C,), jnp.float32)
    params = (w1, b1, g1, be1, w2, b2, g2, be2)

    out = residual_forward(x, params)
    jax.block_until_ready(out)

    ref = _reference(x, params)
    err = float(jnp.max(jnp.abs(out - ref)))
    assert out.shape == (N, C, H, W)
    assert jnp.allclose(out, ref, atol=1e-3, rtol=1e-3), f"max abs err {err}"
    print("KERNEL_OK")
</pallas_src>

<mosaic_0001>
module attributes {stable_mosaic.version = 11 : i64} {
  func.func @kernel(%arg0: memref<2x16x64xf32, #tpu.memory_space<vmem>>, %arg1: memref<2x3x15x64xf32, #tpu.memory_space<vmem>>, %arg2: memref<4x64xf32, #tpu.memory_space<vmem>>, %arg3: memref<64x64xf32, #tpu.memory_space<vmem>>, %arg4: memref<2x16x64xf32, #tpu.memory_space<vmem>>) attributes {dimension_semantics = [], scalar_prefetch = 0 : i64, scratch_operands = 0 : i64, tpu.core_type = #tpu.core_type<tc>} {
    %c0 = arith.constant 0 : index
    %c0_0 = arith.constant 0 : index
    %c0_1 = arith.constant 0 : index
    %0 = vector.load %arg0[%c0, %c0_0, %c0_1] : memref<2x16x64xf32, #tpu.memory_space<vmem>>, vector<2x16x64xf32>
    %c0_2 = arith.constant 0 : index
    %c0_3 = arith.constant 0 : index
    %1 = vector.load %arg2[%c0_2, %c0_3] : memref<4x64xf32, #tpu.memory_space<vmem>>, vector<4x64xf32>
    %c0_4 = arith.constant 0 : index
    %c0_5 = arith.constant 0 : index
    %2 = vector.load %arg3[%c0_4, %c0_5] : memref<64x64xf32, #tpu.memory_space<vmem>>, vector<64x64xf32>
    %cst = arith.constant 0.000000e+00 : f32
    %3 = vector.broadcast %cst : f32 to vector<2x1x64xf32>
    %4 = tpu.concatenate %3, %0, %3 in 1 : vector<2x1x64xf32>, vector<2x16x64xf32>, vector<2x1x64xf32> -> vector<2x18x64xf32>
    %cst_6 = arith.constant 0.000000e+00 : f32
    %5 = vector.broadcast %cst_6 : f32 to vector<2x18x8xf32>
    %cst_7 = arith.constant 0.000000e+00 : f32
    %6 = vector.broadcast %cst_7 : f32 to vector<2x18x56xf32>
    %7 = tpu.concatenate %5, %4, %6 in 2 : vector<2x18x8xf32>, vector<2x18x64xf32>, vector<2x18x56xf32> -> vector<2x18x128xf32>
    %cst_8 = arith.constant 0.000000e+00 : f32
    %8 = vector.broadcast %cst_8 : f32 to vector<2x16x64xf32>
    %9 = vector.extract_strided_slice %7 {offsets = [0, 0, 0], sizes = [2, 16, 128], strides = [1, 1, 1]} : vector<2x18x128xf32> to vector<2x16x128xf32>
    %10 = vector.extract_strided_slice %9 {offsets = [0, 0, 1], sizes = [2, 16, 64], strides = [1, 1, 1]} : vector<2x16x128xf32> to vector<2x16x64xf32>
    %c0_9 = arith.constant 0 : index
    %c0_10 = arith.constant 0 : index
    %c0_11 = arith.constant 0 : index
    %c0_12 = arith.constant 0 : index
    %11 = vector.load %arg1[%c0_9, %c0_10, %c0_11, %c0_12] : memref<2x3x15x64xf32, #tpu.memory_space<vmem>>, vector<1x1x1x64xf32>
    %12 = vector.shape_cast %11 : vector<1x1x1x64xf32> to vector<64xf32>
    %13 = vector.shape_cast %12 : vector<64xf32> to vector<1x1x64xf32>
    %14 = vector.broadcast %13 : vector<1x1x64xf32> to vector<2x16x64xf32>
    %15 = arith.mulf %10, %14 : vector<2x16x64xf32>
    %16 = arith.addf %8, %15 : vector<2x16x64xf32>
    %17 = vector.extract_strided_slice %9 {offsets = [0, 0, 2], sizes = [2, 16, 64], strides = [1, 1, 1]} : vector<2x16x128xf32> to vector<2x16x64xf32>
    %c0_13 = arith.constant 0 : index
    %c0_14 = arith.constant 0 : index
    %c1 = arith.constant 1 : index
    %c0_15 = arith.constant 0 : index
    %18 = vector.load %arg1[%c0_13, %c0_14, %c1, %c0_15] : memref<2x3x15x64xf32, #tpu.memory_space<vmem>>, vector<1x1x1x64xf32>
    %19 = vector.shape_cast %18 : vector<1x1x1x64xf32> to vector<64xf32>
    %20 = vector.shape_cast %19 : vector<64xf32> to vector<1x1x64xf32>
    %21 = vector.broadcast %20 : vector<1x1x64xf32> to vector<2x16x64xf32>
    %22 = arith.mulf %17, %21 : vector<2x16x64xf32>
    %23 = arith.addf %16, %22 : vector<2x16x64xf32>
    %24 = vector.extract_strided_slice %9 {offsets = [0, 0, 3], sizes = [2, 16, 64], strides = [1, 1, 1]} : vector<2x16x128xf32> to vector<2x16x64xf32>
    %c0_16 = arith.constant 0 : index
    %c0_17 = arith.constant 0 : index
    %c2 = arith.constant 2 : index
    %c0_18 = arith.constant 0 : index
    %25 = vector.load %arg1[%c0_16, %c0_17, %c2, %c0_18] : memref<2x3x15x64xf32, #tpu.memory_space<vmem>>, vector<1x1x1x64xf32>
    %26 = vector.shape_cast %25 : vector<1x1x1x64xf32> to vector<64xf32>
    %27 = vector.shape_cast %26 : vector<64xf32> to vector<1x1x64xf32>
    %28 = vector.broadcast %27 : vector<1x1x64xf32> to vector<2x16x64xf32>
    %29 = arith.mulf %24, %28 : vector<2x16x64xf32>
    %30 = arith.addf %23, %29 : vector<2x16x64xf32>
    %31 = vector.extract_strided_slice %9 {offsets = [0, 0, 4], sizes = [2, 16, 64], strides = [1, 1, 1]} : vector<2x16x128xf32> to vector<2x16x64xf32>
    %c0_19 = arith.constant 0 : index
    %c0_20 = arith.constant 0 : index
    %c3 = arith.constant 3 : index
    %c0_21 = arith.constant 0 : index
    %32 = vector.load %arg1[%c0_19, %c0_20, %c3, %c0_21] : memref<2x3x15x64xf32, #tpu.memory_space<vmem>>, vector<1x1x1x64xf32>
    %33 = vector.shape_cast %32 : vector<1x1x1x64xf32> to vector<64xf32>
    %34 = vector.shape_cast %33 : vector<64xf32> to vector<1x1x64xf32>
    %35 = vector.broadcast %34 : vector<1x1x64xf32> to vector<2x16x64xf32>
    %36 = arith.mulf %31, %35 : vector<2x16x64xf32>
    %37 = arith.addf %30, %36 : vector<2x16x64xf32>
    %38 = vector.extract_strided_slice %9 {offsets = [0, 0, 5], sizes = [2, 16, 64], strides = [1, 1, 1]} : vector<2x16x128xf32> to vector<2x16x64xf32>
    %c0_22 = arith.constant 0 : index
    %c0_23 = arith.constant 0 : index
    %c4 = arith.constant 4 : index
    %c0_24 = arith.constant 0 : index
    %39 = vector.load %arg1[%c0_22, %c0_23, %c4, %c0_24] : memref<2x3x15x64xf32, #tpu.memory_space<vmem>>, vector<1x1x1x64xf32>
    %40 = vector.shape_cast %39 : vector<1x1x1x64xf32> to vector<64xf32>
    %41 = vector.shape_cast %40 : vector<64xf32> to vector<1x1x64xf32>
    %42 = vector.broadcast %41 : vector<1x1x64xf32> to vector<2x16x64xf32>
    %43 = arith.mulf %38, %42 : vector<2x16x64xf32>
    %44 = arith.addf %37, %43 : vector<2x16x64xf32>
    %45 = vector.extract_strided_slice %9 {offsets = [0, 0, 6], sizes = [2, 16, 64], strides = [1, 1, 1]} : vector<2x16x128xf32> to vector<2x16x64xf32>
    %c0_25 = arith.constant 0 : index
    %c0_26 = arith.constant 0 : index
    %c5 = arith.constant 5 : index
    %c0_27 = arith.constant 0 : index
    %46 = vector.load %arg1[%c0_25, %c0_26, %c5, %c0_27] : memref<2x3x15x64xf32, #tpu.memory_space<vmem>>, vector<1x1x1x64xf32>
    %47 = vector.shape_cast %46 : vector<1x1x1x64xf32> to vector<64xf32>
    %48 = vector.shape_cast %47 : vector<64xf32> to vector<1x1x64xf32>
    %49 = vector.broadcast %48 : vector<1x1x64xf32> to vector<2x16x64xf32>
    %50 = arith.mulf %45, %49 : vector<2x16x64xf32>
    %51 = arith.addf %44, %50 : vector<2x16x64xf32>
    %52 = vector.extract_strided_slice %9 {offsets = [0, 0, 7], sizes = [2, 16, 64], strides = [1, 1, 1]} : vector<2x16x128xf32> to vector<2x16x64xf32>
    %c0_28 = arith.constant 0 : index
    %c0_29 = arith.constant 0 : index
    %c6 = arith.constant 6 : index
    %c0_30 = arith.constant 0 : index
    %53 = vector.load %arg1[%c0_28, %c0_29, %c6, %c0_30] : memref<2x3x15x64xf32, #tpu.memory_space<vmem>>, vector<1x1x1x64xf32>
    %54 = vector.shape_cast %53 : vector<1x1x1x64xf32> to vector<64xf32>
    %55 = vector.shape_cast %54 : vector<64xf32> to vector<1x1x64xf32>
    %56 = vector.broadcast %55 : vector<1x1x64xf32> to vector<2x16x64xf32>
    %57 = arith.mulf %52, %56 : vector<2x16x64xf32>
    %58 = arith.addf %51, %57 : vector<2x16x64xf32>
    %59 = vector.extract_strided_slice %9 {offsets = [0, 0, 8], sizes = [2, 16, 64], strides = [1, 1, 1]} : vector<2x16x128xf32> to vector<2x16x64xf32>
    %c0_31 = arith.constant 0 : index
    %c0_32 = arith.constant 0 : index
    %c7 = arith.constant 7 : index
    %c0_33 = arith.constant 0 : index
    %60 = vector.load %arg1[%c0_31, %c0_32, %c7, %c0_33] : memref<2x3x15x64xf32, #tpu.memory_space<vmem>>, vector<1x1x1x64xf32>
    %61 = vector.shape_cast %60 : vector<1x1x1x64xf32> to vector<64xf32>
    %62 = vector.shape_cast %61 : vector<64xf32> to vector<1x1x64xf32>
    %63 = vector.broadcast %62 : vector<1x1x64xf32> to vector<2x16x64xf32>
    %64 = arith.mulf %59, %63 : vector<2x16x64xf32>
    %65 = arith.addf %58, %64 : vector<2x16x64xf32>
    %66 = vector.extract_strided_slice %9 {offsets = [0, 0, 9], sizes = [2, 16, 64], strides = [1, 1, 1]} : vector<2x16x128xf32> to vector<2x16x64xf32>
    %c0_34 = arith.constant 0 : index
    %c0_35 = arith.constant 0 : index
    %c8 = arith.constant 8 : index
    %c0_36 = arith.constant 0 : index
    %67 = vector.load %arg1[%c0_34, %c0_35, %c8, %c0_36] : memref<2x3x15x64xf32, #tpu.memory_space<vmem>>, vector<1x1x1x64xf32>
    %68 = vector.shape_cast %67 : vector<1x1x1x64xf32> to vector<64xf32>
    %69 = vector.shape_cast %68 : vector<64xf32> to vector<1x1x64xf32>
    %70 = vector.broadcast %69 : vector<1x1x64xf32> to vector<2x16x64xf32>
    %71 = arith.mulf %66, %70 : vector<2x16x64xf32>
    %72 = arith.addf %65, %71 : vector<2x16x64xf32>
    %73 = vector.extract_strided_slice %9 {offsets = [0, 0, 10], sizes = [2, 16, 64], strides = [1, 1, 1]} : vector<2x16x128xf32> to vector<2x16x64xf32>
    %c0_37 = arith.constant 0 : index
    %c0_38 = arith.constant 0 : index
    %c9 = arith.constant 9 : index
    %c0_39 = arith.constant 0 : index
    %74 = vector.load %arg1[%c0_37, %c0_38, %c9, %c0_39] : memref<2x3x15x64xf32, #tpu.memory_space<vmem>>, vector<1x1x1x64xf32>
    %75 = vector.shape_cast %74 : vector<1x1x1x64xf32> to vector<64xf32>
    %76 = vector.shape_cast %75 : vector<64xf32> to vector<1x1x64xf32>
    %77 = vector.broadcast %76 : vector<1x1x64xf32> to vector<2x16x64xf32>
    %78 = arith.mulf %73, %77 : vector<2x16x64xf32>
    %79 = arith.addf %72, %78 : vector<2x16x64xf32>
    %80 = vector.extract_strided_slice %9 {offsets = [0, 0, 11], sizes = [2, 16, 64], strides = [1, 1, 1]} : vector<2x16x128xf32> to vector<2x16x64xf32>
    %c0_40 = arith.constant 0 : index
    %c0_41 = arith.constant 0 : index
    %c10 = arith.constant 10 : index
    %c0_42 = arith.constant 0 : index
    %81 = vector.load %arg1[%c0_40, %c0_41, %c10, %c0_42] : memref<2x3x15x64xf32, #tpu.memory_space<vmem>>, vector<1x1x1x64xf32>
    %82 = vector.shape_cast %81 : vector<1x1x1x64xf32> to vector<64xf32>
    %83 = vector.shape_cast %82 : vector<64xf32> to vector<1x1x64xf32>
    %84 = vector.broadcast %83 : vector<1x1x64xf32> to vector<2x16x64xf32>
    %85 = arith.mulf %80, %84 : vector<2x16x64xf32>
    %86 = arith.addf %79, %85 : vector<2x16x64xf32>
    %87 = vector.extract_strided_slice %9 {offsets = [0, 0, 12], sizes = [2, 16, 64], strides = [1, 1, 1]} : vector<2x16x128xf32> to vector<2x16x64xf32>
    %c0_43 = arith.constant 0 : index
    %c0_44 = arith.constant 0 : index
    %c11 = arith.constant 11 : index
    %c0_45 = arith.constant 0 : index
    %88 = vector.load %arg1[%c0_43, %c0_44, %c11, %c0_45] : memref<2x3x15x64xf32, #tpu.memory_space<vmem>>, vector<1x1x1x64xf32>
    %89 = vector.shape_cast %88 : vector<1x1x1x64xf32> to vector<64xf32>
    %90 = vector.shape_cast %89 : vector<64xf32> to vector<1x1x64xf32>
    %91 = vector.broadcast %90 : vector<1x1x64xf32> to vector<2x16x64xf32>
    %92 = arith.mulf %87, %91 : vector<2x16x64xf32>
    %93 = arith.addf %86, %92 : vector<2x16x64xf32>
    %94 = vector.extract_strided_slice %9 {offsets = [0, 0, 13], sizes = [2, 16, 64], strides = [1, 1, 1]} : vector<2x16x128xf32> to vector<2x16x64xf32>
    %c0_46 = arith.constant 0 : index
    %c0_47 = arith.constant 0 : index
    %c12 = arith.constant 12 : index
    %c0_48 = arith.constant 0 : index
    %95 = vector.load %arg1[%c0_46, %c0_47, %c12, %c0_48] : memref<2x3x15x64xf32, #tpu.memory_space<vmem>>, vector<1x1x1x64xf32>
    %96 = vector.shape_cast %95 : vector<1x1x1x64xf32> to vector<64xf32>
    %97 = vector.shape_cast %96 : vector<64xf32> to vector<1x1x64xf32>
    %98 = vector.broadcast %97 : vector<1x1x64xf32> to vector<2x16x64xf32>
    %99 = arith.mulf %94, %98 : vector<2x16x64xf32>
    %100 = arith.addf %93, %99 : vector<2x16x64xf32>
    %101 = vector.extract_strided_slice %9 {offsets = [0, 0, 14], sizes = [2, 16, 64], strides = [1, 1, 1]} : vector<2x16x128xf32> to vector<2x16x64xf32>
    %c0_49 = arith.constant 0 : index
    %c0_50 = arith.constant 0 : index
    %c13 = arith.constant 13 : index
    %c0_51 = arith.constant 0 : index
    %102 = vector.load %arg1[%c0_49, %c0_50, %c13, %c0_51] : memref<2x3x15x64xf32, #tpu.memory_space<vmem>>, vector<1x1x1x64xf32>
    %103 = vector.shape_cast %102 : vector<1x1x1x64xf32> to vector<64xf32>
    %104 = vector.shape_cast %103 : vector<64xf32> to vector<1x1x64xf32>
    %105 = vector.broadcast %104 : vector<1x1x64xf32> to vector<2x16x64xf32>
    %106 = arith.mulf %101, %105 : vector<2x16x64xf32>
    %107 = arith.addf %100, %106 : vector<2x16x64xf32>
    %108 = vector.extract_strided_slice %9 {offsets = [0, 0, 15], sizes = [2, 16, 64], strides = [1, 1, 1]} : vector<2x16x128xf32> to vector<2x16x64xf32>
    %c0_52 = arith.constant 0 : index
    %c0_53 = arith.constant 0 : index
    %c14 = arith.constant 14 : index
    %c0_54 = arith.constant 0 : index
    %109 = vector.load %arg1[%c0_52, %c0_53, %c14, %c0_54] : memref<2x3x15x64xf32, #tpu.memory_space<vmem>>, vector<1x1x1x64xf32>
    %110 = vector.shape_cast %109 : vector<1x1x1x64xf32> to vector<64xf32>
    %111 = vector.shape_cast %110 : vector<64xf32> to vector<1x1x64xf32>
    %112 = vector.broadcast %111 : vector<1x1x64xf32> to vector<2x16x64xf32>
    %113 = arith.mulf %108, %112 : vector<2x16x64xf32>
    %114 = arith.addf %107, %113 : vector<2x16x64xf32>
    %115 = vector.extract_strided_slice %7 {offsets = [0, 1, 0], sizes = [2, 16, 128], strides = [1, 1, 1]} : vector<2x18x128xf32> to vector<2x16x128xf32>
    %116 = vector.extract_strided_slice %115 {offsets = [0, 0, 1], sizes = [2, 16, 64], strides = [1, 1, 1]} : vector<2x16x128xf32> to vector<2x16x64xf32>
    %c0_55 = arith.constant 0 : index
    %c1_56 = arith.constant 1 : index
    %c0_57 = arith.constant 0 : index
    %c0_58 = arith.constant 0 : index
    %117 = vector.load %arg1[%c0_55, %c1_56, %c0_57, %c0_58] : memref<2x3x15x64xf32, #tpu.memory_space<vmem>>, vector<1x1x1x64xf32>
    %118 = vector.shape_cast %117 : vector<1x1x1x64xf32> to vector<64xf32>
    %119 = vector.shape_cast %118 : vector<64xf32> to vector<1x1x64xf32>
    %120 = vector.broadcast %119 : vector<1x1x64xf32> to vector<2x16x64xf32>
    %121 = arith.mulf %116, %120 : vector<2x16x64xf32>
    %122 = arith.addf %114, %121 : vector<2x16x64xf32>
    %123 = vector.extract_strided_slice %115 {offsets = [0, 0, 2], sizes = [2, 16, 64], strides = [1, 1, 1]} : vector<2x16x128xf32> to vector<2x16x64xf32>
    %c0_59 = arith.constant 0 : index
    %c1_60 = arith.constant 1 : index
    %c1_61 = arith.constant 1 : index
    %c0_62 = arith.constant 0 : index
    %124 = vector.load %arg1[%c0_59, %c1_60, %c1_61, %c0_62] : memref<2x3x15x64xf32, #tpu.memory_space<vmem>>, vector<1x1x1x64xf32>
    %125 = vector.shape_cast %124 : vector<1x1x1x64xf32> to vector<64xf32>
    %126 = vector.shape_cast %125 : vector<64xf32> to vector<1x1x64xf32>
    %127 = vector.broadcast %126 : vector<1x1x64xf32> to vector<2x16x64xf32>
    %128 = arith.mulf %123, %127 : vector<2x16x64xf32>
    %129 = arith.addf %122, %128 : vector<2x16x64xf32>
    %130 = vector.extract_strided_slice %115 {offsets = [0, 0, 3], sizes = [2, 16, 64], strides = [1, 1, 1]} : vector<2x16x128xf32> to vector<2x16x64xf32>
    %c0_63 = arith.constant 0 : index
    %c1_64 = arith.constant 1 : index
    %c2_65 = arith.constant 2 : index
    %c0_66 = arith.constant 0 : index
    %131 = vector.load %arg1[%c0_63, %c1_64, %c2_65, %c0_66] : memref<2x3x15x64xf32, #tpu.memory_space<vmem>>, vector<1x1x1x64xf32>
    %132 = vector.shape_cast %131 : vector<1x1x1x64xf32> to vector<64xf32>
    %133 = vector.shape_cast %132 : vector<64xf32> to vector<1x1x64xf32>
    %134 = vector.broadcast %133 : vector<1x1x64xf32> to vector<2x16x64xf32>
    %135 = arith.mulf %130, %134 : vector<2x16x64xf32>
    %136 = arith.addf %129, %135 : vector<2x16x64xf32>
    %137 = vector.extract_strided_slice %115 {offsets = [0, 0, 4], sizes = [2, 16, 64], strides = [1, 1, 1]} : vector<2x16x128xf32> to vector<2x16x64xf32>
    %c0_67 = arith.constant 0 : index
    %c1_68 = arith.constant 1 : index
    %c3_69 = arith.constant 3 : index
    %c0_70 = arith.constant 0 : index
    %138 = vector.load %arg1[%c0_67, %c1_68, %c3_69, %c0_70] : memref<2x3x15x64xf32, #tpu.memory_space<vmem>>, vector<1x1x1x64xf32>
    %139 = vector.shape_cast %138 : vector<1x1x1x64xf32> to vector<64xf32>
    %140 = vector.shape_cast %139 : vector<64xf32> to vector<1x1x64xf32>
    %141 = vector.broadcast %140 : vector<1x1x64xf32> to vector<2x16x64xf32>
    %142 = arith.mulf %137, %141 : vector<2x16x64xf32>
    %143 = arith.addf %136, %142 : vector<2x16x64xf32>
    %144 = vector.extract_strided_slice %115 {offsets = [0, 0, 5], sizes = [2, 16, 64], strides = [1, 1, 1]} : vector<2x16x128xf32> to vector<2x16x64xf32>
    %c0_71 = arith.constant 0 : index
    %c1_72 = arith.constant 1 : index
    %c4_73 = arith.constant 4 : index
    %c0_74 = arith.constant 0 : index
    %145 = vector.load %arg1[%c0_71, %c1_72, %c4_73, %c0_74] : memref<2x3x15x64xf32, #tpu.memory_space<vmem>>, vector<1x1x1x64xf32>
    %146 = vector.shape_cast %145 : vector<1x1x1x64xf32> to vector<64xf32>
    %147 = vector.shape_cast %146 : vector<64xf32> to vector<1x1x64xf32>
    %148 = vector.broadcast %147 : vector<1x1x64xf32> to vector<2x16x64xf32>
    %149 = arith.mulf %144, %148 : vector<2x16x64xf32>
    %150 = arith.addf %143, %149 : vector<2x16x64xf32>
    %151 = vector.extract_strided_slice %115 {offsets = [0, 0, 6], sizes = [2, 16, 64], strides = [1, 1, 1]} : vector<2x16x128xf32> to vector<2x16x64xf32>
    %c0_75 = arith.constant 0 : index
    %c1_76 = arith.constant 1 : index
    %c5_77 = arith.constant 5 : index
    %c0_78 = arith.constant 0 : index
    %152 = vector.load %arg1[%c0_75, %c1_76, %c5_77, %c0_78] : memref<2x3x15x64xf32, #tpu.memory_space<vmem>>, vector<1x1x1x64xf32>
    %153 = vector.shape_cast %152 : vector<1x1x1x64xf32> to vector<64xf32>
    %154 = vector.shape_cast %153 : vector<64xf32> to vector<1x1x64xf32>
    %155 = vector.broadcast %154 : vector<1x1x64xf32> to vector<2x16x64xf32>
    %156 = arith.mulf %151, %155 : vector<2x16x64xf32>
    %157 = arith.addf %150, %156 : vector<2x16x64xf32>
    %158 = vector.extract_strided_slice %115 {offsets = [0, 0, 7], sizes = [2, 16, 64], strides = [1, 1, 1]} : vector<2x16x128xf32> to vector<2x16x64xf32>
    %c0_79 = arith.constant 0 : index
    %c1_80 = arith.constant 1 : index
    %c6_81 = arith.constant 6 : index
    %c0_82 = arith.constant 0 : index
    %159 = vector.load %arg1[%c0_79, %c1_80, %c6_81, %c0_82] : memref<2x3x15x64xf32, #tpu.memory_space<vmem>>, vector<1x1x1x64xf32>
    %160 = vector.shape_cast %159 : vector<1x1x1x64xf32> to vector<64xf32>
    %161 = vector.shape_cast %160 : vector<64xf32> to vector<1x1x64xf32>
    %162 = vector.broadcast %161 : vector<1x1x64xf32> to vector<2x16x64xf32>
    %163 = arith.mulf %158, %162 : vector<2x16x64xf32>
    %164 = arith.addf %157, %163 : vector<2x16x64xf32>
    %165 = vector.extract_strided_slice %115 {offsets = [0, 0, 8], sizes = [2, 16, 64], strides = [1, 1, 1]} : vector<2x16x128xf32> to vector<2x16x64xf32>
    %c0_83 = arith.constant 0 : index
    %c1_84 = arith.constant 1 : index
    %c7_85 = arith.constant 7 : index
    %c0_86 = arith.constant 0 : index
    %166 = vector.load %arg1[%c0_83, %c1_84, %c7_85, %c0_86] : memref<2x3x15x64xf32, #tpu.memory_space<vmem>>, vector<1x1x1x64xf32>
    %167 = vector.shape_cast %166 : vector<1x1x1x64xf32> to vector<64xf32>
    %168 = vector.shape_cast %167 : vector<64xf32> to vector<1x1x64xf32>
    %169 = vector.broadcast %168 : vector<1x1x64xf32> to vector<2x16x64xf32>
    %170 = arith.mulf %165, %169 : vector<2x16x64xf32>
    %171 = arith.addf %164, %170 : vector<2x16x64xf32>
    %172 = vector.extract_strided_slice %115 {offsets = [0, 0, 9], sizes = [2, 16, 64], strides = [1, 1, 1]} : vector<2x16x128xf32> to vector<2x16x64xf32>
    %c0_87 = arith.constant 0 : index
    %c1_88 = arith.constant 1 : index
    %c8_89 = arith.constant 8 : index
    %c0_90 = arith.constant 0 : index
    %173 = vector.load %arg1[%c0_87, %c1_88, %c8_89, %c0_90] : memref<2x3x15x64xf32, #tpu.memory_space<vmem>>, vector<1x1x1x64xf32>
    %174 = vector.shape_cast %173 : vector<1x1x1x64xf32> to vector<64xf32>
    %175 = vector.shape_cast %174 : vector<64xf32> to vector<1x1x64xf32>
    %176 = vector.broadcast %175 : vector<1x1x64xf32> to vector<2x16x64xf32>
    %177 = arith.mulf %172, %176 : vector<2x16x64xf32>
    %178 = arith.addf %171, %177 : vector<2x16x64xf32>
    %179 = vector.extract_strided_slice %115 {offsets = [0, 0, 10], sizes = [2, 16, 64], strides = [1, 1, 1]} : vector<2x16x128xf32> to vector<2x16x64xf32>
    %c0_91 = arith.constant 0 : index
    %c1_92 = arith.constant 1 : index
    %c9_93 = arith.constant 9 : index
    %c0_94 = arith.constant 0 : index
    %180 = vector.load %arg1[%c0_91, %c1_92, %c9_93, %c0_94] : memref<2x3x15x64xf32, #tpu.memory_space<vmem>>, vector<1x1x1x64xf32>
    %181 = vector.shape_cast %180 : vector<1x1x1x64xf32> to vector<64xf32>
    %182 = vector.shape_cast %181 : vector<64xf32> to vector<1x1x64xf32>
    %183 = vector.broadcast %182 : vector<1x1x64xf32> to vector<2x16x64xf32>
    %184 = arith.mulf %179, %183 : vector<2x16x64xf32>
    %185 = arith.addf %178, %184 : vector<2x16x64xf32>
    %186 = vector.extract_strided_slice %115 {offsets = [0, 0, 11], sizes = [2, 16, 64], strides = [1, 1, 1]} : vector<2x16x128xf32> to vector<2x16x64xf32>
    %c0_95 = arith.constant 0 : index
    %c1_96 = arith.constant 1 : index
    %c10_97 = arith.constant 10 : index
    %c0_98 = arith.constant 0 : index
    %187 = vector.load %arg1[%c0_95, %c1_96, %c10_97, %c0_98] : memref<2x3x15x64xf32, #tpu.memory_space<vmem>>, vector<1x1x1x64xf32>
    %188 = vector.shape_cast %187 : vector<1x1x1x64xf32> to vector<64xf32>
    %189 = vector.shape_cast %188 : vector<64xf32> to vector<1x1x64xf32>
    %190 = vector.broadcast %189 : vector<1x1x64xf32> to vector<2x16x64xf32>
    %191 = arith.mulf %186, %190 : vector<2x16x64xf32>
    %192 = arith.addf %185, %191 : vector<2x16x64xf32>
    %193 = vector.extract_strided_slice %115 {offsets = [0, 0, 12], sizes = [2, 16, 64], strides = [1, 1, 1]} : vector<2x16x128xf32> to vector<2x16x64xf32>
    %c0_99 = arith.constant 0 : index
    %c1_100 = arith.constant 1 : index
    %c11_101 = arith.constant 11 : index
    %c0_102 = arith.constant 0 : index
    %194 = vector.load %arg1[%c0_99, %c1_100, %c11_101, %c0_102] : memref<2x3x15x64xf32, #tpu.memory_space<vmem>>, vector<1x1x1x64xf32>
    %195 = vector.shape_cast %194 : vector<1x1x1x64xf32> to vector<64xf32>
    %196 = vector.shape_cast %195 : vector<64xf32> to vector<1x1x64xf32>
    %197 = vector.broadcast %196 : vector<1x1x64xf32> to vector<2x16x64xf32>
    %198 = arith.mulf %193, %197 : vector<2x16x64xf32>
    %199 = arith.addf %192, %198 : vector<2x16x64xf32>
    %200 = vector.extract_strided_slice %115 {offsets = [0, 0, 13], sizes = [2, 16, 64], strides = [1, 1, 1]} : vector<2x16x128xf32> to vector<2x16x64xf32>
    %c0_103 = arith.constant 0 : index
    %c1_104 = arith.constant 1 : index
    %c12_105 = arith.constant 12 : index
    %c0_106 = arith.constant 0 : index
    %201 = vector.load %arg1[%c0_103, %c1_104, %c12_105, %c0_106] : memref<2x3x15x64xf32, #tpu.memory_space<vmem>>, vector<1x1x1x64xf32>
    %202 = vector.shape_cast %201 : vector<1x1x1x64xf32> to vector<64xf32>
    %203 = vector.shape_cast %202 : vector<64xf32> to vector<1x1x64xf32>
    %204 = vector.broadcast %203 : vector<1x1x64xf32> to vector<2x16x64xf32>
    %205 = arith.mulf %200, %204 : vector<2x16x64xf32>
    %206 = arith.addf %199, %205 : vector<2x16x64xf32>
    %207 = vector.extract_strided_slice %115 {offsets = [0, 0, 14], sizes = [2, 16, 64], strides = [1, 1, 1]} : vector<2x16x128xf32> to vector<2x16x64xf32>
    %c0_107 = arith.constant 0 : index
    %c1_108 = arith.constant 1 : index
    %c13_109 = arith.constant 13 : index
    %c0_110 = arith.constant 0 : index
    %208 = vector.load %arg1[%c0_107, %c1_108, %c13_109, %c0_110] : memref<2x3x15x64xf32, #tpu.memory_space<vmem>>, vector<1x1x1x64xf32>
    %209 = vector.shape_cast %208 : vector<1x1x1x64xf32> to vector<64xf32>
    %210 = vector.shape_cast %209 : vector<64xf32> to vector<1x1x64xf32>
    %211 = vector.broadcast %210 : vector<1x1x64xf32> to vector<2x16x64xf32>
    %212 = arith.mulf %207, %211 : vector<2x16x64xf32>
    %213 = arith.addf %206, %212 : vector<2x16x64xf32>
    %214 = vector.extract_strided_slice %115 {offsets = [0, 0, 15], sizes = [2, 16, 64], strides = [1, 1, 1]} : vector<2x16x128xf32> to vector<2x16x64xf32>
    %c0_111 = arith.constant 0 : index
    %c1_112 = arith.constant 1 : index
    %c14_113 = arith.constant 14 : index
    %c0_114 = arith.constant 0 : index
    %215 = vector.load %arg1[%c0_111, %c1_112, %c14_113, %c0_114] : memref<2x3x15x64xf32, #tpu.memory_space<vmem>>, vector<1x1x1x64xf32>
    %216 = vector.shape_cast %215 : vector<1x1x1x64xf32> to vector<64xf32>
    %217 = vector.shape_cast %216 : vector<64xf32> to vector<1x1x64xf32>
    %218 = vector.broadcast %217 : vector<1x1x64xf32> to vector<2x16x64xf32>
    %219 = arith.mulf %214, %218 : vector<2x16x64xf32>
    %220 = arith.addf %213, %219 : vector<2x16x64xf32>
    %221 = vector.extract_strided_slice %7 {offsets = [0, 2, 0], sizes = [2, 16, 128], strides = [1, 1, 1]} : vector<2x18x128xf32> to vector<2x16x128xf32>
    %222 = vector.extract_strided_slice %221 {offsets = [0, 0, 1], sizes = [2, 16, 64], strides = [1, 1, 1]} : vector<2x16x128xf32> to vector<2x16x64xf32>
    %c0_115 = arith.constant 0 : index
    %c2_116 = arith.constant 2 : index
    %c0_117 = arith.constant 0 : index
    %c0_118 = arith.constant 0 : index
    %223 = vector.load %arg1[%c0_115, %c2_116, %c0_117, %c0_118] : memref<2x3x15x64xf32, #tpu.memory_space<vmem>>, vector<1x1x1x64xf32>
    %224 = vector.shape_cast %223 : vector<1x1x1x64xf32> to vector<64xf32>
    %225 = vector.shape_cast %224 : vector<64xf32> to vector<1x1x64xf32>
    %226 = vector.broadcast %225 : vector<1x1x64xf32> to vector<2x16x64xf32>
    %227 = arith.mulf %222, %226 : vector<2x16x64xf32>
    %228 = arith.addf %220, %227 : vector<2x16x64xf32>
    %229 = vector.extract_strided_slice %221 {offsets = [0, 0, 2], sizes = [2, 16, 64], strides = [1, 1, 1]} : vector<2x16x128xf32> to vector<2x16x64xf32>
    %c0_119 = arith.constant 0 : index
    %c2_120 = arith.constant 2 : index
    %c1_121 = arith.constant 1 : index
    %c0_122 = arith.constant 0 : index
    %230 = vector.load %arg1[%c0_119, %c2_120, %c1_121, %c0_122] : memref<2x3x15x64xf32, #tpu.memory_space<vmem>>, vector<1x1x1x64xf32>
    %231 = vector.shape_cast %230 : vector<1x1x1x64xf32> to vector<64xf32>
    %232 = vector.shape_cast %231 : vector<64xf32> to vector<1x1x64xf32>
    %233 = vector.broadcast %232 : vector<1x1x64xf32> to vector<2x16x64xf32>
    %234 = arith.mulf %229, %233 : vector<2x16x64xf32>
    %235 = arith.addf %228, %234 : vector<2x16x64xf32>
    %236 = vector.extract_strided_slice %221 {offsets = [0, 0, 3], sizes = [2, 16, 64], strides = [1, 1, 1]} : vector<2x16x128xf32> to vector<2x16x64xf32>
    %c0_123 = arith.constant 0 : index
    %c2_124 = arith.constant 2 : index
    %c2_125 = arith.constant 2 : index
    %c0_126 = arith.constant 0 : index
    %237 = vector.load %arg1[%c0_123, %c2_124, %c2_125, %c0_126] : memref<2x3x15x64xf32, #tpu.memory_space<vmem>>, vector<1x1x1x64xf32>
    %238 = vector.shape_cast %237 : vector<1x1x1x64xf32> to vector<64xf32>
    %239 = vector.shape_cast %238 : vector<64xf32> to vector<1x1x64xf32>
    %240 = vector.broadcast %239 : vector<1x1x64xf32> to vector<2x16x64xf32>
    %241 = arith.mulf %236, %240 : vector<2x16x64xf32>
    %242 = arith.addf %235, %241 : vector<2x16x64xf32>
    %243 = vector.extract_strided_slice %221 {offsets = [0, 0, 4], sizes = [2, 16, 64], strides = [1, 1, 1]} : vector<2x16x128xf32> to vector<2x16x64xf32>
    %c0_127 = arith.constant 0 : index
    %c2_128 = arith.constant 2 : index
    %c3_129 = arith.constant 3 : index
    %c0_130 = arith.constant 0 : index
    %244 = vector.load %arg1[%c0_127, %c2_128, %c3_129, %c0_130] : memref<2x3x15x64xf32, #tpu.memory_space<vmem>>, vector<1x1x1x64xf32>
    %245 = vector.shape_cast %244 : vector<1x1x1x64xf32> to vector<64xf32>
    %246 = vector.shape_cast %245 : vector<64xf32> to vector<1x1x64xf32>
    %247 = vector.broadcast %246 : vector<1x1x64xf32> to vector<2x16x64xf32>
    %248 = arith.mulf %243, %247 : vector<2x16x64xf32>
    %249 = arith.addf %242, %248 : vector<2x16x64xf32>
    %250 = vector.extract_strided_slice %221 {offsets = [0, 0, 5], sizes = [2, 16, 64], strides = [1, 1, 1]} : vector<2x16x128xf32> to vector<2x16x64xf32>
    %c0_131 = arith.constant 0 : index
    %c2_132 = arith.constant 2 : index
    %c4_133 = arith.constant 4 : index
    %c0_134 = arith.constant 0 : index
    %251 = vector.load %arg1[%c0_131, %c2_132, %c4_133, %c0_134] : memref<2x3x15x64xf32, #tpu.memory_space<vmem>>, vector<1x1x1x64xf32>
    %252 = vector.shape_cast %251 : vector<1x1x1x64xf32> to vector<64xf32>
    %253 = vector.shape_cast %252 : vector<64xf32> to vector<1x1x64xf32>
    %254 = vector.broadcast %253 : vector<1x1x64xf32> to vector<2x16x64xf32>
    %255 = arith.mulf %250, %254 : vector<2x16x64xf32>
    %256 = arith.addf %249, %255 : vector<2x16x64xf32>
    %257 = vector.extract_strided_slice %221 {offsets = [0, 0, 6], sizes = [2, 16, 64], strides = [1, 1, 1]} : vector<2x16x128xf32> to vector<2x16x64xf32>
    %c0_135 = arith.constant 0 : index
    %c2_136 = arith.constant 2 : index
    %c5_137 = arith.constant 5 : index
    %c0_138 = arith.constant 0 : index
    %258 = vector.load %arg1[%c0_135, %c2_136, %c5_137, %c0_138] : memref<2x3x15x64xf32, #tpu.memory_space<vmem>>, vector<1x1x1x64xf32>
    %259 = vector.shape_cast %258 : vector<1x1x1x64xf32> to vector<64xf32>
    %260 = vector.shape_cast %259 : vector<64xf32> to vector<1x1x64xf32>
    %261 = vector.broadcast %260 : vector<1x1x64xf32> to vector<2x16x64xf32>
    %262 = arith.mulf %257, %261 : vector<2x16x64xf32>
    %263 = arith.addf %256, %262 : vector<2x16x64xf32>
    %264 = vector.extract_strided_slice %221 {offsets = [0, 0, 7], sizes = [2, 16, 64], strides = [1, 1, 1]} : vector<2x16x128xf32> to vector<2x16x64xf32>
    %c0_139 = arith.constant 0 : index
    %c2_140 = arith.constant 2 : index
    %c6_141 = arith.constant 6 : index
    %c0_142 = arith.constant 0 : index
    %265 = vector.load %arg1[%c0_139, %c2_140, %c6_141, %c0_142] : memref<2x3x15x64xf32, #tpu.memory_space<vmem>>, vector<1x1x1x64xf32>
    %266 = vector.shape_cast %265 : vector<1x1x1x64xf32> to vector<64xf32>
    %267 = vector.shape_cast %266 : vector<64xf32> to vector<1x1x64xf32>
    %268 = vector.broadcast %267 : vector<1x1x64xf32> to vector<2x16x64xf32>
    %269 = arith.mulf %264, %268 : vector<2x16x64xf32>
    %270 = arith.addf %263, %269 : vector<2x16x64xf32>
    %271 = vector.extract_strided_slice %221 {offsets = [0, 0, 8], sizes = [2, 16, 64], strides = [1, 1, 1]} : vector<2x16x128xf32> to vector<2x16x64xf32>
    %c0_143 = arith.constant 0 : index
    %c2_144 = arith.constant 2 : index
    %c7_145 = arith.constant 7 : index
    %c0_146 = arith.constant 0 : index
    %272 = vector.load %arg1[%c0_143, %c2_144, %c7_145, %c0_146] : memref<2x3x15x64xf32, #tpu.memory_space<vmem>>, vector<1x1x1x64xf32>
    %273 = vector.shape_cast %272 : vector<1x1x1x64xf32> to vector<64xf32>
    %274 = vector.shape_cast %273 : vector<64xf32> to vector<1x1x64xf32>
    %275 = vector.broadcast %274 : vector<1x1x64xf32> to vector<2x16x64xf32>
    %276 = arith.mulf %271, %275 : vector<2x16x64xf32>
    %277 = arith.addf %270, %276 : vector<2x16x64xf32>
    %278 = vector.extract_strided_slice %221 {offsets = [0, 0, 9], sizes = [2, 16, 64], strides = [1, 1, 1]} : vector<2x16x128xf32> to vector<2x16x64xf32>
    %c0_147 = arith.constant 0 : index
    %c2_148 = arith.constant 2 : index
    %c8_149 = arith.constant 8 : index
    %c0_150 = arith.constant 0 : index
    %279 = vector.load %arg1[%c0_147, %c2_148, %c8_149, %c0_150] : memref<2x3x15x64xf32, #tpu.memory_space<vmem>>, vector<1x1x1x64xf32>
    %280 = vector.shape_cast %279 : vector<1x1x1x64xf32> to vector<64xf32>
    %281 = vector.shape_cast %280 : vector<64xf32> to vector<1x1x64xf32>
    %282 = vector.broadcast %281 : vector<1x1x64xf32> to vector<2x16x64xf32>
    %283 = arith.mulf %278, %282 : vector<2x16x64xf32>
    %284 = arith.addf %277, %283 : vector<2x16x64xf32>
    %285 = vector.extract_strided_slice %221 {offsets = [0, 0, 10], sizes = [2, 16, 64], strides = [1, 1, 1]} : vector<2x16x128xf32> to vector<2x16x64xf32>
    %c0_151 = arith.constant 0 : index
    %c2_152 = arith.constant 2 : index
    %c9_153 = arith.constant 9 : index
    %c0_154 = arith.constant 0 : index
    %286 = vector.load %arg1[%c0_151, %c2_152, %c9_153, %c0_154] : memref<2x3x15x64xf32, #tpu.memory_space<vmem>>, vector<1x1x1x64xf32>
    %287 = vector.shape_cast %286 : vector<1x1x1x64xf32> to vector<64xf32>
    %288 = vector.shape_cast %287 : vector<64xf32> to vector<1x1x64xf32>
    %289 = vector.broadcast %288 : vector<1x1x64xf32> to vector<2x16x64xf32>
    %290 = arith.mulf %285, %289 : vector<2x16x64xf32>
    %291 = arith.addf %284, %290 : vector<2x16x64xf32>
    %292 = vector.extract_strided_slice %221 {offsets = [0, 0, 11], sizes = [2, 16, 64], strides = [1, 1, 1]} : vector<2x16x128xf32> to vector<2x16x64xf32>
    %c0_155 = arith.constant 0 : index
    %c2_156 = arith.constant 2 : index
    %c10_157 = arith.constant 10 : index
    %c0_158 = arith.constant 0 : index
    %293 = vector.load %arg1[%c0_155, %c2_156, %c10_157, %c0_158] : memref<2x3x15x64xf32, #tpu.memory_space<vmem>>, vector<1x1x1x64xf32>
    %294 = vector.shape_cast %293 : vector<1x1x1x64xf32> to vector<64xf32>
    %295 = vector.shape_cast %294 : vector<64xf32> to vector<1x1x64xf32>
    %296 = vector.broadcast %295 : vector<1x1x64xf32> to vector<2x16x64xf32>
    %297 = arith.mulf %292, %296 : vector<2x16x64xf32>
    %298 = arith.addf %291, %297 : vector<2x16x64xf32>
    %299 = vector.extract_strided_slice %221 {offsets = [0, 0, 12], sizes = [2, 16, 64], strides = [1, 1, 1]} : vector<2x16x128xf32> to vector<2x16x64xf32>
    %c0_159 = arith.constant 0 : index
    %c2_160 = arith.constant 2 : index
    %c11_161 = arith.constant 11 : index
    %c0_162 = arith.constant 0 : index
    %300 = vector.load %arg1[%c0_159, %c2_160, %c11_161, %c0_162] : memref<2x3x15x64xf32, #tpu.memory_space<vmem>>, vector<1x1x1x64xf32>
    %301 = vector.shape_cast %300 : vector<1x1x1x64xf32> to vector<64xf32>
    %302 = vector.shape_cast %301 : vector<64xf32> to vector<1x1x64xf32>
    %303 = vector.broadcast %302 : vector<1x1x64xf32> to vector<2x16x64xf32>
    %304 = arith.mulf %299, %303 : vector<2x16x64xf32>
    %305 = arith.addf %298, %304 : vector<2x16x64xf32>
    %306 = vector.extract_strided_slice %221 {offsets = [0, 0, 13], sizes = [2, 16, 64], strides = [1, 1, 1]} : vector<2x16x128xf32> to vector<2x16x64xf32>
    %c0_163 = arith.constant 0 : index
    %c2_164 = arith.constant 2 : index
    %c12_165 = arith.constant 12 : index
    %c0_166 = arith.constant 0 : index
    %307 = vector.load %arg1[%c0_163, %c2_164, %c12_165, %c0_166] : memref<2x3x15x64xf32, #tpu.memory_space<vmem>>, vector<1x1x1x64xf32>
    %308 = vector.shape_cast %307 : vector<1x1x1x64xf32> to vector<64xf32>
    %309 = vector.shape_cast %308 : vector<64xf32> to vector<1x1x64xf32>
    %310 = vector.broadcast %309 : vector<1x1x64xf32> to vector<2x16x64xf32>
    %311 = arith.mulf %306, %310 : vector<2x16x64xf32>
    %312 = arith.addf %305, %311 : vector<2x16x64xf32>
    %313 = vector.extract_strided_slice %221 {offsets = [0, 0, 14], sizes = [2, 16, 64], strides = [1, 1, 1]} : vector<2x16x128xf32> to vector<2x16x64xf32>
    %c0_167 = arith.constant 0 : index
    %c2_168 = arith.constant 2 : index
    %c13_169 = arith.constant 13 : index
    %c0_170 = arith.constant 0 : index
    %314 = vector.load %arg1[%c0_167, %c2_168, %c13_169, %c0_170] : memref<2x3x15x64xf32, #tpu.memory_space<vmem>>, vector<1x1x1x64xf32>
    %315 = vector.shape_cast %314 : vector<1x1x1x64xf32> to vector<64xf32>
    %316 = vector.shape_cast %315 : vector<64xf32> to vector<1x1x64xf32>
    %317 = vector.broadcast %316 : vector<1x1x64xf32> to vector<2x16x64xf32>
    %318 = arith.mulf %313, %317 : vector<2x16x64xf32>
    %319 = arith.addf %312, %318 : vector<2x16x64xf32>
    %320 = vector.extract_strided_slice %221 {offsets = [0, 0, 15], sizes = [2, 16, 64], strides = [1, 1, 1]} : vector<2x16x128xf32> to vector<2x16x64xf32>
    %c0_171 = arith.constant 0 : index
    %c2_172 = arith.constant 2 : index
    %c14_173 = arith.constant 14 : index
    %c0_174 = arith.constant 0 : index
    %321 = vector.load %arg1[%c0_171, %c2_172, %c14_173, %c0_174] : memref<2x3x15x64xf32, #tpu.memory_space<vmem>>, vector<1x1x1x64xf32>
    %322 = vector.shape_cast %321 : vector<1x1x1x64xf32> to vector<64xf32>
    %323 = vector.shape_cast %322 : vector<64xf32> to vector<1x1x64xf32>
    %324 = vector.broadcast %323 : vector<1x1x64xf32> to vector<2x16x64xf32>
    %325 = arith.mulf %320, %324 : vector<2x16x64xf32>
    %326 = arith.addf %319, %325 : vector<2x16x64xf32>
    %327 = vector.extract_strided_slice %1 {offsets = [0, 0], sizes = [1, 64], strides = [1, 1]} : vector<4x64xf32> to vector<1x64xf32>
    %328 = vector.extract_strided_slice %1 {offsets = [1, 0], sizes = [1, 64], strides = [1, 1]} : vector<4x64xf32> to vector<1x64xf32>
    %cst_175 = arith.constant dense<0.000000e+00> : vector<64xf32>
    %329 = vector.multi_reduction <add>, %326, %cst_175 [0, 1] : vector<2x16x64xf32> to vector<64xf32>
    %330 = vector.shape_cast %329 : vector<64xf32> to vector<1x64xf32>
    %cst_176 = arith.constant dense<0.000000e+00> : vector<1x64xf32>
    %331 = tpu.matmul %330, %2, %cst_176 {dimension_numbers = #tpu.dot_dimension_numbers<[1], [0], [0], [1], [0, 0, 1, 1], [], []>} : vector<1x64xf32>, vector<64x64xf32>, vector<1x64xf32> -> vector<1x64xf32>
    %cst_177 = arith.constant 0.001953125 : f32
    %332 = vector.broadcast %cst_177 : f32 to vector<1x64xf32>
    %333 = arith.mulf %331, %332 : vector<1x64xf32>
    %334 = arith.mulf %326, %326 : vector<2x16x64xf32>
    %cst_178 = arith.constant dense<0.000000e+00> : vector<64xf32>
    %335 = vector.multi_reduction <add>, %334, %cst_178 [0, 1] : vector<2x16x64xf32> to vector<64xf32>
    %336 = vector.shape_cast %335 : vector<64xf32> to vector<1x64xf32>
    %cst_179 = arith.constant dense<0.000000e+00> : vector<1x64xf32>
    %337 = tpu.matmul %336, %2, %cst_179 {dimension_numbers = #tpu.dot_dimension_numbers<[1], [0], [0], [1], [0, 0, 1, 1], [], []>} : vector<1x64xf32>, vector<64x64xf32>, vector<1x64xf32> -> vector<1x64xf32>
    %cst_180 = arith.constant 0.001953125 : f32
    %338 = vector.broadcast %cst_180 : f32 to vector<1x64xf32>
    %339 = arith.mulf %337, %338 : vector<1x64xf32>
    %340 = arith.mulf %333, %333 : vector<1x64xf32>
    %341 = arith.subf %339, %340 : vector<1x64xf32>
    %cst_181 = arith.constant 9.99999974E-6 : f32
    %342 = vector.broadcast %cst_181 : f32 to vector<1x64xf32>
    %343 = arith.addf %341, %342 : vector<1x64xf32>
    %344 = math.rsqrt %343 : vector<1x64xf32>
    %345 = arith.mulf %327, %344 : vector<1x64xf32>
    %346 = arith.mulf %333, %345 : vector<1x64xf32>
    %347 = arith.subf %328, %346 : vector<1x64xf32>
    %348 = vector.shape_cast %345 : vector<1x64xf32> to vector<1x1x64xf32>
    %349 = vector.broadcast %348 : vector<1x1x64xf32> to vector<2x16x64xf32>
    %350 = arith.mulf %326, %349 : vector<2x16x64xf32>
    %351 = vector.shape_cast %347 : vector<1x64xf32> to vector<1x1x64xf32>
    %352 = vector.broadcast %351 : vector<1x1x64xf32> to vector<2x16x64xf32>
    %353 = arith.addf %350, %352 : vector<2x16x64xf32>
    %cst_182 = arith.constant 0.000000e+00 : f32
    %354 = vector.broadcast %cst_182 : f32 to vector<2x16x64xf32>
    %355 = arith.maximumf %353, %354 : vector<2x16x64xf32>
    %cst_183 = arith.constant 0.000000e+00 : f32
    %356 = vector.broadcast %cst_183 : f32 to vector<2x1x64xf32>
    %357 = tpu.concatenate %356, %355, %356 in 1 : vector<2x1x64xf32>, vector<2x16x64xf32>, vector<2x1x64xf32> -> vector<2x18x64xf32>
    %cst_184 = arith.constant 0.000000e+00 : f32
    %358 = vector.broadcast %cst_184 : f32 to vector<2x18x8xf32>
    %cst_185 = arith.constant 0.000000e+00 : f32
    %359 = vector.broadcast %cst_185 : f32 to vector<2x18x56xf32>
    %360 = tpu.concatenate %358, %357, %359 in 2 : vector<2x18x8xf32>, vector<2x18x64xf32>, vector<2x18x56xf32> -> vector<2x18x128xf32>
    %cst_186 = arith.constant 0.000000e+00 : f32
    %361 = vector.broadcast %cst_186 : f32 to vector<2x16x64xf32>
    %362 = vector.extract_strided_slice %360 {offsets = [0, 0, 0], sizes = [2, 16, 128], strides = [1, 1, 1]} : vector<2x18x128xf32> to vector<2x16x128xf32>
    %363 = vector.extract_strided_slice %362 {offsets = [0, 0, 1], sizes = [2, 16, 64], strides = [1, 1, 1]} : vector<2x16x128xf32> to vector<2x16x64xf32>
    %c1_187 = arith.constant 1 : index
    %c0_188 = arith.constant 0 : index
    %c0_189 = arith.constant 0 : index
    %c0_190 = arith.constant 0 : index
    %364 = vector.load %arg1[%c1_187, %c0_188, %c0_189, %c0_190] : memref<2x3x15x64xf32, #tpu.memory_space<vmem>>, vector<1x1x1x64xf32>
    %365 = vector.shape_cast %364 : vector<1x1x1x64xf32> to vector<64xf32>
    %366 = vector.shape_cast %365 : vector<64xf32> to vector<1x1x64xf32>
    %367 = vector.broadcast %366 : vector<1x1x64xf32> to vector<2x16x64xf32>
    %368 = arith.mulf %363, %367 : vector<2x16x64xf32>
    %369 = arith.addf %361, %368 : vector<2x16x64xf32>
    %370 = vector.extract_strided_slice %362 {offsets = [0, 0, 2], sizes = [2, 16, 64], strides = [1, 1, 1]} : vector<2x16x128xf32> to vector<2x16x64xf32>
    %c1_191 = arith.constant 1 : index
    %c0_192 = arith.constant 0 : index
    %c1_193 = arith.constant 1 : index
    %c0_194 = arith.constant 0 : index
    %371 = vector.load %arg1[%c1_191, %c0_192, %c1_193, %c0_194] : memref<2x3x15x64xf32, #tpu.memory_space<vmem>>, vector<1x1x1x64xf32>
    %372 = vector.shape_cast %371 : vector<1x1x1x64xf32> to vector<64xf32>
    %373 = vector.shape_cast %372 : vector<64xf32> to vector<1x1x64xf32>
    %374 = vector.broadcast %373 : vector<1x1x64xf32> to vector<2x16x64xf32>
    %375 = arith.mulf %370, %374 : vector<2x16x64xf32>
    %376 = arith.addf %369, %375 : vector<2x16x64xf32>
    %377 = vector.extract_strided_slice %362 {offsets = [0, 0, 3], sizes = [2, 16, 64], strides = [1, 1, 1]} : vector<2x16x128xf32> to vector<2x16x64xf32>
    %c1_195 = arith.constant 1 : index
    %c0_196 = arith.constant 0 : index
    %c2_197 = arith.constant 2 : index
    %c0_198 = arith.constant 0 : index
    %378 = vector.load %arg1[%c1_195, %c0_196, %c2_197, %c0_198] : memref<2x3x15x64xf32, #tpu.memory_space<vmem>>, vector<1x1x1x64xf32>
    %379 = vector.shape_cast %378 : vector<1x1x1x64xf32> to vector<64xf32>
    %380 = vector.shape_cast %379 : vector<64xf32> to vector<1x1x64xf32>
    %381 = vector.broadcast %380 : vector<1x1x64xf32> to vector<2x16x64xf32>
    %382 = arith.mulf %377, %381 : vector<2x16x64xf32>
    %383 = arith.addf %376, %382 : vector<2x16x64xf32>
    %384 = vector.extract_strided_slice %362 {offsets = [0, 0, 4], sizes = [2, 16, 64], strides = [1, 1, 1]} : vector<2x16x128xf32> to vector<2x16x64xf32>
    %c1_199 = arith.constant 1 : index
    %c0_200 = arith.constant 0 : index
    %c3_201 = arith.constant 3 : index
    %c0_202 = arith.constant 0 : index
    %385 = vector.load %arg1[%c1_199, %c0_200, %c3_201, %c0_202] : memref<2x3x15x64xf32, #tpu.memory_space<vmem>>, vector<1x1x1x64xf32>
    %386 = vector.shape_cast %385 : vector<1x1x1x64xf32> to vector<64xf32>
    %387 = vector.shape_cast %386 : vector<64xf32> to vector<1x1x64xf32>
    %388 = vector.broadcast %387 : vector<1x1x64xf32> to vector<2x16x64xf32>
    %389 = arith.mulf %384, %388 : vector<2x16x64xf32>
    %390 = arith.addf %383, %389 : vector<2x16x64xf32>
    %391 = vector.extract_strided_slice %362 {offsets = [0, 0, 5], sizes = [2, 16, 64], strides = [1, 1, 1]} : vector<2x16x128xf32> to vector<2x16x64xf32>
    %c1_203 = arith.constant 1 : index
    %c0_204 = arith.constant 0 : index
    %c4_205 = arith.constant 4 : index
    %c0_206 = arith.constant 0 : index
    %392 = vector.load %arg1[%c1_203, %c0_204, %c4_205, %c0_206] : memref<2x3x15x64xf32, #tpu.memory_space<vmem>>, vector<1x1x1x64xf32>
    %393 = vector.shape_cast %392 : vector<1x1x1x64xf32> to vector<64xf32>
    %394 = vector.shape_cast %393 : vector<64xf32> to vector<1x1x64xf32>
    %395 = vector.broadcast %394 : vector<1x1x64xf32> to vector<2x16x64xf32>
    %396 = arith.mulf %391, %395 : vector<2x16x64xf32>
    %397 = arith.addf %390, %396 : vector<2x16x64xf32>
    %398 = vector.extract_strided_slice %362 {offsets = [0, 0, 6], sizes = [2, 16, 64], strides = [1, 1, 1]} : vector<2x16x128xf32> to vector<2x16x64xf32>
    %c1_207 = arith.constant 1 : index
    %c0_208 = arith.constant 0 : index
    %c5_209 = arith.constant 5 : index
    %c0_210 = arith.constant 0 : index
    %399 = vector.load %arg1[%c1_207, %c0_208, %c5_209, %c0_210] : memref<2x3x15x64xf32, #tpu.memory_space<vmem>>, vector<1x1x1x64xf32>
    %400 = vector.shape_cast %399 : vector<1x1x1x64xf32> to vector<64xf32>
    %401 = vector.shape_cast %400 : vector<64xf32> to vector<1x1x64xf32>
    %402 = vector.broadcast %401 : vector<1x1x64xf32> to vector<2x16x64xf32>
    %403 = arith.mulf %398, %402 : vector<2x16x64xf32>
    %404 = arith.addf %397, %403 : vector<2x16x64xf32>
    %405 = vector.extract_strided_slice %362 {offsets = [0, 0, 7], sizes = [2, 16, 64], strides = [1, 1, 1]} : vector<2x16x128xf32> to vector<2x16x64xf32>
    %c1_211 = arith.constant 1 : index
    %c0_212 = arith.constant 0 : index
    %c6_213 = arith.constant 6 : index
    %c0_214 = arith.constant 0 : index
    %406 = vector.load %arg1[%c1_211, %c0_212, %c6_213, %c0_214] : memref<2x3x15x64xf32, #tpu.memory_space<vmem>>, vector<1x1x1x64xf32>
    %407 = vector.shape_cast %406 : vector<1x1x1x64xf32> to vector<64xf32>
    %408 = vector.shape_cast %407 : vector<64xf32> to vector<1x1x64xf32>
    %409 = vector.broadcast %408 : vector<1x1x64xf32> to vector<2x16x64xf32>
    %410 = arith.mulf %405, %409 : vector<2x16x64xf32>
    %411 = arith.addf %404, %410 : vector<2x16x64xf32>
    %412 = vector.extract_strided_slice %362 {offsets = [0, 0, 8], sizes = [2, 16, 64], strides = [1, 1, 1]} : vector<2x16x128xf32> to vector<2x16x64xf32>
    %c1_215 = arith.constant 1 : index
    %c0_216 = arith.constant 0 : index
    %c7_217 = arith.constant 7 : index
    %c0_218 = arith.constant 0 : index
    %413 = vector.load %arg1[%c1_215, %c0_216, %c7_217, %c0_218] : memref<2x3x15x64xf32, #tpu.memory_space<vmem>>, vector<1x1x1x64xf32>
    %414 = vector.shape_cast %413 : vector<1x1x1x64xf32> to vector<64xf32>
    %415 = vector.shape_cast %414 : vector<64xf32> to vector<1x1x64xf32>
    %416 = vector.broadcast %415 : vector<1x1x64xf32> to vector<2x16x64xf32>
    %417 = arith.mulf %412, %416 : vector<2x16x64xf32>
    %418 = arith.addf %411, %417 : vector<2x16x64xf32>
    %419 = vector.extract_strided_slice %362 {offsets = [0, 0, 9], sizes = [2, 16, 64], strides = [1, 1, 1]} : vector<2x16x128xf32> to vector<2x16x64xf32>
    %c1_219 = arith.constant 1 : index
    %c0_220 = arith.constant 0 : index
    %c8_221 = arith.constant 8 : index
    %c0_222 = arith.constant 0 : index
    %420 = vector.load %arg1[%c1_219, %c0_220, %c8_221, %c0_222] : memref<2x3x15x64xf32, #tpu.memory_space<vmem>>, vector<1x1x1x64xf32>
    %421 = vector.shape_cast %420 : vector<1x1x1x64xf32> to vector<64xf32>
    %422 = vector.shape_cast %421 : vector<64xf32> to vector<1x1x64xf32>
    %423 = vector.broadcast %422 : vector<1x1x64xf32> to vector<2x16x64xf32>
    %424 = arith.mulf %419, %423 : vector<2x16x64xf32>
    %425 = arith.addf %418, %424 : vector<2x16x64xf32>
    %426 = vector.extract_strided_slice %362 {offsets = [0, 0, 10], sizes = [2, 16, 64], strides = [1, 1, 1]} : vector<2x16x128xf32> to vector<2x16x64xf32>
    %c1_223 = arith.constant 1 : index
    %c0_224 = arith.constant 0 : index
    %c9_225 = arith.constant 9 : index
    %c0_226 = arith.constant 0 : index
    %427 = vector.load %arg1[%c1_223, %c0_224, %c9_225, %c0_226] : memref<2x3x15x64xf32, #tpu.memory_space<vmem>>, vector<1x1x1x64xf32>
    %428 = vector.shape_cast %427 : vector<1x1x1x64xf32> to vector<64xf32>
    %429 = vector.shape_cast %428 : vector<64xf32> to vector<1x1x64xf32>
    %430 = vector.broadcast %429 : vector<1x1x64xf32> to vector<2x16x64xf32>
    %431 = arith.mulf %426, %430 : vector<2x16x64xf32>
    %432 = arith.addf %425, %431 : vector<2x16x64xf32>
    %433 = vector.extract_strided_slice %362 {offsets = [0, 0, 11], sizes = [2, 16, 64], strides = [1, 1, 1]} : vector<2x16x128xf32> to vector<2x16x64xf32>
    %c1_227 = arith.constant 1 : index
    %c0_228 = arith.constant 0 : index
    %c10_229 = arith.constant 10 : index
    %c0_230 = arith.constant 0 : index
    %434 = vector.load %arg1[%c1_227, %c0_228, %c10_229, %c0_230] : memref<2x3x15x64xf32, #tpu.memory_space<vmem>>, vector<1x1x1x64xf32>
    %435 = vector.shape_cast %434 : vector<1x1x1x64xf32> to vector<64xf32>
    %436 = vector.shape_cast %435 : vector<64xf32> to vector<1x1x64xf32>
    %437 = vector.broadcast %436 : vector<1x1x64xf32> to vector<2x16x64xf32>
    %438 = arith.mulf %433, %437 : vector<2x16x64xf32>
    %439 = arith.addf %432, %438 : vector<2x16x64xf32>
    %440 = vector.extract_strided_slice %362 {offsets = [0, 0, 12], sizes = [2, 16, 64], strides = [1, 1, 1]} : vector<2x16x128xf32> to vector<2x16x64xf32>
    %c1_231 = arith.constant 1 : index
    %c0_232 = arith.constant 0 : index
    %c11_233 = arith.constant 11 : index
    %c0_234 = arith.constant 0 : index
    %441 = vector.load %arg1[%c1_231, %c0_232, %c11_233, %c0_234] : memref<2x3x15x64xf32, #tpu.memory_space<vmem>>, vector<1x1x1x64xf32>
    %442 = vector.shape_cast %441 : vector<1x1x1x64xf32> to vector<64xf32>
    %443 = vector.shape_cast %442 : vector<64xf32> to vector<1x1x64xf32>
    %444 = vector.broadcast %443 : vector<1x1x64xf32> to vector<2x16x64xf32>
    %445 = arith.mulf %440, %444 : vector<2x16x64xf32>
    %446 = arith.addf %439, %445 : vector<2x16x64xf32>
    %447 = vector.extract_strided_slice %362 {offsets = [0, 0, 13], sizes = [2, 16, 64], strides = [1, 1, 1]} : vector<2x16x128xf32> to vector<2x16x64xf32>
    %c1_235 = arith.constant 1 : index
    %c0_236 = arith.constant 0 : index
    %c12_237 = arith.constant 12 : index
    %c0_238 = arith.constant 0 : index
    %448 = vector.load %arg1[%c1_235, %c0_236, %c12_237, %c0_238] : memref<2x3x15x64xf32, #tpu.memory_space<vmem>>, vector<1x1x1x64xf32>
    %449 = vector.shape_cast %448 : vector<1x1x1x64xf32> to vector<64xf32>
    %450 = vector.shape_cast %449 : vector<64xf32> to vector<1x1x64xf32>
    %451 = vector.broadcast %450 : vector<1x1x64xf32> to vector<2x16x64xf32>
    %452 = arith.mulf %447, %451 : vector<2x16x64xf32>
    %453 = arith.addf %446, %452 : vector<2x16x64xf32>
    %454 = vector.extract_strided_slice %362 {offsets = [0, 0, 14], sizes = [2, 16, 64], strides = [1, 1, 1]} : vector<2x16x128xf32> to vector<2x16x64xf32>
    %c1_239 = arith.constant 1 : index
    %c0_240 = arith.constant 0 : index
    %c13_241 = arith.constant 13 : index
    %c0_242 = arith.constant 0 : index
    %455 = vector.load %arg1[%c1_239, %c0_240, %c13_241, %c0_242] : memref<2x3x15x64xf32, #tpu.memory_space<vmem>>, vector<1x1x1x64xf32>
    %456 = vector.shape_cast %455 : vector<1x1x1x64xf32> to vector<64xf32>
    %457 = vector.shape_cast %456 : vector<64xf32> to vector<1x1x64xf32>
    %458 = vector.broadcast %457 : vector<1x1x64xf32> to vector<2x16x64xf32>
    %459 = arith.mulf %454, %458 : vector<2x16x64xf32>
    %460 = arith.addf %453, %459 : vector<2x16x64xf32>
    %461 = vector.extract_strided_slice %362 {offsets = [0, 0, 15], sizes = [2, 16, 64], strides = [1, 1, 1]} : vector<2x16x128xf32> to vector<2x16x64xf32>
    %c1_243 = arith.constant 1 : index
    %c0_244 = arith.constant 0 : index
    %c14_245 = arith.constant 14 : index
    %c0_246 = arith.constant 0 : index
    %462 = vector.load %arg1[%c1_243, %c0_244, %c14_245, %c0_246] : memref<2x3x15x64xf32, #tpu.memory_space<vmem>>, vector<1x1x1x64xf32>
    %463 = vector.shape_cast %462 : vector<1x1x1x64xf32> to vector<64xf32>
    %464 = vector.shape_cast %463 : vector<64xf32> to vector<1x1x64xf32>
    %465 = vector.broadcast %464 : vector<1x1x64xf32> to vector<2x16x64xf32>
    %466 = arith.mulf %461, %465 : vector<2x16x64xf32>
    %467 = arith.addf %460, %466 : vector<2x16x64xf32>
    %468 = vector.extract_strided_slice %360 {offsets = [0, 1, 0], sizes = [2, 16, 128], strides = [1, 1, 1]} : vector<2x18x128xf32> to vector<2x16x128xf32>
    %469 = vector.extract_strided_slice %468 {offsets = [0, 0, 1], sizes = [2, 16, 64], strides = [1, 1, 1]} : vector<2x16x128xf32> to vector<2x16x64xf32>
    %c1_247 = arith.constant 1 : index
    %c1_248 = arith.constant 1 : index
    %c0_249 = arith.constant 0 : index
    %c0_250 = arith.constant 0 : index
    %470 = vector.load %arg1[%c1_247, %c1_248, %c0_249, %c0_250] : memref<2x3x15x64xf32, #tpu.memory_space<vmem>>, vector<1x1x1x64xf32>
    %471 = vector.shape_cast %470 : vector<1x1x1x64xf32> to vector<64xf32>
    %472 = vector.shape_cast %471 : vector<64xf32> to vector<1x1x64xf32>
    %473 = vector.broadcast %472 : vector<1x1x64xf32> to vector<2x16x64xf32>
    %474 = arith.mulf %469, %473 : vector<2x16x64xf32>
    %475 = arith.addf %467, %474 : vector<2x16x64xf32>
    %476 = vector.extract_strided_slice %468 {offsets = [0, 0, 2], sizes = [2, 16, 64], strides = [1, 1, 1]} : vector<2x16x128xf32> to vector<2x16x64xf32>
    %c1_251 = arith.constant 1 : index
    %c1_252 = arith.constant 1 : index
    %c1_253 = arith.constant 1 : index
    %c0_254 = arith.constant 0 : index
    %477 = vector.load %arg1[%c1_251, %c1_252, %c1_253, %c0_254] : memref<2x3x15x64xf32, #tpu.memory_space<vmem>>, vector<1x1x1x64xf32>
    %478 = vector.shape_cast %477 : vector<1x1x1x64xf32> to vector<64xf32>
    %479 = vector.shape_cast %478 : vector<64xf32> to vector<1x1x64xf32>
    %480 = vector.broadcast %479 : vector<1x1x64xf32> to vector<2x16x64xf32>
    %481 = arith.mulf %476, %480 : vector<2x16x64xf32>
    %482 = arith.addf %475, %481 : vector<2x16x64xf32>
    %483 = vector.extract_strided_slice %468 {offsets = [0, 0, 3], sizes = [2, 16, 64], strides = [1, 1, 1]} : vector<2x16x128xf32> to vector<2x16x64xf32>
    %c1_255 = arith.constant 1 : index
    %c1_256 = arith.constant 1 : index
    %c2_257 = arith.constant 2 : index
    %c0_258 = arith.constant 0 : index
    %484 = vector.load %arg1[%c1_255, %c1_256, %c2_257, %c0_258] : memref<2x3x15x64xf32, #tpu.memory_space<vmem>>, vector<1x1x1x64xf32>
    %485 = vector.shape_cast %484 : vector<1x1x1x64xf32> to vector<64xf32>
    %486 = vector.shape_cast %485 : vector<64xf32> to vector<1x1x64xf32>
    %487 = vector.broadcast %486 : vector<1x1x64xf32> to vector<2x16x64xf32>
    %488 = arith.mulf %483, %487 : vector<2x16x64xf32>
    %489 = arith.addf %482, %488 : vector<2x16x64xf32>
    %490 = vector.extract_strided_slice %468 {offsets = [0, 0, 4], sizes = [2, 16, 64], strides = [1, 1, 1]} : vector<2x16x128xf32> to vector<2x16x64xf32>
    %c1_259 = arith.constant 1 : index
    %c1_260 = arith.constant 1 : index
    %c3_261 = arith.constant 3 : index
    %c0_262 = arith.constant 0 : index
    %491 = vector.load %arg1[%c1_259, %c1_260, %c3_261, %c0_262] : memref<2x3x15x64xf32, #tpu.memory_space<vmem>>, vector<1x1x1x64xf32>
    %492 = vector.shape_cast %491 : vector<1x1x1x64xf32> to vector<64xf32>
    %493 = vector.shape_cast %492 : vector<64xf32> to vector<1x1x64xf32>
    %494 = vector.broadcast %493 : vector<1x1x64xf32> to vector<2x16x64xf32>
    %495 = arith.mulf %490, %494 : vector<2x16x64xf32>
    %496 = arith.addf %489, %495 : vector<2x16x64xf32>
    %497 = vector.extract_strided_slice %468 {offsets = [0, 0, 5], sizes = [2, 16, 64], strides = [1, 1, 1]} : vector<2x16x128xf32> to vector<2x16x64xf32>
    %c1_263 = arith.constant 1 : index
    %c1_264 = arith.constant 1 : index
    %c4_265 = arith.constant 4 : index
    %c0_266 = arith.constant 0 : index
    %498 = vector.load %arg1[%c1_263, %c1_264, %c4_265, %c0_266] : memref<2x3x15x64xf32, #tpu.memory_space<vmem>>, vector<1x1x1x64xf32>
    %499 = vector.shape_cast %498 : vector<1x1x1x64xf32> to vector<64xf32>
    %500 = vector.shape_cast %499 : vector<64xf32> to vector<1x1x64xf32>
    %501 = vector.broadcast %500 : vector<1x1x64xf32> to vector<2x16x64xf32>
    %502 = arith.mulf %497, %501 : vector<2x16x64xf32>
    %503 = arith.addf %496, %502 : vector<2x16x64xf32>
    %504 = vector.extract_strided_slice %468 {offsets = [0, 0, 6], sizes = [2, 16, 64], strides = [1, 1, 1]} : vector<2x16x128xf32> to vector<2x16x64xf32>
    %c1_267 = arith.constant 1 : index
    %c1_268 = arith.constant 1 : index
    %c5_269 = arith.constant 5 : index
    %c0_270 = arith.constant 0 : index
    %505 = vector.load %arg1[%c1_267, %c1_268, %c5_269, %c0_270] : memref<2x3x15x64xf32, #tpu.memory_space<vmem>>, vector<1x1x1x64xf32>
    %506 = vector.shape_cast %505 : vector<1x1x1x64xf32> to vector<64xf32>
    %507 = vector.shape_cast %506 : vector<64xf32> to vector<1x1x64xf32>
    %508 = vector.broadcast %507 : vector<1x1x64xf32> to vector<2x16x64xf32>
    %509 = arith.mulf %504, %508 : vector<2x16x64xf32>
    %510 = arith.addf %503, %509 : vector<2x16x64xf32>
    %511 = vector.extract_strided_slice %468 {offsets = [0, 0, 7], sizes = [2, 16, 64], strides = [1, 1, 1]} : vector<2x16x128xf32> to vector<2x16x64xf32>
    %c1_271 = arith.constant 1 : index
    %c1_272 = arith.constant 1 : index
    %c6_273 = arith.constant 6 : index
    %c0_274 = arith.constant 0 : index
    %512 = vector.load %arg1[%c1_271, %c1_272, %c6_273, %c0_274] : memref<2x3x15x64xf32, #tpu.memory_space<vmem>>, vector<1x1x1x64xf32>
    %513 = vector.shape_cast %512 : vector<1x1x1x64xf32> to vector<64xf32>
    %514 = vector.shape_cast %513 : vector<64xf32> to vector<1x1x64xf32>
    %515 = vector.broadcast %514 : vector<1x1x64xf32> to vector<2x16x64xf32>
    %516 = arith.mulf %511, %515 : vector<2x16x64xf32>
    %517 = arith.addf %510, %516 : vector<2x16x64xf32>
    %518 = vector.extract_strided_slice %468 {offsets = [0, 0, 8], sizes = [2, 16, 64], strides = [1, 1, 1]} : vector<2x16x128xf32> to vector<2x16x64xf32>
    %c1_275 = arith.constant 1 : index
    %c1_276 = arith.constant 1 : index
    %c7_277 = arith.constant 7 : index
    %c0_278 = arith.constant 0 : index
    %519 = vector.load %arg1[%c1_275, %c1_276, %c7_277, %c0_278] : memref<2x3x15x64xf32, #tpu.memory_space<vmem>>, vector<1x1x1x64xf32>
    %520 = vector.shape_cast %519 : vector<1x1x1x64xf32> to vector<64xf32>
    %521 = vector.shape_cast %520 : vector<64xf32> to vector<1x1x64xf32>
    %522 = vector.broadcast %521 : vector<1x1x64xf32> to vector<2x16x64xf32>
    %523 = arith.mulf %518, %522 : vector<2x16x64xf32>
    %524 = arith.addf %517, %523 : vector<2x16x64xf32>
    %525 = vector.extract_strided_slice %468 {offsets = [0, 0, 9], sizes = [2, 16, 64], strides = [1, 1, 1]} : vector<2x16x128xf32> to vector<2x16x64xf32>
    %c1_279 = arith.constant 1 : index
    %c1_280 = arith.constant 1 : index
    %c8_281 = arith.constant 8 : index
    %c0_282 = arith.constant 0 : index
    %526 = vector.load %arg1[%c1_279, %c1_280, %c8_281, %c0_282] : memref<2x3x15x64xf32, #tpu.memory_space<vmem>>, vector<1x1x1x64xf32>
    %527 = vector.shape_cast %526 : vector<1x1x1x64xf32> to vector<64xf32>
    %528 = vector.shape_cast %527 : vector<64xf32> to vector<1x1x64xf32>
    %529 = vector.broadcast %528 : vector<1x1x64xf32> to vector<2x16x64xf32>
    %530 = arith.mulf %525, %529 : vector<2x16x64xf32>
    %531 = arith.addf %524, %530 : vector<2x16x64xf32>
    %532 = vector.extract_strided_slice %468 {offsets = [0, 0, 10], sizes = [2, 16, 64], strides = [1, 1, 1]} : vector<2x16x128xf32> to vector<2x16x64xf32>
    %c1_283 = arith.constant 1 : index
    %c1_284 = arith.constant 1 : index
    %c9_285 = arith.constant 9 : index
    %c0_286 = arith.constant 0 : index
    %533 = vector.load %arg1[%c1_283, %c1_284, %c9_285, %c0_286] : memref<2x3x15x64xf32, #tpu.memory_space<vmem>>, vector<1x1x1x64xf32>
    %534 = vector.shape_cast %533 : vector<1x1x1x64xf32> to vector<64xf32>
    %535 = vector.shape_cast %534 : vector<64xf32> to vector<1x1x64xf32>
    %536 = vector.broadcast %535 : vector<1x1x64xf32> to vector<2x16x64xf32>
    %537 = arith.mulf %532, %536 : vector<2x16x64xf32>
    %538 = arith.addf %531, %537 : vector<2x16x64xf32>
    %539 = vector.extract_strided_slice %468 {offsets = [0, 0, 11], sizes = [2, 16, 64], strides = [1, 1, 1]} : vector<2x16x128xf32> to vector<2x16x64xf32>
    %c1_287 = arith.constant 1 : index
    %c1_288 = arith.constant 1 : index
    %c10_289 = arith.constant 10 : index
    %c0_290 = arith.constant 0 : index
    %540 = vector.load %arg1[%c1_287, %c1_288, %c10_289, %c0_290] : memref<2x3x15x64xf32, #tpu.memory_space<vmem>>, vector<1x1x1x64xf32>
    %541 = vector.shape_cast %540 : vector<1x1x1x64xf32> to vector<64xf32>
    %542 = vector.shape_cast %541 : vector<64xf32> to vector<1x1x64xf32>
    %543 = vector.broadcast %542 : vector<1x1x64xf32> to vector<2x16x64xf32>
    %544 = arith.mulf %539, %543 : vector<2x16x64xf32>
    %545 = arith.addf %538, %544 : vector<2x16x64xf32>
    %546 = vector.extract_strided_slice %468 {offsets = [0, 0, 12], sizes = [2, 16, 64], strides = [1, 1, 1]} : vector<2x16x128xf32> to vector<2x16x64xf32>
    %c1_291 = arith.constant 1 : index
    %c1_292 = arith.constant 1 : index
    %c11_293 = arith.constant 11 : index
    %c0_294 = arith.constant 0 : index
    %547 = vector.load %arg1[%c1_291, %c1_292, %c11_293, %c0_294] : memref<2x3x15x64xf32, #tpu.memory_space<vmem>>, vector<1x1x1x64xf32>
    %548 = vector.shape_cast %547 : vector<1x1x1x64xf32> to vector<64xf32>
    %549 = vector.shape_cast %548 : vector<64xf32> to vector<1x1x64xf32>
    %550 = vector.broadcast %549 : vector<1x1x64xf32> to vector<2x16x64xf32>
    %551 = arith.mulf %546, %550 : vector<2x16x64xf32>
    %552 = arith.addf %545, %551 : vector<2x16x64xf32>
    %553 = vector.extract_strided_slice %468 {offsets = [0, 0, 13], sizes = [2, 16, 64], strides = [1, 1, 1]} : vector<2x16x128xf32> to vector<2x16x64xf32>
    %c1_295 = arith.constant 1 : index
    %c1_296 = arith.constant 1 : index
    %c12_297 = arith.constant 12 : index
    %c0_298 = arith.constant 0 : index
    %554 = vector.load %arg1[%c1_295, %c1_296, %c12_297, %c0_298] : memref<2x3x15x64xf32, #tpu.memory_space<vmem>>, vector<1x1x1x64xf32>
    %555 = vector.shape_cast %554 : vector<1x1x1x64xf32> to vector<64xf32>
    %556 = vector.shape_cast %555 : vector<64xf32> to vector<1x1x64xf32>
    %557 = vector.broadcast %556 : vector<1x1x64xf32> to vector<2x16x64xf32>
    %558 = arith.mulf %553, %557 : vector<2x16x64xf32>
    %559 = arith.addf %552, %558 : vector<2x16x64xf32>
    %560 = vector.extract_strided_slice %468 {offsets = [0, 0, 14], sizes = [2, 16, 64], strides = [1, 1, 1]} : vector<2x16x128xf32> to vector<2x16x64xf32>
    %c1_299 = arith.constant 1 : index
    %c1_300 = arith.constant 1 : index
    %c13_301 = arith.constant 13 : index
    %c0_302 = arith.constant 0 : index
    %561 = vector.load %arg1[%c1_299, %c1_300, %c13_301, %c0_302] : memref<2x3x15x64xf32, #tpu.memory_space<vmem>>, vector<1x1x1x64xf32>
    %562 = vector.shape_cast %561 : vector<1x1x1x64xf32> to vector<64xf32>
    %563 = vector.shape_cast %562 : vector<64xf32> to vector<1x1x64xf32>
    %564 = vector.broadcast %563 : vector<1x1x64xf32> to vector<2x16x64xf32>
    %565 = arith.mulf %560, %564 : vector<2x16x64xf32>
    %566 = arith.addf %559, %565 : vector<2x16x64xf32>
    %567 = vector.extract_strided_slice %468 {offsets = [0, 0, 15], sizes = [2, 16, 64], strides = [1, 1, 1]} : vector<2x16x128xf32> to vector<2x16x64xf32>
    %c1_303 = arith.constant 1 : index
    %c1_304 = arith.constant 1 : index
    %c14_305 = arith.constant 14 : index
    %c0_306 = arith.constant 0 : index
    %568 = vector.load %arg1[%c1_303, %c1_304, %c14_305, %c0_306] : memref<2x3x15x64xf32, #tpu.memory_space<vmem>>, vector<1x1x1x64xf32>
    %569 = vector.shape_cast %568 : vector<1x1x1x64xf32> to vector<64xf32>
    %570 = vector.shape_cast %569 : vector<64xf32> to vector<1x1x64xf32>
    %571 = vector.broadcast %570 : vector<1x1x64xf32> to vector<2x16x64xf32>
    %572 = arith.mulf %567, %571 : vector<2x16x64xf32>
    %573 = arith.addf %566, %572 : vector<2x16x64xf32>
    %574 = vector.extract_strided_slice %360 {offsets = [0, 2, 0], sizes = [2, 16, 128], strides = [1, 1, 1]} : vector<2x18x128xf32> to vector<2x16x128xf32>
    %575 = vector.extract_strided_slice %574 {offsets = [0, 0, 1], sizes = [2, 16, 64], strides = [1, 1, 1]} : vector<2x16x128xf32> to vector<2x16x64xf32>
    %c1_307 = arith.constant 1 : index
    %c2_308 = arith.constant 2 : index
    %c0_309 = arith.constant 0 : index
    %c0_310 = arith.constant 0 : index
    %576 = vector.load %arg1[%c1_307, %c2_308, %c0_309, %c0_310] : memref<2x3x15x64xf32, #tpu.memory_space<vmem>>, vector<1x1x1x64xf32>
    %577 = vector.shape_cast %576 : vector<1x1x1x64xf32> to vector<64xf32>
    %578 = vector.shape_cast %577 : vector<64xf32> to vector<1x1x64xf32>
    %579 = vector.broadcast %578 : vector<1x1x64xf32> to vector<2x16x64xf32>
    %580 = arith.mulf %575, %579 : vector<2x16x64xf32>
    %581 = arith.addf %573, %580 : vector<2x16x64xf32>
    %582 = vector.extract_strided_slice %574 {offsets = [0, 0, 2], sizes = [2, 16, 64], strides = [1, 1, 1]} : vector<2x16x128xf32> to vector<2x16x64xf32>
    %c1_311 = arith.constant 1 : index
    %c2_312 = arith.constant 2 : index
    %c1_313 = arith.constant 1 : index
    %c0_314 = arith.constant 0 : index
    %583 = vector.load %arg1[%c1_311, %c2_312, %c1_313, %c0_314] : memref<2x3x15x64xf32, #tpu.memory_space<vmem>>, vector<1x1x1x64xf32>
    %584 = vector.shape_cast %583 : vector<1x1x1x64xf32> to vector<64xf32>
    %585 = vector.shape_cast %584 : vector<64xf32> to vector<1x1x64xf32>
    %586 = vector.broadcast %585 : vector<1x1x64xf32> to vector<2x16x64xf32>
    %587 = arith.mulf %582, %586 : vector<2x16x64xf32>
    %588 = arith.addf %581, %587 : vector<2x16x64xf32>
    %589 = vector.extract_strided_slice %574 {offsets = [0, 0, 3], sizes = [2, 16, 64], strides = [1, 1, 1]} : vector<2x16x128xf32> to vector<2x16x64xf32>
    %c1_315 = arith.constant 1 : index
    %c2_316 = arith.constant 2 : index
    %c2_317 = arith.constant 2 : index
    %c0_318 = arith.constant 0 : index
    %590 = vector.load %arg1[%c1_315, %c2_316, %c2_317, %c0_318] : memref<2x3x15x64xf32, #tpu.memory_space<vmem>>, vector<1x1x1x64xf32>
    %591 = vector.shape_cast %590 : vector<1x1x1x64xf32> to vector<64xf32>
    %592 = vector.shape_cast %591 : vector<64xf32> to vector<1x1x64xf32>
    %593 = vector.broadcast %592 : vector<1x1x64xf32> to vector<2x16x64xf32>
    %594 = arith.mulf %589, %593 : vector<2x16x64xf32>
    %595 = arith.addf %588, %594 : vector<2x16x64xf32>
    %596 = vector.extract_strided_slice %574 {offsets = [0, 0, 4], sizes = [2, 16, 64], strides = [1, 1, 1]} : vector<2x16x128xf32> to vector<2x16x64xf32>
    %c1_319 = arith.constant 1 : index
    %c2_320 = arith.constant 2 : index
    %c3_321 = arith.constant 3 : index
    %c0_322 = arith.constant 0 : index
    %597 = vector.load %arg1[%c1_319, %c2_320, %c3_321, %c0_322] : memref<2x3x15x64xf32, #tpu.memory_space<vmem>>, vector<1x1x1x64xf32>
    %598 = vector.shape_cast %597 : vector<1x1x1x64xf32> to vector<64xf32>
    %599 = vector.shape_cast %598 : vector<64xf32> to vector<1x1x64xf32>
    %600 = vector.broadcast %599 : vector<1x1x64xf32> to vector<2x16x64xf32>
    %601 = arith.mulf %596, %600 : vector<2x16x64xf32>
    %602 = arith.addf %595, %601 : vector<2x16x64xf32>
    %603 = vector.extract_strided_slice %574 {offsets = [0, 0, 5], sizes = [2, 16, 64], strides = [1, 1, 1]} : vector<2x16x128xf32> to vector<2x16x64xf32>
    %c1_323 = arith.constant 1 : index
    %c2_324 = arith.constant 2 : index
    %c4_325 = arith.constant 4 : index
    %c0_326 = arith.constant 0 : index
    %604 = vector.load %arg1[%c1_323, %c2_324, %c4_325, %c0_326] : memref<2x3x15x64xf32, #tpu.memory_space<vmem>>, vector<1x1x1x64xf32>
    %605 = vector.shape_cast %604 : vector<1x1x1x64xf32> to vector<64xf32>
    %606 = vector.shape_cast %605 : vector<64xf32> to vector<1x1x64xf32>
    %607 = vector.broadcast %606 : vector<1x1x64xf32> to vector<2x16x64xf32>
    %608 = arith.mulf %603, %607 : vector<2x16x64xf32>
    %609 = arith.addf %602, %608 : vector<2x16x64xf32>
    %610 = vector.extract_strided_slice %574 {offsets = [0, 0, 6], sizes = [2, 16, 64], strides = [1, 1, 1]} : vector<2x16x128xf32> to vector<2x16x64xf32>
    %c1_327 = arith.constant 1 : index
    %c2_328 = arith.constant 2 : index
    %c5_329 = arith.constant 5 : index
    %c0_330 = arith.constant 0 : index
    %611 = vector.load %arg1[%c1_327, %c2_328, %c5_329, %c0_330] : memref<2x3x15x64xf32, #tpu.memory_space<vmem>>, vector<1x1x1x64xf32>
    %612 = vector.shape_cast %611 : vector<1x1x1x64xf32> to vector<64xf32>
    %613 = vector.shape_cast %612 : vector<64xf32> to vector<1x1x64xf32>
    %614 = vector.broadcast %613 : vector<1x1x64xf32> to vector<2x16x64xf32>
    %615 = arith.mulf %610, %614 : vector<2x16x64xf32>
    %616 = arith.addf %609, %615 : vector<2x16x64xf32>
    %617 = vector.extract_strided_slice %574 {offsets = [0, 0, 7], sizes = [2, 16, 64], strides = [1, 1, 1]} : vector<2x16x128xf32> to vector<2x16x64xf32>
    %c1_331 = arith.constant 1 : index
    %c2_332 = arith.constant 2 : index
    %c6_333 = arith.constant 6 : index
    %c0_334 = arith.constant 0 : index
    %618 = vector.load %arg1[%c1_331, %c2_332, %c6_333, %c0_334] : memref<2x3x15x64xf32, #tpu.memory_space<vmem>>, vector<1x1x1x64xf32>
    %619 = vector.shape_cast %618 : vector<1x1x1x64xf32> to vector<64xf32>
    %620 = vector.shape_cast %619 : vector<64xf32> to vector<1x1x64xf32>
    %621 = vector.broadcast %620 : vector<1x1x64xf32> to vector<2x16x64xf32>
    %622 = arith.mulf %617, %621 : vector<2x16x64xf32>
    %623 = arith.addf %616, %622 : vector<2x16x64xf32>
    %624 = vector.extract_strided_slice %574 {offsets = [0, 0, 8], sizes = [2, 16, 64], strides = [1, 1, 1]} : vector<2x16x128xf32> to vector<2x16x64xf32>
    %c1_335 = arith.constant 1 : index
    %c2_336 = arith.constant 2 : index
    %c7_337 = arith.constant 7 : index
    %c0_338 = arith.constant 0 : index
    %625 = vector.load %arg1[%c1_335, %c2_336, %c7_337, %c0_338] : memref<2x3x15x64xf32, #tpu.memory_space<vmem>>, vector<1x1x1x64xf32>
    %626 = vector.shape_cast %625 : vector<1x1x1x64xf32> to vector<64xf32>
    %627 = vector.shape_cast %626 : vector<64xf32> to vector<1x1x64xf32>
    %628 = vector.broadcast %627 : vector<1x1x64xf32> to vector<2x16x64xf32>
    %629 = arith.mulf %624, %628 : vector<2x16x64xf32>
    %630 = arith.addf %623, %629 : vector<2x16x64xf32>
    %631 = vector.extract_strided_slice %574 {offsets = [0, 0, 9], sizes = [2, 16, 64], strides = [1, 1, 1]} : vector<2x16x128xf32> to vector<2x16x64xf32>
    %c1_339 = arith.constant 1 : index
    %c2_340 = arith.constant 2 : index
    %c8_341 = arith.constant 8 : index
    %c0_342 = arith.constant 0 : index
    %632 = vector.load %arg1[%c1_339, %c2_340, %c8_341, %c0_342] : memref<2x3x15x64xf32, #tpu.memory_space<vmem>>, vector<1x1x1x64xf32>
    %633 = vector.shape_cast %632 : vector<1x1x1x64xf32> to vector<64xf32>
    %634 = vector.shape_cast %633 : vector<64xf32> to vector<1x1x64xf32>
    %635 = vector.broadcast %634 : vector<1x1x64xf32> to vector<2x16x64xf32>
    %636 = arith.mulf %631, %635 : vector<2x16x64xf32>
    %637 = arith.addf %630, %636 : vector<2x16x64xf32>
    %638 = vector.extract_strided_slice %574 {offsets = [0, 0, 10], sizes = [2, 16, 64], strides = [1, 1, 1]} : vector<2x16x128xf32> to vector<2x16x64xf32>
    %c1_343 = arith.constant 1 : index
    %c2_344 = arith.constant 2 : index
    %c9_345 = arith.constant 9 : index
    %c0_346 = arith.constant 0 : index
    %639 = vector.load %arg1[%c1_343, %c2_344, %c9_345, %c0_346] : memref<2x3x15x64xf32, #tpu.memory_space<vmem>>, vector<1x1x1x64xf32>
    %640 = vector.shape_cast %639 : vector<1x1x1x64xf32> to vector<64xf32>
    %641 = vector.shape_cast %640 : vector<64xf32> to vector<1x1x64xf32>
    %642 = vector.broadcast %641 : vector<1x1x64xf32> to vector<2x16x64xf32>
    %643 = arith.mulf %638, %642 : vector<2x16x64xf32>
    %644 = arith.addf %637, %643 : vector<2x16x64xf32>
    %645 = vector.extract_strided_slice %574 {offsets = [0, 0, 11], sizes = [2, 16, 64], strides = [1, 1, 1]} : vector<2x16x128xf32> to vector<2x16x64xf32>
    %c1_347 = arith.constant 1 : index
    %c2_348 = arith.constant 2 : index
    %c10_349 = arith.constant 10 : index
    %c0_350 = arith.constant 0 : index
    %646 = vector.load %arg1[%c1_347, %c2_348, %c10_349, %c0_350] : memref<2x3x15x64xf32, #tpu.memory_space<vmem>>, vector<1x1x1x64xf32>
    %647 = vector.shape_cast %646 : vector<1x1x1x64xf32> to vector<64xf32>
    %648 = vector.shape_cast %647 : vector<64xf32> to vector<1x1x64xf32>
    %649 = vector.broadcast %648 : vector<1x1x64xf32> to vector<2x16x64xf32>
    %650 = arith.mulf %645, %649 : vector<2x16x64xf32>
    %651 = arith.addf %644, %650 : vector<2x16x64xf32>
    %652 = vector.extract_strided_slice %574 {offsets = [0, 0, 12], sizes = [2, 16, 64], strides = [1, 1, 1]} : vector<2x16x128xf32> to vector<2x16x64xf32>
    %c1_351 = arith.constant 1 : index
    %c2_352 = arith.constant 2 : index
    %c11_353 = arith.constant 11 : index
    %c0_354 = arith.constant 0 : index
    %653 = vector.load %arg1[%c1_351, %c2_352, %c11_353, %c0_354] : memref<2x3x15x64xf32, #tpu.memory_space<vmem>>, vector<1x1x1x64xf32>
    %654 = vector.shape_cast %653 : vector<1x1x1x64xf32> to vector<64xf32>
    %655 = vector.shape_cast %654 : vector<64xf32> to vector<1x1x64xf32>
    %656 = vector.broadcast %655 : vector<1x1x64xf32> to vector<2x16x64xf32>
    %657 = arith.mulf %652, %656 : vector<2x16x64xf32>
    %658 = arith.addf %651, %657 : vector<2x16x64xf32>
    %659 = vector.extract_strided_slice %574 {offsets = [0, 0, 13], sizes = [2, 16, 64], strides = [1, 1, 1]} : vector<2x16x128xf32> to vector<2x16x64xf32>
    %c1_355 = arith.constant 1 : index
    %c2_356 = arith.constant 2 : index
    %c12_357 = arith.constant 12 : index
    %c0_358 = arith.constant 0 : index
    %660 = vector.load %arg1[%c1_355, %c2_356, %c12_357, %c0_358] : memref<2x3x15x64xf32, #tpu.memory_space<vmem>>, vector<1x1x1x64xf32>
    %661 = vector.shape_cast %660 : vector<1x1x1x64xf32> to vector<64xf32>
    %662 = vector.shape_cast %661 : vector<64xf32> to vector<1x1x64xf32>
    %663 = vector.broadcast %662 : vector<1x1x64xf32> to vector<2x16x64xf32>
    %664 = arith.mulf %659, %663 : vector<2x16x64xf32>
    %665 = arith.addf %658, %664 : vector<2x16x64xf32>
    %666 = vector.extract_strided_slice %574 {offsets = [0, 0, 14], sizes = [2, 16, 64], strides = [1, 1, 1]} : vector<2x16x128xf32> to vector<2x16x64xf32>
    %c1_359 = arith.constant 1 : index
    %c2_360 = arith.constant 2 : index
    %c13_361 = arith.constant 13 : index
    %c0_362 = arith.constant 0 : index
    %667 = vector.load %arg1[%c1_359, %c2_360, %c13_361, %c0_362] : memref<2x3x15x64xf32, #tpu.memory_space<vmem>>, vector<1x1x1x64xf32>
    %668 = vector.shape_cast %667 : vector<1x1x1x64xf32> to vector<64xf32>
    %669 = vector.shape_cast %668 : vector<64xf32> to vector<1x1x64xf32>
    %670 = vector.broadcast %669 : vector<1x1x64xf32> to vector<2x16x64xf32>
    %671 = arith.mulf %666, %670 : vector<2x16x64xf32>
    %672 = arith.addf %665, %671 : vector<2x16x64xf32>
    %673 = vector.extract_strided_slice %574 {offsets = [0, 0, 15], sizes = [2, 16, 64], strides = [1, 1, 1]} : vector<2x16x128xf32> to vector<2x16x64xf32>
    %c1_363 = arith.constant 1 : index
    %c2_364 = arith.constant 2 : index
    %c14_365 = arith.constant 14 : index
    %c0_366 = arith.constant 0 : index
    %674 = vector.load %arg1[%c1_363, %c2_364, %c14_365, %c0_366] : memref<2x3x15x64xf32, #tpu.memory_space<vmem>>, vector<1x1x1x64xf32>
    %675 = vector.shape_cast %674 : vector<1x1x1x64xf32> to vector<64xf32>
    %676 = vector.shape_cast %675 : vector<64xf32> to vector<1x1x64xf32>
    %677 = vector.broadcast %676 : vector<1x1x64xf32> to vector<2x16x64xf32>
    %678 = arith.mulf %673, %677 : vector<2x16x64xf32>
    %679 = arith.addf %672, %678 : vector<2x16x64xf32>
    %680 = vector.extract_strided_slice %1 {offsets = [2, 0], sizes = [1, 64], strides = [1, 1]} : vector<4x64xf32> to vector<1x64xf32>
    %681 = vector.extract_strided_slice %1 {offsets = [3, 0], sizes = [1, 64], strides = [1, 1]} : vector<4x64xf32> to vector<1x64xf32>
    %cst_367 = arith.constant dense<0.000000e+00> : vector<64xf32>
    %682 = vector.multi_reduction <add>, %679, %cst_367 [0, 1] : vector<2x16x64xf32> to vector<64xf32>
    %683 = vector.shape_cast %682 : vector<64xf32> to vector<1x64xf32>
    %cst_368 = arith.constant dense<0.000000e+00> : vector<1x64xf32>
    %684 = tpu.matmul %683, %2, %cst_368 {dimension_numbers = #tpu.dot_dimension_numbers<[1], [0], [0], [1], [0, 0, 1, 1], [], []>} : vector<1x64xf32>, vector<64x64xf32>, vector<1x64xf32> -> vector<1x64xf32>
    %cst_369 = arith.constant 0.001953125 : f32
    %685 = vector.broadcast %cst_369 : f32 to vector<1x64xf32>
    %686 = arith.mulf %684, %685 : vector<1x64xf32>
    %687 = arith.mulf %679, %679 : vector<2x16x64xf32>
    %cst_370 = arith.constant dense<0.000000e+00> : vector<64xf32>
    %688 = vector.multi_reduction <add>, %687, %cst_370 [0, 1] : vector<2x16x64xf32> to vector<64xf32>
    %689 = vector.shape_cast %688 : vector<64xf32> to vector<1x64xf32>
    %cst_371 = arith.constant dense<0.000000e+00> : vector<1x64xf32>
    %690 = tpu.matmul %689, %2, %cst_371 {dimension_numbers = #tpu.dot_dimension_numbers<[1], [0], [0], [1], [0, 0, 1, 1], [], []>} : vector<1x64xf32>, vector<64x64xf32>, vector<1x64xf32> -> vector<1x64xf32>
    %cst_372 = arith.constant 0.001953125 : f32
    %691 = vector.broadcast %cst_372 : f32 to vector<1x64xf32>
    %692 = arith.mulf %690, %691 : vector<1x64xf32>
    %693 = arith.mulf %686, %686 : vector<1x64xf32>
    %694 = arith.subf %692, %693 : vector<1x64xf32>
    %cst_373 = arith.constant 9.99999974E-6 : f32
    %695 = vector.broadcast %cst_373 : f32 to vector<1x64xf32>
    %696 = arith.addf %694, %695 : vector<1x64xf32>
    %697 = math.rsqrt %696 : vector<1x64xf32>
    %698 = arith.mulf %680, %697 : vector<1x64xf32>
    %699 = arith.mulf %686, %698 : vector<1x64xf32>
    %700 = arith.subf %681, %699 : vector<1x64xf32>
    %701 = vector.shape_cast %698 : vector<1x64xf32> to vector<1x1x64xf32>
    %702 = vector.broadcast %701 : vector<1x1x64xf32> to vector<2x16x64xf32>
    %703 = arith.mulf %679, %702 : vector<2x16x64xf32>
    %704 = vector.shape_cast %700 : vector<1x64xf32> to vector<1x1x64xf32>
    %705 = vector.broadcast %704 : vector<1x1x64xf32> to vector<2x16x64xf32>
    %706 = arith.addf %703, %705 : vector<2x16x64xf32>
    %707 = arith.addf %0, %706 : vector<2x16x64xf32>
    %cst_374 = arith.constant 0.000000e+00 : f32
    %708 = vector.broadcast %cst_374 : f32 to vector<2x16x64xf32>
    %709 = arith.maximumf %707, %708 : vector<2x16x64xf32>
    %c0_375 = arith.constant 0 : index
    %c0_376 = arith.constant 0 : index
    %c0_377 = arith.constant 0 : index
    %710 = vector.load %arg4[%c0_375, %c0_376, %c0_377] : memref<2x16x64xf32, #tpu.memory_space<vmem>>, vector<2x16x64xf32>
    tpu.vector_store %arg4[%c0_375, %c0_376, %c0_377], %709 {strides = array<i32>} : memref<2x16x64xf32, #tpu.memory_space<vmem>>, vector<2x16x64xf32>,
    return
  }
}

</mosaic_0001>

<bundles_post_ra>
// kernel: tpu_custom_call.1
= control target key start
LH: loop header
LB: loop body
LE: loop exit
PB: predicated region body
PF: predicated region fallthrough
CT: control target
= control target key end

     0   :  { %vm35_vm0 = vcmask 1040384   ;;  %s4787_s19 = smov 2   ;;  %s4788_s26 = smov 8   ;;  %s7993_s0 = inlined_call_operand.vmem [shape: f32[2,16,64], index: 0, kind: input, shape index: {}]   ;;  %s7994_s1 = inlined_call_operand.vmem [shape: f32[2,3,15,64], index: 1, kind: input, shape index: {}]   ;;  %s7995_s2 = inlined_call_operand.vmem [shape: f32[4,64], index: 2, kind: input, shape index: {}]   ;;  %s7996_s3 = inlined_call_operand.vmem [shape: f32[64,64], index: 3, kind: input, shape index: {}]   ;;  %s7997_s4 = inlined_call_operand.hbm [shape: f32[2,16,64], index: 4, kind: output, shape index: {}]  }
   0x1   :  { %v4392_v0 = vld [vmem:[%s7994_s1 + $0x1] ss:$0 sm:$0xff]  ;;  %v20_v3 = vld [vmem:[%s7993_s0 + $0x10] sm:$0xff]  ;;  %v19_v4 = vld [vmem:[%s7993_s0 + $0x8] sm:$0xff]  ;;  %s4789_s29 = smov 3   ;;  %s4790_s6 = smov 5  }
   0x2   :  { %v18_v1 = vld [vmem:[%s7993_s0] sm:$0xff]  ;;  %109 = vrot.lane.b32.xlu1 %v4392_v0, %s4787_s19  ;;  %v39_v5 = vrot.slane %v20_v3, 7  ;;  %v37_v6 = vrot.slane %v19_v4, 7  ;;  %v21_v7 = vld [vmem:[%s7993_s0 + $0x18] sm:$0xff]  ;;  %s4791_s11 = smov 4   ;;  %s8002_s12 = smov 7  }
   0x3   :  { %v36_v2 = vrot.slane %v18_v1, 7  ;;  %v40_v11 = vrot.slane %v21_v7, 7  ;;  %v4393_v12 = vld [vmem:[%s7994_s1 + $0x2] ss:$0 sm:$0xff]  ;;  %v4395_v14 = vld [vmem:[%s7994_s1 + $0x4] ss:$0 sm:$0xff] }
   0x4   :  { %v47_v9 = vsel %vm35_vm0, 0.0, %v39_v5  ;;  %v4394_v15 = vld [vmem:[%s7994_s1 + $0x3] ss:$0 sm:$0xff]  ;;  %v4397_v16 = vld [vmem:[%s7994_s1 + $0x6] ss:$0 sm:$0xff] }
   0x5   :  { %v46_v8 = vsel %vm35_vm0, 0.0, %v36_v2  ;;  %v38_v10 = vsel %vm35_vm0, %v36_v2, %v37_v6  ;;  %v41_v13 = vsel %vm35_vm0, %v39_v5, %v40_v11  ;;  %v4396_v17 = vld [vmem:[%s7994_s1 + $0x5] ss:$0 sm:$0xff] }
   0x6   :  { %54 = vrot.lane.b32.xlu0 %v46_v8, %s4788_s26  ;;  %60 = vrot.lane.b32.xlu1 %v47_v9, %s4788_s26 }
   0xa   :  { %56 = vrot.lane.b32.xlu0 %v38_v10, %s4788_s26  ;;  %142 = vrot.lane.b32.xlu1 %v4393_v12, %s4789_s29 }
   0xe   :  { %62 = vrot.lane.b32.xlu0 %v41_v13, %s4788_s26  ;;  %208 = vrot.lane.b32.xlu1 %v4395_v14, %s4790_s6 }
  0x12   :  { %175 = vrot.lane.b32.xlu0 %v4394_v15, %s4791_s11  ;;  %274 = vrot.lane.b32.xlu1 %v4397_v16, %s8002_s12 }
  0x13   :  { %9 = vsyncpa [#allocation3], 0  ;;  %v4399_v18 = vld [vmem:[%s7994_s1 + $0x8] ss:$0 sm:$0xff]  ;;  %s4793_s17 = smov 6   ;;  %s7998_s18 = smov 9  }
  0x14   :  { %v4398_v19 = vld [vmem:[%s7994_s1 + $0x7] ss:$0 sm:$0xff]  ;;  %v4401_v20 = vld [vmem:[%s7994_s1 + $0xa] ss:$0 sm:$0xff]  ;;  %s8000_s24 = smov 11   ;;  %s4796_s5 = smov 10  }
  0x15   :  { %v4400_v21 = vld [vmem:[%s7994_s1 + $0x9] ss:$0 sm:$0xff]  ;;  %v4403_v22 = vld [vmem:[%s7994_s1 + $0xc] ss:$0 sm:$0xff]  ;;  %s8004_s7 = smov 13   ;;  %v48_v24 = vsel %vm35_vm0, %v37_v6, 0.0 }
  0x16   :  { %241 = vrot.lane.b32.xlu0 %v4396_v17, %s4793_s17  ;;  %340 = vrot.lane.b32.xlu1 %v4399_v18, %s7998_s18  ;;  %v4402_v23 = vld [vmem:[%s7994_s1 + $0xb] ss:$0 sm:$0xff]  ;;  %s8006_s10 = smov 12   ;;  %v4404_v25 = vld [vmem:[%s7994_s1 + $0xd] ss:$0 sm:$0xff]  ;;  %s4799_s20 = smov 14  }
  0x17   :  { %v4409_v26 = vld [vmem:[%s7994_s1 + $0x11] ss:$0 sm:$0xff]  ;;  %v4405_v27 = vld [vmem:[%s7994_s1 + $0xe] ss:$0 sm:$0xff]  ;;  %v4411_v28 = vld [vmem:[%s7994_s1 + $0x12] ss:$0 sm:$0xff] }
  0x18   :  { %s4800_s27 = smov 15   ;;  %v49_v29 = vsel %vm35_vm0, %v40_v11, 0.0  ;;  %v4415_v30 = vld [vmem:[%s7994_s1 + $0x14] ss:$0 sm:$0xff]  ;;  %v4413_v31 = vld [vmem:[%s7994_s1 + $0x13] ss:$0 sm:$0xff] }
  0x19   :  { %v4419_v32 = vld [vmem:[%s7994_s1 + $0x16] ss:$0 sm:$0xff]  ;;  %v4417_v33 = vld [vmem:[%s7994_s1 + $0x15] ss:$0 sm:$0xff]  ;;  %v4423_v34 = vld [vmem:[%s7994_s1 + $0x18] ss:$0 sm:$0xff] }
  0x1a   :  { %307 = vrot.lane.b32.xlu0 %v4398_v19, %s4788_s26  ;;  %406 = vrot.lane.b32.xlu1 %v4401_v20, %s8000_s24  ;;  %v4421_v35 = vld [vmem:[%s7994_s1 + $0x17] ss:$0 sm:$0xff]  ;;  %v4427_v36 = vld [vmem:[%s7994_s1 + $0x1a] ss:$0 sm:$0xff]  ;;  %s4801_s8 = smov 1   ;;  %vm72_vm1 = vcmask 64512  }
  0x1b   :  { %v4425_v37 = vld [vmem:[%s7994_s1 + $0x19] ss:$0 sm:$0xff]  ;;  %v4431_v38 = vld [vmem:[%s7994_s1 + $0x1c] ss:$0 sm:$0xff]  ;;  %v4429_v39 = vld [vmem:[%s7994_s1 + $0x1b] ss:$0 sm:$0xff] }
  0x1c   :  { %v4435_v40 = vld [vmem:[%s7994_s1 + $0x1e] ss:$0 sm:$0xff]  ;;  %v4433_v41 = vld [vmem:[%s7994_s1 + $0x1d] ss:$0 sm:$0xff]  ;;  %v4391_v42 = vld [vmem:[%s7994_s1] ss:$0 sm:$0xff] }
  0x1d   :  { %v4439_v43 = vld [vmem:[%s7994_s1 + $0x21] ss:$0 sm:$0xff]  ;;  %v4443_v44 = vld [vmem:[%s7994_s1 + $0x23] ss:$0 sm:$0xff]  ;;  %v4441_v45 = vld [vmem:[%s7994_s1 + $0x22] ss:$0 sm:$0xff] }
  0x1e   :  { %373 = vrot.lane.b32.xlu0 %v4400_v21, %s4796_s5  ;;  %472 = vrot.lane.b32.xlu1 %v4403_v22, %s8004_s7  ;;  %v4445_v46 = vld [vmem:[%s7994_s1 + $0x24] ss:$0 sm:$0xff]  ;;  %v4447_v47 = vld [vmem:[%s7994_s1 + $0x25] ss:$0 sm:$0xff]  ;;  %vm79_vm2 = vcmask 588800   ;;  %s4802_s15 = smov 127  }
  0x1f   :  { %v4449_v48 = vld [vmem:[%s7994_s1 + $0x26] ss:$0 sm:$0xff]  ;;  %v4451_v49 = vld [vmem:[%s7994_s1 + $0x27] ss:$0 sm:$0xff]  ;;  %s4803_s16 = smov 126   ;;  %s4804_s21 = smov 125  }
  0x20   :  { %s4805_s22 = smov 124   ;;  %s8040_s23 = smov 123   ;;  %vm587_vm3 = vcmask 1046528   ;;  %vm1286_vm4 = vcmask 1045504   ;;  %vm4817_vm5 = vmmov 0   ;;  %vm1963_vm6 = vcmask 531464  }
  0x21   :  { %s8038_s25 = smov 122   ;;  %s8036_s9 = smov 121   ;;  %vm1980_vm7 = vcmask 523264  }
  0x22   :  { %439 = vrot.lane.b32.xlu0 %v4402_v23, %s8006_s10  ;;  %58 = vrot.lane.b32.xlu1 %v48_v24, %s4788_s26  ;;  %s8034_s28 = smov 120   ;;  %s8030_s30 = smov 118  }
  0x23   :  { %s8011_s14 = smov 116   ;;  %s8013_s13 = smov 114  }
  0x26   :  { %505 = vrot.lane.b32.xlu0 %v4404_v25, %s4799_s20  ;;  %612 = vrot.lane.b32.xlu1 %v4409_v26, %s4787_s19 }
  0x2a   :  { %538 = vrot.lane.b32.xlu0 %v4405_v27, %s4800_s27  ;;  %659 = vrot.lane.b32.xlu1 %v4411_v28, %s4789_s29 }
  0x2e   :  { %64 = vrot.lane.b32.xlu0 %v49_v29, %s4788_s26  ;;  %753 = vrot.lane.b32.xlu1 %v4415_v30, %s4790_s6  ;;  %v4453_v29 = vld [vmem:[%s7994_s1 + $0x28] ss:$0 sm:$0xff] }
  0x32   :  { %706 = vrot.lane.b32.xlu0 %v4413_v31, %s4791_s11  ;;  %847 = vrot.lane.b32.xlu1 %v4419_v32, %s8002_s12 }
  0x36   :  { %800 = vrot.lane.b32.xlu0 %v4417_v33, %s4793_s17  ;;  %941 = vrot.lane.b32.xlu1 %v4423_v34, %s7998_s18 }
  0x3a   :  { %894 = vrot.lane.b32.xlu0 %v4421_v35, %s4788_s26  ;;  %1035 = vrot.lane.b32.xlu1 %v4427_v36, %s8000_s24 }
  0x3e   :  { %988 = vrot.lane.b32.xlu0 %v4425_v37, %s4796_s5  ;;  %1129 = vrot.lane.b32.xlu1 %v4431_v38, %s8004_s7 }
  0x42   :  { %1082 = vrot.lane.b32.xlu0 %v4429_v39, %s8006_s10  ;;  %1223 = vrot.lane.b32.xlu1 %v4435_v40, %s4800_s27 }
  0x46   :  { %1176 = vrot.lane.b32.xlu0 %v4433_v41, %s4799_s20  ;;  %92 = vrot.lane.b32.xlu1 %v4391_v42, %s4801_s8  ;;  %v4455_v42 = vld [vmem:[%s7994_s1 + $0x29] ss:$0 sm:$0xff] }
  0x4a   :  { %1311 = vrot.lane.b32.xlu0 %v4439_v43, %s4787_s19  ;;  %1405 = vrot.lane.b32.xlu1 %v4443_v44, %s4791_s11 }
  0x4e   :  { %1358 = vrot.lane.b32.xlu0 %v4441_v45, %s4789_s29  ;;  %1452 = vrot.lane.b32.xlu1 %v4445_v46, %s4790_s6  ;;  %v4457_v46 = vld [vmem:[%s7994_s1 + $0x2a] ss:$0 sm:$0xff] }
  0x52   :  { %1499 = vrot.lane.b32.xlu0 %v4447_v47, %s4793_s17  ;;  %1546 = vrot.lane.b32.xlu1 %v4449_v48, %s8002_s12  ;;  %s8015_s12 = smov 117  }
  0x56   :  { %1593 = vrot.lane.b32.xlu0 %v4451_v49, %s4788_s26 }
  0x74   :  { %v110_v50 = vpop.permute.xlu1 %109 }
  0x78   :  { %v55_v51 = vpop.permute.xlu0 %54  ;;  %v61_v53 = vpop.permute.xlu1 %60 }
  0x79   :  { %v73_v52 = vsel %vm72_vm1, 0.0, %v55_v51  ;;  %v76_v57 = vsel %vm72_vm1, 0.0, %v61_v53 }
  0x7a   :  { %v5016_v54 = vsel %vm79_vm2, %v73_v52, 0.0  ;;  %v5028_v63 = vsel %vm79_vm2, %v76_v57, 0.0 }
  0x7b   :  { %v112_v55 = vmul.f32 %v110_v50, %v5016_v54  ;;  %v114_v2 = vmul.f32 %v110_v50, %v5028_v63 }
  0x7c   :  { %v57_v56 = vpop.permute.xlu0 %56  ;;  %v143_v59 = vpop.permute.xlu1 %142 }
  0x7d   :  { %v74_v58 = vsel %vm72_vm1, 0.0, %v57_v56  ;;  %120 = vrot.lane.b32.xlu1 %v112_v55, %s4802_s15  ;;  %v145_v61 = vmul.f32 %v143_v59, %v5016_v54  ;;  %v147_v1 = vmul.f32 %v143_v59, %v5028_v63 }
  0x7e   :  { %v5023_v60 = vsel %vm79_vm2, %v74_v58, 0.0 }
  0x7f   :  { %v113_v62 = vmul.f32 %v110_v50, %v5023_v60  ;;  %v146_v6 = vmul.f32 %v143_v59, %v5023_v60 }
  0x80   :  { %v63_v0 = vpop.permute.xlu0 %62  ;;  %v209_v5 = vpop.permute.xlu1 %208 }
  0x81   :  { %153 = vrot.lane.b32.xlu1 %v145_v61, %s4803_s16  ;;  %122 = vrot.lane.b32.xlu0 %v113_v62, %s4802_s15  ;;  %v77_v4 = vsel %vm72_vm1, 0.0, %v63_v0  ;;  %v211_v13 = vmul.f32 %v209_v5, %v5016_v54  ;;  %v213_v16 = vmul.f32 %v209_v5, %v5028_v63  ;;  %v212_v20 = vmul.f32 %v209_v5, %v5023_v60  ;;  %v4459_v61 = vld [vmem:[%s7994_s1 + $0x2b] ss:$0 sm:$0xff] }
  0x82   :  { %v5040_v8 = vsel %vm79_vm2, %v77_v4, 0.0 }
  0x83   :  { %v115_v10 = vmul.f32 %v110_v50, %v5040_v8  ;;  %v148_v11 = vmul.f32 %v143_v59, %v5040_v8  ;;  %v214_v24 = vmul.f32 %v209_v5, %v5040_v8 }
  0x84   :  { %v176_v3 = vpop.permute.xlu0 %175  ;;  %v275_v9 = vpop.permute.xlu1 %274 }
  0x85   :  { %157 = vrot.lane.b32.xlu1 %v147_v1, %s4803_s16  ;;  %124 = vrot.lane.b32.xlu0 %v114_v2, %s4802_s15  ;;  %v179_v7 = vmul.f32 %v176_v3, %v5023_v60  ;;  %v178_v14 = vmul.f32 %v176_v3, %v5016_v54  ;;  %v180_v17 = vmul.f32 %v176_v3, %v5028_v63  ;;  %v4461_v1 = vld [vmem:[%s7994_s1 + $0x2c] ss:$0 sm:$0xff] }
  0x86   :  { %v181_v23 = vmul.f32 %v176_v3, %v5040_v8  ;;  %v277_v26 = vmul.f32 %v275_v9, %v5016_v54  ;;  %v279_v33 = vmul.f32 %v275_v9, %v5028_v63  ;;  %v278_v34 = vmul.f32 %v275_v9, %v5023_v60 }
  0x87   :  { %v280_v40 = vmul.f32 %v275_v9, %v5040_v8 }
  0x88   :  { %v242_v12 = vpop.permute.xlu0 %241  ;;  %v5050_v15 = vpop.permute.xlu1 %340 }
  0x89   :  { %155 = vrot.lane.b32.xlu0 %v146_v6, %s4803_s16  ;;  %188 = vrot.lane.b32.xlu1 %v179_v7, %s4804_s21  ;;  %v245_v21 = vmul.f32 %v242_v12, %v5023_v60  ;;  %v244_v27 = vmul.f32 %v242_v12, %v5016_v54  ;;  %v246_v31 = vmul.f32 %v242_v12, %v5028_v63 }
  0x8a   :  { %v247_v36 = vmul.f32 %v242_v12, %v5040_v8  ;;  %v343_v44 = vmul.f32 %v5050_v15, %v5016_v54  ;;  %v345_v50 = vmul.f32 %v5050_v15, %v5028_v63  ;;  %v344_v51 = vmul.f32 %v5050_v15, %v5023_v60 }
  0x8b   :  { %v346_v57 = vmul.f32 %v5050_v15, %v5040_v8 }
  0x8c   :  { %v308_v18 = vpop.permute.xlu0 %307  ;;  %v5058_v19 = vpop.permute.xlu1 %406 }
  0x8d   :  { %126 = vrot.lane.b32.xlu0 %v115_v10, %s4802_s15  ;;  %159 = vrot.lane.b32.xlu1 %v148_v11, %s4803_s16  ;;  %v311_v37 = vmul.f32 %v308_v18, %v5023_v60  ;;  %v310_v41 = vmul.f32 %v308_v18, %v5016_v54  ;;  %v312_v47 = vmul.f32 %v308_v18, %v5028_v63 }
  0x8e   :  { %v313_v53 = vmul.f32 %v308_v18, %v5040_v8  ;;  %v409_v0 = vmul.f32 %v5058_v19, %v5016_v54  ;;  %v411_v5 = vmul.f32 %v5058_v19, %v5028_v63  ;;  %v410_v6 = vmul.f32 %v5058_v19, %v5023_v60 }
  0x90   :  { %v5064_v22 = vpop.permute.xlu0 %373  ;;  %v5068_v25 = vpop.permute.xlu1 %472 }
  0x91   :  { %219 = vrot.lane.b32.xlu1 %v211_v13, %s4805_s22  ;;  %186 = vrot.lane.b32.xlu0 %v178_v14, %s4804_s21  ;;  %v377_v55 = vmul.f32 %v5064_v22, %v5023_v60  ;;  %v376_v58 = vmul.f32 %v5064_v22, %v5016_v54  ;;  %v378_v3 = vmul.f32 %v5064_v22, %v5028_v63 }
  0x92   :  { %v379_v10 = vmul.f32 %v5064_v22, %v5040_v8  ;;  %v412_v13 = vmul.f32 %v5058_v19, %v5040_v8  ;;  %v4407_v19 = vld [vmem:[%s7994_s1 + $0x10] ss:$0 sm:$0xff] }
  0x94   :  { %v5074_v28 = vpop.permute.xlu0 %439  ;;  %v5081_v30 = vpop.permute.xlu1 %58 }
  0x95   :  { %223 = vrot.lane.b32.xlu1 %v213_v16, %s4805_s22  ;;  %190 = vrot.lane.b32.xlu0 %v180_v17, %s4804_s21  ;;  %v443_v11 = vmul.f32 %v5074_v28, %v5023_v60  ;;  %v442_v14 = vmul.f32 %v5074_v28, %v5016_v54  ;;  %v4463_v16 = vld [vmem:[%s7994_s1 + $0x2d] ss:$0 sm:$0xff]  ;;  %v475_v17 = vmul.f32 %v5068_v25, %v5016_v54 }
  0x98   :  { %v5086_v32 = vpop.permute.xlu0 %505  ;;  %v5090_v35 = vpop.permute.xlu1 %612 }
  0x99   :  { %221 = vrot.lane.b32.xlu0 %v212_v20, %s4805_s22  ;;  %254 = vrot.lane.b32.xlu1 %v245_v21, %s8040_s23  ;;  %v444_v21 = vmul.f32 %v5074_v28, %v5028_v63 }
  0x9c   :  { %v5096_v38 = vpop.permute.xlu0 %538  ;;  %v5100_v39 = vpop.permute.xlu1 %659 }
  0x9d   :  { %192 = vrot.lane.b32.xlu0 %v181_v23, %s4804_s21  ;;  %225 = vrot.lane.b32.xlu1 %v214_v24, %s4805_s22  ;;  %v445_v23 = vmul.f32 %v5074_v28, %v5040_v8  ;;  %v476_v24 = vmul.f32 %v5068_v25, %v5023_v60 }
  0xa0   :  { %v5109_v43 = vpop.permute.xlu0 %64  ;;  %v5113_v45 = vpop.permute.xlu1 %753 }
  0xa1   :  { %285 = vrot.lane.b32.xlu1 %v277_v26, %s8038_s25  ;;  %252 = vrot.lane.b32.xlu0 %v244_v27, %s8040_s23  ;;  %v4465_v27 = vld [vmem:[%s7994_s1 + $0x2e] ss:$0 sm:$0xff] }
  0xa4   :  { %v5121_v48 = vpop.permute.xlu0 %706  ;;  %v5125_v49 = vpop.permute.xlu1 %847 }
  0xa5   :  { %1640 = vrot.lane.b32.xlu1 %v4453_v29, %s7998_s18  ;;  %256 = vrot.lane.b32.xlu0 %v246_v31, %s8040_s23  ;;  %s8032_s18 = smov 119   ;;  %v508_v29 = vmul.f32 %v5086_v32, %v5016_v54 }
  0xa8   :  { %v5133_v52 = vpop.permute.xlu0 %800  ;;  %v5138_v56 = vpop.permute.xlu1 %941 }
  0xa9   :  { %289 = vrot.lane.b32.xlu1 %v279_v33, %s8038_s25  ;;  %287 = vrot.lane.b32.xlu0 %v278_v34, %s8038_s25  ;;  %v477_v33 = vmul.f32 %v5068_v25, %v5028_v63  ;;  %v478_v34 = vmul.f32 %v5068_v25, %v5040_v8 }
  0xac   :  { %v5146_v59 = vpop.permute.xlu0 %894  ;;  %v5153_v62 = vpop.permute.xlu1 %1035 }
  0xad   :  { %258 = vrot.lane.b32.xlu0 %v247_v36, %s8040_s23  ;;  %320 = vrot.lane.b32.xlu1 %v311_v37, %s8036_s9  ;;  %v75_v36 = vsel %vm72_vm1, 0.0, %v5081_v30 }
  0xb0   :  { %v5162_v2 = vpop.permute.xlu0 %988  ;;  %v5166_v4 = vpop.permute.xlu1 %1129 }
  0xb1   :  { %291 = vrot.lane.b32.xlu1 %v280_v40, %s8038_s25  ;;  %318 = vrot.lane.b32.xlu0 %v310_v41, %s8036_s9  ;;  %v509_v41 = vmul.f32 %v5086_v32, %v5023_v60 }
  0xb4   :  { %v5174_v7 = vpop.permute.xlu0 %1082  ;;  %v5178_v9 = vpop.permute.xlu1 %1223 }
  0xb5   :  { %351 = vrot.lane.b32.xlu1 %v343_v44, %s8034_s28  ;;  %1687 = vrot.lane.b32.xlu0 %v4455_v42, %s4796_s5  ;;  %v541_v42 = vmul.f32 %v5096_v38, %v5016_v54  ;;  %v5252_v44 = vsel %vm79_vm2, %v75_v36, 0.0 }
  0xb8   :  { %v5186_v12 = vpop.permute.xlu0 %1176  ;;  %v5192_v15 = vpop.permute.xlu1 %92 }
  0xb9   :  { %1734 = vrot.lane.b32.xlu1 %v4457_v46, %s8000_s24  ;;  %322 = vrot.lane.b32.xlu0 %v312_v47, %s8036_s9  ;;  %s8009_s24 = smov 115   ;;  %v510_v46 = vmul.f32 %v5086_v32, %v5028_v63  ;;  %v511_v47 = vmul.f32 %v5086_v32, %v5040_v8  ;;  %v542_v32 = vmul.f32 %v5096_v38, %v5023_v60 }
  0xbc   :  { %v5201_v18 = vpop.permute.xlu0 %1311  ;;  %v5208_v20 = vpop.permute.xlu1 %1405 }
  0xbd   :  { %355 = vrot.lane.b32.xlu1 %v345_v50, %s8034_s28  ;;  %353 = vrot.lane.b32.xlu0 %v344_v51, %s8034_s28  ;;  %v616_v50 = vmul.f32 %v5090_v35, %v5023_v60  ;;  %v617_v51 = vmul.f32 %v5090_v35, %v5252_v44 }
  0xc0   :  { %v5214_v22 = vpop.permute.xlu0 %1358  ;;  %v5220_v26 = vpop.permute.xlu1 %1452 }
  0xc1   :  { %324 = vrot.lane.b32.xlu0 %v313_v53, %s8036_s9  ;;  %386 = vrot.lane.b32.xlu1 %v377_v55, %s8032_s18  ;;  %v78_v53 = vsel %vm72_vm1, 0.0, %v5109_v43  ;;  %v663_v43 = vmul.f32 %v5100_v39, %v5023_v60 }
  0xc4   :  { %v5229_v31 = vpop.permute.xlu0 %1499  ;;  %v5233_v28 = vpop.permute.xlu1 %1546 }
  0xc5   :  { %357 = vrot.lane.b32.xlu1 %v346_v57, %s8034_s28  ;;  %384 = vrot.lane.b32.xlu0 %v376_v58, %s8032_s18  ;;  %v544_v58 = vmul.f32 %v5096_v38, %v5040_v8 }
  0xc8   :  { %v5243_v37 = vpop.permute.xlu0 %1593 }
  0xc9   :  { %417 = vrot.lane.b32.xlu1 %v409_v0, %s8030_s30  ;;  %1781 = vrot.lane.b32.xlu0 %v4459_v61, %s8006_s10  ;;  %v615_v61 = vmul.f32 %v5090_v35, %v5016_v54  ;;  %v628_v0 = vrot.slane %v616_v50, 1  ;;  %s8220_s10 = smov 12  }
  0xcd   :  { %1828 = vrot.lane.b32.xlu1 %v4461_v1, %s8004_s7  ;;  %388 = vrot.lane.b32.xlu0 %v378_v3, %s8032_s18  ;;  %v630_v1 = vrot.slane %v617_v51, 1  ;;  %v662_v3 = vmul.f32 %v5100_v39, %v5016_v54 }
  0xd1   :  { %421 = vrot.lane.b32.xlu1 %v411_v5, %s8030_s30  ;;  %419 = vrot.lane.b32.xlu0 %v410_v6, %s8030_s30  ;;  %v5287_v5 = vsel %vm79_vm2, %v78_v53, 0.0  ;;  %v665_v53 = vmul.f32 %v5100_v39, %v5028_v63 }
  0xd5   :  { %390 = vrot.lane.b32.xlu0 %v379_v10, %s8032_s18  ;;  %452 = vrot.lane.b32.xlu1 %v443_v11, %s8015_s12  ;;  %v543_v11 = vmul.f32 %v5096_v38, %v5028_v63 }
  0xd9   :  { %423 = vrot.lane.b32.xlu1 %v412_v13, %s8030_s30  ;;  %450 = vrot.lane.b32.xlu0 %v442_v14, %s8015_s12  ;;  %v627_v13 = vrot.slane %v615_v61, 1  ;;  %v618_v14 = vmul.f32 %v5090_v35, %v5028_v63 }
  0xdd   :  { %483 = vrot.lane.b32.xlu1 %v475_v17, %s8011_s14  ;;  %1875 = vrot.lane.b32.xlu0 %v4463_v16, %s4799_s20  ;;  %v619_v16 = vmul.f32 %v5090_v35, %v5040_v8  ;;  %v631_v17 = vsel %vm587_vm3, %v628_v0, %v630_v1  ;;  %v667_v1 = vmul.f32 %v5100_v39, %v5287_v5 }
  0xe1   :  { %572 = vrot.lane.b32.xlu1 %v4407_v19, %s4801_s8  ;;  %454 = vrot.lane.b32.xlu0 %v444_v21, %s8015_s12  ;;  %v674_v19 = vrot.slane %v662_v3, 1  ;;  %v675_v21 = vrot.slane %v663_v43, 1 }
  0xe3   :  { %v676_v36 = vsel %vm587_vm3, %v674_v19, %v675_v21  ;;  %v682_v19 = vrot.slane %v667_v1, 1  ;;  %v803_v1 = vmul.f32 %v5133_v52, %v5016_v54 }
  0xe5   :  { %456 = vrot.lane.b32.xlu1 %v445_v23, %s8015_s12  ;;  %485 = vrot.lane.b32.xlu0 %v476_v24, %s8011_s14  ;;  %v620_v23 = vmul.f32 %v5090_v35, %v5287_v5  ;;  %v709_v35 = vmul.f32 %v5121_v48, %v5016_v54 }
  0xe7   :  { %v721_v61 = vrot.slane %v709_v35, 1 }
  0xe9   :  { %1922 = vrot.lane.b32.xlu0 %v4465_v27, %s4800_s27  ;;  %516 = vrot.lane.b32.xlu1 %v508_v29, %s8009_s24  ;;  %v629_v27 = vsel %vm587_vm3, %v627_v13, %v628_v0  ;;  %v632_v29 = vrot.slane %v618_v14, 1  ;;  %v679_v13 = vrot.slane %v665_v53, 1 }
  0xed   :  { %487 = vrot.lane.b32.xlu0 %v477_v33, %s8011_s14  ;;  %489 = vrot.lane.b32.xlu1 %v478_v34, %s8011_s14  ;;  %v633_v33 = vrot.slane %v619_v16, 1  ;;  %v664_v34 = vmul.f32 %v5100_v39, %v5252_v44  ;;  %v756_v16 = vmul.f32 %v5113_v45, %v5016_v54 }
  0xef   :  { %v5245_v40 = vpop.permute.xlu1 %120  ;;  %v634_v50 = vsel %vm587_vm3, %v632_v29, %v633_v33  ;;  %v677_v51 = vrot.slane %v664_v34, 1  ;;  %v712_v34 = vmul.f32 %v5121_v48, %v5028_v63 }
  0xf1   :  { %518 = vrot.lane.b32.xlu0 %v509_v41, %s8009_s24  ;;  %549 = vrot.lane.b32.xlu1 %v541_v42, %s8013_s13  ;;  %v635_v41 = vrot.slane %v620_v23, 1  ;;  %v710_v42 = vmul.f32 %v5121_v48, %v5023_v60  ;;  %v757_v23 = vmul.f32 %v5113_v45, %v5023_v60 }
  0xf3   :  { %v5256_v25 = vpop.permute.xlu1 %153  ;;  %v5258_v30 = vpop.permute.xlu0 %122  ;;  %v722_v0 = vrot.slane %v710_v42, 1  ;;  %v769_v42 = vrot.slane %v757_v23, 1  ;;  %v815_v23 = vrot.slane %v803_v1, 1 }
  0xf5   :  { %520 = vrot.lane.b32.xlu0 %v510_v46, %s8009_s24  ;;  %522 = vrot.lane.b32.xlu1 %v511_v47, %s8009_s24 }
  0xf7   :  { %v5272_v55 = vpop.permute.xlu1 %157  ;;  %v5274_v57 = vpop.permute.xlu0 %124 }
  0xf9   :  { %551 = vrot.lane.b32.xlu0 %v542_v32, %s8013_s13  ;;  %555 = vrot.lane.b32.xlu1 %v544_v58, %s8013_s13  ;;  %v666_v32 = vmul.f32 %v5100_v39, %v5040_v8  ;;  %v636_v58 = vsel %vm587_vm3, %v633_v33, %v635_v41  ;;  %v711_v39 = vmul.f32 %v5121_v48, %v5252_v44  ;;  %v768_v33 = vrot.slane %v756_v16, 1 }
  0xfb   :  { %v5291_v6 = vpop.permute.xlu1 %188  ;;  %v5293_v10 = vpop.permute.xlu0 %155  ;;  %v680_v14 = vrot.slane %v666_v32, 1  ;;  %v724_v35 = vrot.slane %v711_v39, 1  ;;  %v726_v32 = vrot.slane %v712_v34, 1  ;;  %v760_v34 = vmul.f32 %v5113_v45, %v5040_v8 }
  0xfd   :  { %553 = vrot.lane.b32.xlu0 %v543_v11, %s8013_s13  ;;  %639 = vrot.lane.b32.xlu1 %v631_v17, %s4802_s15  ;;  %v678_v11 = vsel %vm587_vm3, %v675_v21, %v677_v51  ;;  %v723_v17 = vsel %vm587_vm3, %v721_v61, %v722_v0  ;;  %v681_v29 = vsel %vm587_vm3, %v679_v13, %v680_v14 }
  0xfe   :  { %v683_v41 = vsel %vm587_vm3, %v680_v14, %v682_v19  ;;  %v758_v61 = vmul.f32 %v5113_v45, %v5252_v44  ;;  %v804_v14 = vmul.f32 %v5133_v52, %v5023_v60 }
  0xff   :  { %v5306_v24 = vpop.permute.xlu1 %159  ;;  %v5308_v38 = vpop.permute.xlu0 %126 }
 0x100   :  { %v771_v39 = vrot.slane %v758_v61, 1  ;;  %v851_v61 = vmul.f32 %v5125_v49, %v5023_v60 }
 0x101   :  { %637 = vrot.lane.b32.xlu0 %v629_v27, %s4802_s15  ;;  %684 = vrot.lane.b32.xlu1 %v676_v36, %s4803_s16  ;;  %v713_v36 = vmul.f32 %v5121_v48, %v5040_v8 }
 0x103   :  { %v5320_v46 = vpop.permute.xlu1 %219  ;;  %v5322_v47 = vpop.permute.xlu0 %186 }
 0x105   :  { %641 = vrot.lane.b32.xlu0 %v634_v50, %s4802_s15  ;;  %643 = vrot.lane.b32.xlu1 %v636_v58, %s4802_s15  ;;  %v714_v50 = vmul.f32 %v5121_v48, %v5287_v5  ;;  %v727_v58 = vrot.slane %v713_v36, 1  ;;  %v770_v48 = vsel %vm587_vm3, %v768_v33, %v769_v42  ;;  %v816_v33 = vrot.slane %v804_v14, 1 }
 0x106   :  { %v761_v36 = vmul.f32 %v5113_v45, %v5287_v5 }
 0x107   :  { %v5334_v3 = vpop.permute.xlu1 %223  ;;  %v5336_v43 = vpop.permute.xlu0 %190  ;;  %v729_v13 = vrot.slane %v714_v50, 1  ;;  %v728_v19 = vsel %vm587_vm3, %v726_v32, %v727_v58  ;;  %v772_v32 = vsel %vm587_vm3, %v769_v42, %v771_v39  ;;  %v863_v39 = vrot.slane %v851_v61, 1 }
 0x109   :  { %686 = vrot.lane.b32.xlu0 %v678_v11, %s4803_s16  ;;  %731 = vrot.lane.b32.xlu1 %v723_v17, %s4804_s21  ;;  %v725_v11 = vsel %vm587_vm3, %v722_v0, %v724_v35  ;;  %v759_v0 = vmul.f32 %v5113_v45, %v5028_v63  ;;  %v817_v45 = vsel %vm587_vm3, %v815_v23, %v816_v33 }
 0x10a   :  { %v808_v23 = vmul.f32 %v5133_v52, %v5287_v5 }
 0x10b   :  { %v5348_v27 = vpop.permute.xlu1 %254  ;;  %v5350_v21 = vpop.permute.xlu0 %221  ;;  %v773_v1 = vrot.slane %v759_v0, 1 }
 0x10d   :  { %688 = vrot.lane.b32.xlu0 %v681_v29, %s4803_s16  ;;  %690 = vrot.lane.b32.xlu1 %v683_v41, %s4803_s16  ;;  %v730_v29 = vsel %vm587_vm3, %v727_v58, %v729_v13  ;;  %v805_v41 = vmul.f32 %v5133_v52, %v5252_v44  ;;  %v850_v58 = vmul.f32 %v5125_v49, %v5016_v54 }
 0x10f   :  { %v5362_v51 = vpop.permute.xlu1 %225  ;;  %v5364_v53 = vpop.permute.xlu0 %192  ;;  %v818_v13 = vrot.slane %v805_v41, 1  ;;  %v862_v42 = vrot.slane %v850_v58, 1 }
 0x110   :  { %8054 = vst [vmem:[#allocation5_spill] sm:$0xff] %v5362_v51  ;;  %8055 = vst [vmem:[#allocation6_spill] sm:$0xff] %v5364_v53  ;;  %v823_v51 = vrot.slane %v808_v23, 1  ;;  %v853_v23 = vmul.f32 %v5125_v49, %v5028_v63  ;;  %v944_v53 = vmul.f32 %v5138_v56, %v5016_v54 }
 0x111   :  { %733 = vrot.lane.b32.xlu0 %v725_v11, %s4804_s21  ;;  %778 = vrot.lane.b32.xlu1 %v770_v48, %s4805_s22  ;;  %v774_v11 = vrot.slane %v760_v34, 1  ;;  %v776_v48 = vrot.slane %v761_v36, 1  ;;  %v806_v36 = vmul.f32 %v5133_v52, %v5028_v63  ;;  %v819_v58 = vsel %vm587_vm3, %v816_v33, %v818_v13 }
 0x112   :  { %v864_v61 = vsel %vm587_vm3, %v862_v42, %v863_v39  ;;  %v854_v42 = vmul.f32 %v5125_v49, %v5040_v8 }
 0x113   :  { %v5376_v16 = vpop.permute.xlu1 %285  ;;  %v5378_v17 = vpop.permute.xlu0 %252  ;;  %v775_v0 = vsel %vm587_vm3, %v773_v1, %v774_v11  ;;  %v777_v34 = vsel %vm587_vm3, %v774_v11, %v776_v48  ;;  %v820_v1 = vrot.slane %v806_v36, 1  ;;  %v897_v11 = vmul.f32 %v5146_v59, %v5016_v54 }
 0x114   :  { %v852_v48 = vmul.f32 %v5125_v49, %v5252_v44 }
 0x115   :  { %735 = vrot.lane.b32.xlu0 %v728_v19, %s4804_s21  ;;  %737 = vrot.lane.b32.xlu1 %v730_v29, %s4804_s21  ;;  %v807_v29 = vmul.f32 %v5133_v52, %v5040_v8  ;;  %v898_v52 = vmul.f32 %v5146_v59, %v5023_v60  ;;  %v909_v36 = vrot.slane %v897_v11, 1  ;;  %v899_v11 = vmul.f32 %v5146_v59, %v5252_v44 }
 0x117   :  { %v5392_v35 = vpop.permute.xlu1 %1640  ;;  %v5394_v50 = vpop.permute.xlu0 %256 }
 0x118   :  { %8056 = vst [vmem:[#allocation7_spill] sm:$0xff] %v5394_v50  ;;  %v867_v50 = vrot.slane %v853_v23, 1 }
 0x119   :  { %780 = vrot.lane.b32.xlu0 %v772_v32, %s4805_s22  ;;  %825 = vrot.lane.b32.xlu1 %v817_v45, %s8040_s23  ;;  %v821_v45 = vrot.slane %v807_v29, 1  ;;  %v855_v29 = vmul.f32 %v5125_v49, %v5287_v5 }
 0x11b   :  { %v5404_v14 = vpop.permute.xlu1 %289  ;;  %v5406_v19 = vpop.permute.xlu0 %287  ;;  %v824_v13 = vsel %vm587_vm3, %v821_v45, %v823_v51 }
 0x11c   :  { %8057 = vst [vmem:[#allocation8_spill] sm:$0xff] %v5404_v14  ;;  %v870_v14 = vrot.slane %v855_v29, 1  ;;  %v956_v29 = vrot.slane %v944_v53, 1 }
 0x11d   :  { %782 = vrot.lane.b32.xlu0 %v775_v0, %s4805_s22  ;;  %784 = vrot.lane.b32.xlu1 %v777_v34, %s4805_s22  ;;  %v822_v34 = vsel %vm587_vm3, %v820_v1, %v821_v45  ;;  %v945_v1 = vmul.f32 %v5138_v56, %v5023_v60 }
 0x11f   :  { %v5418_v41 = vpop.permute.xlu1 %320  ;;  %v5420_v32 = vpop.permute.xlu0 %258  ;;  %v957_v23 = vrot.slane %v945_v1, 1 }
 0x120   :  { %8058 = vst [vmem:[#allocation9_spill] sm:$0xff] %v5420_v32  ;;  %v868_v32 = vrot.slane %v854_v42, 1 }
 0x121   :  { %827 = vrot.lane.b32.xlu0 %v819_v58, %s8040_s23  ;;  %872 = vrot.lane.b32.xlu1 %v864_v61, %s8038_s25  ;;  %v910_v58 = vrot.slane %v898_v52, 1  ;;  %v865_v61 = vrot.slane %v852_v48, 1 }
 0x122   :  { %v869_v42 = vsel %vm587_vm3, %v867_v50, %v868_v32  ;;  %v991_v50 = vmul.f32 %v5162_v2, %v5016_v54 }
 0x123   :  { %v5432_v0 = vpop.permute.xlu1 %291  ;;  %v5434_v33 = vpop.permute.xlu0 %318  ;;  %v911_v49 = vsel %vm587_vm3, %v909_v36, %v910_v58  ;;  %v866_v45 = vsel %vm587_vm3, %v863_v39, %v865_v61  ;;  %v901_v39 = vmul.f32 %v5146_v59, %v5040_v8  ;;  %v902_v36 = vmul.f32 %v5146_v59, %v5287_v5 }
 0x124   :  { %8059 = vst [vmem:[#allocation10_spill] sm:$0xff] %v5432_v0  ;;  %v900_v61 = vmul.f32 %v5146_v59, %v5028_v63  ;;  %v958_v59 = vsel %vm587_vm3, %v956_v29, %v957_v23 }
 0x125   :  { %831 = vrot.lane.b32.xlu1 %v824_v13, %s8040_s23  ;;  %829 = vrot.lane.b32.xlu0 %v822_v34, %s8040_s23  ;;  %v871_v13 = vsel %vm587_vm3, %v868_v32, %v870_v14  ;;  %v912_v34 = vrot.slane %v899_v11, 1  ;;  %v915_v53 = vrot.slane %v901_v39, 1  ;;  %v992_v32 = vmul.f32 %v5162_v2, %v5023_v60 }
 0x126   :  { %v917_v11 = vrot.slane %v902_v36, 1  ;;  %v947_v36 = vmul.f32 %v5138_v56, %v5028_v63 }
 0x127   :  { %v5446_v0 = vpop.permute.xlu1 %351  ;;  %v5448_v51 = vpop.permute.xlu0 %1687  ;;  %v913_v1 = vsel %vm587_vm3, %v910_v58, %v912_v34  ;;  %v949_v34 = vmul.f32 %v5138_v56, %v5287_v5 }
 0x128   :  { %8060 = vst [vmem:[#allocation11_spill] sm:$0xff] %v5446_v0  ;;  %v918_v29 = vsel %vm587_vm3, %v915_v53, %v917_v11  ;;  %v961_v11 = vrot.slane %v947_v36, 1 }
 0x129   :  { %919 = vrot.lane.b32.xlu1 %v911_v49, %s8036_s9  ;;  %874 = vrot.lane.b32.xlu0 %v866_v45, %s8038_s25  ;;  %v946_v45 = vmul.f32 %v5138_v56, %v5252_v44 }
 0x12b   :  { %v5460_v52 = vpop.permute.xlu1 %1734  ;;  %v5462_v48 = vpop.permute.xlu0 %322  ;;  %v959_v0 = vrot.slane %v946_v45, 1 }
 0x12c   :  { %8061 = vst [vmem:[#allocation12_spill] sm:$0xff] %v5462_v48  ;;  %v1004_v48 = vrot.slane %v992_v32, 1 }
 0x12d   :  { %878 = vrot.lane.b32.xlu1 %v871_v13, %s8038_s25  ;;  %876 = vrot.lane.b32.xlu0 %v869_v42, %s8038_s25  ;;  %v914_v13 = vrot.slane %v900_v61, 1  ;;  %v960_v45 = vsel %vm587_vm3, %v957_v23, %v959_v0  ;;  %v995_v23 = vmul.f32 %v5162_v2, %v5040_v8 }
 0x12f   :  { %v5474_v49 = vpop.permute.xlu1 %355  ;;  %v5476_v14 = vpop.permute.xlu0 %353  ;;  %v916_v58 = vsel %vm587_vm3, %v914_v13, %v915_v53  ;;  %v1038_v53 = vmul.f32 %v5153_v62, %v5016_v54  ;;  %v993_v13 = vmul.f32 %v5162_v2, %v5252_v44 }
 0x130   :  { %8062 = vst [vmem:[#allocation13_spill] sm:$0xff] %v5474_v49  ;;  %8063 = vst [vmem:[#allocation14_spill] sm:$0xff] %v5476_v14  ;;  %v1003_v49 = vrot.slane %v991_v50, 1  ;;  %v948_v14 = vmul.f32 %v5138_v56, %v5040_v8  ;;  %v1039_v56 = vmul.f32 %v5153_v62, %v5023_v60 }
 0x131   :  { %966 = vrot.lane.b32.xlu1 %v958_v59, %s8034_s28  ;;  %921 = vrot.lane.b32.xlu0 %v913_v1, %s8036_s9  ;;  %v964_v1 = vrot.slane %v949_v34, 1  ;;  %v1050_v0 = vrot.slane %v1038_v53, 1  ;;  %v1085_v53 = vmul.f32 %v5174_v7, %v5016_v54 }
 0x132   :  { %v1005_v32 = vsel %vm587_vm3, %v1003_v49, %v1004_v48  ;;  %v962_v59 = vrot.slane %v948_v14, 1  ;;  %v996_v14 = vmul.f32 %v5162_v2, %v5287_v5 }
 0x133   :  { %v5488_v42 = vpop.permute.xlu1 %386  ;;  %v5490_v39 = vpop.permute.xlu0 %324 }
 0x134   :  { %8064 = vst [vmem:[#allocation15_spill] sm:$0xff] %v5488_v42  ;;  %8065 = vst [vmem:[#allocation16_spill] sm:$0xff] %v5490_v39  ;;  %v965_v34 = vsel %vm587_vm3, %v962_v59, %v964_v1  ;;  %v963_v36 = vsel %vm587_vm3, %v961_v11, %v962_v59  ;;  %v1086_v1 = vmul.f32 %v5174_v7, %v5023_v60 }
 0x135   :  { %925 = vrot.lane.b32.xlu1 %v918_v29, %s8036_s9  ;;  %923 = vrot.lane.b32.xlu0 %v916_v58, %s8036_s9  ;;  %v994_v58 = vmul.f32 %v5162_v2, %v5028_v63 }
 0x137   :  { %v5502_v61 = vpop.permute.xlu1 %357  ;;  %v5504_v50 = vpop.permute.xlu0 %384  ;;  %v1008_v2 = vrot.slane %v994_v58, 1  ;;  %v1097_v58 = vrot.slane %v1085_v53, 1  ;;  %v1132_v53 = vmul.f32 %v5166_v4, %v5016_v54 }
 0x138   :  { %8066 = vst [vmem:[#allocation17_spill] sm:$0xff] %v5502_v61  ;;  %8067 = vst [vmem:[#allocation18_spill] sm:$0xff] %v5504_v50  ;;  %v1011_v50 = vrot.slane %v996_v14, 1 }
 0x139   :  { %1013 = vrot.lane.b32.xlu1 %v1005_v32, %s8032_s18  ;;  %968 = vrot.lane.b32.xlu0 %v960_v45, %s8034_s28  ;;  %v1051_v32 = vrot.slane %v1039_v56, 1  ;;  %v1006_v45 = vrot.slane %v993_v13, 1  ;;  %v1040_v56 = vmul.f32 %v5153_v62, %v5252_v44 }
 0x13b   :  { %v5516_v29 = vpop.permute.xlu1 %417  ;;  %v5518_v49 = vpop.permute.xlu0 %1781  ;;  %v1052_v59 = vsel %vm587_vm3, %v1050_v0, %v1051_v32  ;;  %v1007_v11 = vsel %vm587_vm3, %v1004_v48, %v1006_v45  ;;  %v1053_v0 = vrot.slane %v1040_v56, 1  ;;  %v1042_v48 = vmul.f32 %v5153_v62, %v5040_v8 }
 0x13c   :  { %8068 = vst [vmem:[#allocation19_spill] sm:$0xff] %v5516_v29  ;;  %v1009_v29 = vrot.slane %v995_v23, 1  ;;  %v1043_v45 = vmul.f32 %v5153_v62, %v5287_v5 }
 0x13d   :  { %972 = vrot.lane.b32.xlu1 %v965_v34, %s8034_s28  ;;  %970 = vrot.lane.b32.xlu0 %v963_v36, %s8034_s28  ;;  %v1098_v36 = vrot.slane %v1086_v1, 1  ;;  %v1087_v1 = vmul.f32 %v5174_v7, %v5252_v44  ;;  %v1056_v56 = vrot.slane %v1042_v48, 1 }
 0x13e   :  { %v1012_v23 = vsel %vm587_vm3, %v1009_v29, %v1011_v50  ;;  %v1010_v14 = vsel %vm587_vm3, %v1008_v2, %v1009_v29  ;;  %v1133_v2 = vmul.f32 %v5166_v4, %v5023_v60 }
 0x13f   :  { %v5532_v61 = vpop.permute.xlu1 %1828  ;;  %v5534_v39 = vpop.permute.xlu0 %388  ;;  %v1099_v29 = vsel %vm587_vm3, %v1097_v58, %v1098_v36 }
 0x140   :  { %8069 = vst [vmem:[#allocation20_spill] sm:$0xff] %v5534_v39  ;;  %v1145_v39 = vrot.slane %v1133_v2, 1 }
 0x141   :  { %1060 = vrot.lane.b32.xlu1 %v1052_v59, %s8030_s30  ;;  %1015 = vrot.lane.b32.xlu0 %v1007_v11, %s8032_s18  ;;  %v1041_v59 = vmul.f32 %v5153_v62, %v5028_v63  ;;  %v1054_v62 = vsel %vm587_vm3, %v1051_v32, %v1053_v0  ;;  %v1088_v32 = vmul.f32 %v5174_v7, %v5028_v63 }
 0x142   :  { %v1089_v0 = vmul.f32 %v5174_v7, %v5040_v8 }
 0x143   :  { %v5544_v13 = vpop.permute.xlu1 %421  ;;  %v5546_v34 = vpop.permute.xlu0 %419  ;;  %v1102_v2 = vrot.slane %v1088_v32, 1 }
 0x144   :  { %8070 = vst [vmem:[#allocation21_spill] sm:$0xff] %v5544_v13  ;;  %8071 = vst [vmem:[#allocation22_spill] sm:$0xff] %v5546_v34  ;;  %v1144_v13 = vrot.slane %v1132_v53, 1  ;;  %v1135_v53 = vmul.f32 %v5166_v4, %v5028_v63 }
 0x145   :  { %1019 = vrot.lane.b32.xlu1 %v1012_v23, %s8032_s18  ;;  %1017 = vrot.lane.b32.xlu0 %v1010_v14, %s8032_s18  ;;  %v1058_v23 = vrot.slane %v1043_v45, 1  ;;  %v1055_v14 = vrot.slane %v1041_v59, 1 }
 0x146   :  { %v1146_v59 = vsel %vm587_vm3, %v1144_v13, %v1145_v39 }
 0x147   :  { %v5558_v11 = vpop.permute.xlu1 %452  ;;  %v5560_v50 = vpop.permute.xlu0 %390  ;;  %v1059_v34 = vsel %vm587_vm3, %v1056_v56, %v1058_v23  ;;  %v1057_v42 = vsel %vm587_vm3, %v1055_v14, %v1056_v56  ;;  %v1180_v56 = vmul.f32 %v5186_v12, %v5023_v60  ;;  %v1181_v23 = vmul.f32 %v5186_v12, %v5252_v44 }
 0x148   :  { %8072 = vst [vmem:[#allocation23_spill] sm:$0xff] %v5558_v11  ;;  %8073 = vst [vmem:[#allocation24_spill] sm:$0xff] %v5560_v50  ;;  %v1100_v11 = vrot.slane %v1087_v1, 1  ;;  %v1103_v1 = vrot.slane %v1089_v0, 1 }
 0x149   :  { %1107 = vrot.lane.b32.xlu1 %v1099_v29, %s8015_s12  ;;  %1062 = vrot.lane.b32.xlu0 %v1054_v62, %s8030_s30  ;;  %v1136_v62 = vmul.f32 %v5166_v4, %v5040_v8 }
 0x14a   :  { %v1101_v29 = vsel %vm587_vm3, %v1098_v36, %v1100_v11  ;;  %v1149_v11 = vrot.slane %v1135_v53, 1  ;;  %v1104_v14 = vsel %vm587_vm3, %v1102_v2, %v1103_v1  ;;  %v5622_v2 = vmul.f32 %v5186_v12, %v5040_v8 }
 0x14b   :  { %v5572_v50 = vpop.permute.xlu1 %423  ;;  %v5574_v58 = vpop.permute.xlu0 %450  ;;  %v1150_v32 = vrot.slane %v1136_v62, 1 }
 0x14c   :  { %8074 = vst [vmem:[#allocation25_spill] sm:$0xff] %v5572_v50  ;;  %8075 = vst [vmem:[#allocation26_spill] sm:$0xff] %v5574_v58  ;;  %v1192_v50 = vrot.slane %v1180_v56, 1 }
 0x14d   :  { %1066 = vrot.lane.b32.xlu1 %v1059_v34, %s8030_s30  ;;  %1064 = vrot.lane.b32.xlu0 %v1057_v42, %s8030_s30  ;;  %v1134_v34 = vmul.f32 %v5166_v4, %v5252_v44  ;;  %v4437_v42 = vld [vmem:[%s7994_s1 + $0x20] ss:$0 sm:$0xff]  ;;  %v1151_v62 = vsel %vm587_vm3, %v1149_v11, %v1150_v32  ;;  %v1227_v11 = vmul.f32 %v5178_v9, %v5023_v60 }
 0x14f   :  { %v5584_v48 = vpop.permute.xlu1 %483  ;;  %v5586_v45 = vpop.permute.xlu0 %1875  ;;  %v1147_v0 = vrot.slane %v1134_v34, 1 }
 0x150   :  { %8076 = vst [vmem:[#allocation27_spill] sm:$0xff] %v5584_v48  ;;  %v1182_v48 = vmul.f32 %v5186_v12, %v5028_v63 }
 0x151   :  { %1154 = vrot.lane.b32.xlu1 %v1146_v59, %s8011_s14  ;;  %1109 = vrot.lane.b32.xlu0 %v1101_v29, %s8015_s12  ;;  %v1090_v59 = vmul.f32 %v5174_v7, %v5287_v5  ;;  %v1148_v7 = vsel %vm587_vm3, %v1145_v39, %v1147_v0  ;;  %v1228_v39 = vmul.f32 %v5178_v9, %v5252_v44 }
 0x153   :  { %v5601_v13 = vpop.permute.xlu1 %572  ;;  %v5603_v36 = vpop.permute.xlu0 %454  ;;  %v1105_v34 = vrot.slane %v1090_v59, 1  ;;  %v1241_v58 = vrot.slane %v1228_v39, 1 }
 0x154   :  { %8077 = vst [vmem:[#allocation28_spill] sm:$0xff] %v5603_v36  ;;  %v1194_v36 = vrot.slane %v1181_v23, 1 }
 0x155   :  { %1271 = vrot.lane.b32.xlu1 %v4437_v42, %s4801_s8  ;;  %1111 = vrot.lane.b32.xlu0 %v1104_v14, %s8015_s12  ;;  %v1179_v42 = vmul.f32 %v5186_v12, %v5016_v54  ;;  %v1196_v14 = vrot.slane %v1182_v48, 1  ;;  %v1106_v59 = vsel %vm587_vm3, %v1103_v1, %v1105_v34 }
 0x156   :  { %v1195_v0 = vsel %vm587_vm3, %v1192_v50, %v1194_v36  ;;  %v1229_v36 = vmul.f32 %v5178_v9, %v5028_v63 }
 0x157   :  { %v5614_v29 = vpop.permute.xlu1 %456  ;;  %v5616_v53 = vpop.permute.xlu0 %485 }
 0x158   :  { %8078 = vst [vmem:[#allocation29_spill] sm:$0xff] %v5614_v29  ;;  %8079 = vst [vmem:[#allocation30_spill] sm:$0xff] %v5616_v53  ;;  %v1197_v29 = vrot.slane %v5622_v2, 1  ;;  %v1239_v53 = vrot.slane %v1227_v11, 1  ;;  %v1243_v39 = vrot.slane %v1229_v36, 1 }
 0x159   :  { %1158 = vrot.lane.b32.xlu1 %v1151_v62, %s8011_s14  ;;  %1156 = vrot.lane.b32.xlu0 %v1148_v7, %s8011_s14  ;;  %v1191_v62 = vrot.slane %v1179_v42, 1  ;;  %v1137_v7 = vmul.f32 %v5166_v4, %v5287_v5  ;;  %v1230_v4 = vmul.f32 %v5178_v9, %v5040_v8  ;;  %v1226_v42 = vmul.f32 %v5178_v9, %v5016_v54 }
 0x15a   :  { %v1242_v11 = vsel %vm587_vm3, %v1239_v53, %v1241_v58 }
 0x15b   :  { %v5630_v56 = vpop.permute.xlu1 %516  ;;  %v5632_v23 = vpop.permute.xlu0 %1922  ;;  %v1193_v1 = vsel %vm587_vm3, %v1191_v62, %v1192_v50  ;;  %v1152_v34 = vrot.slane %v1137_v7, 1  ;;  %v1314_v50 = vmul.f32 %v5201_v18, %v5016_v54  ;;  %v1244_v7 = vrot.slane %v1230_v4, 1 }
 0x15c   :  { %8080 = vst [vmem:[#allocation31_spill] sm:$0xff] %v5630_v56  ;;  %v1198_v56 = vsel %vm587_vm3, %v1196_v14, %v1197_v29 }
 0x15d   :  { %1203 = vrot.lane.b32.xlu1 %v1195_v0, %s8009_s24  ;;  %1113 = vrot.lane.b32.xlu0 %v1106_v59, %s8015_s12  ;;  %v1315_v59 = vmul.f32 %v5201_v18, %v5023_v60  ;;  %v1153_v62 = vsel %vm587_vm3, %v1150_v32, %v1152_v34  ;;  %v5681_v32 = vmul.f32 %v5201_v18, %v5040_v8 }
 0x15f   :  { %v5645_v48 = vpop.permute.xlu1 %489  ;;  %v5647_v2 = vpop.permute.xlu0 %487 }
 0x160   :  { %8081 = vst [vmem:[#allocation32_spill] sm:$0xff] %v5645_v48  ;;  %8082 = vst [vmem:[#allocation33_spill] sm:$0xff] %v5647_v2  ;;  %v1238_v48 = vrot.slane %v1226_v42, 1  ;;  %v1327_v2 = vrot.slane %v1315_v59, 2  ;;  %v1231_v42 = vmul.f32 %v5178_v9, %v5287_v5  ;;  %v1363_v9 = vmul.f32 %v5214_v22, %v5252_v44 }
 0x161   :  { %1205 = vrot.lane.b32.xlu1 %v1198_v56, %s8009_s24  ;;  %1201 = vrot.lane.b32.xlu0 %v1193_v1, %s8009_s24  ;;  %v1184_v56 = vmul.f32 %v5186_v12, %v5287_v5  ;;  %v1326_v1 = vrot.slane %v1314_v50, 2  ;;  %v1245_v12 = vsel %vm587_vm3, %v1243_v39, %v1244_v7 }
 0x162   :  { %v1240_v34 = vsel %vm587_vm3, %v1238_v48, %v1239_v53  ;;  %v1362_v53 = vmul.f32 %v5214_v22, %v5023_v60  ;;  %v1246_v39 = vrot.slane %v1231_v42, 1  ;;  %v1376_v42 = vrot.slane %v1363_v9, 2 }
 0x163   :  { %v5659_v0 = vpop.permute.xlu1 %549  ;;  %v5661_v14 = vpop.permute.xlu0 %518  ;;  %v1199_v4 = vrot.slane %v1184_v56, 1  ;;  %v1328_v59 = vsel %vm1286_vm4, %v1326_v1, %v1327_v2  ;;  %v1316_v56 = vmul.f32 %v5201_v18, %v5252_v44 }
 0x164   :  { %8083 = vst [vmem:[#allocation34_spill] sm:$0xff] %v5659_v0  ;;  %v1317_v0 = vmul.f32 %v5201_v18, %v5028_v63 }
 0x165   :  { %1250 = vrot.lane.b32.xlu1 %v1242_v11, %s8013_s13  ;;  %1160 = vrot.lane.b32.xlu0 %v1153_v62, %s8011_s14  ;;  %v1200_v48 = vsel %vm587_vm3, %v1197_v29, %v1199_v4  ;;  %v1364_v29 = vmul.f32 %v5214_v22, %v5028_v63  ;;  %v1247_v4 = vsel %vm587_vm3, %v1244_v7, %v1246_v39 }
 0x166   :  { %v1331_v62 = vrot.slane %v1317_v0, 2  ;;  %v1410_v7 = vmul.f32 %v5208_v20, %v5252_v44 }
 0x167   :  { %v5673_v58 = vpop.permute.xlu1 %522  ;;  %v5675_v36 = vpop.permute.xlu0 %520 }
 0x168   :  { %8084 = vst [vmem:[#allocation35_spill] sm:$0xff] %v5673_v58  ;;  %v1332_v58 = vrot.slane %v5681_v32, 2 }
 0x169   :  { %1252 = vrot.lane.b32.xlu1 %v1245_v12, %s8013_s13  ;;  %1248 = vrot.lane.b32.xlu0 %v1240_v34, %s8013_s13  ;;  %v1374_v12 = vrot.slane %v1362_v53, 2  ;;  %v5713_v34 = vmul.f32 %v5214_v22, %v5040_v8 }
 0x16a   :  { %v1333_v32 = vsel %vm1286_vm4, %v1331_v62, %v1332_v58 }
 0x16b   :  { %v5689_v11 = vpop.permute.xlu1 %555  ;;  %v5691_v50 = vpop.permute.xlu0 %551  ;;  %v1377_v39 = vsel %vm1286_vm4, %v1374_v12, %v1376_v42  ;;  %v1411_v42 = vmul.f32 %v5208_v20, %v5028_v63 }
 0x16c   :  { %8085 = vst [vmem:[#allocation36_spill] sm:$0xff] %v5689_v11  ;;  %v1378_v11 = vrot.slane %v1364_v29, 2 }
 0x16d   :  { %1336 = vrot.lane.b32.xlu1 %v1328_v59, %s4802_s15  ;;  %1207 = vrot.lane.b32.xlu0 %v1200_v48, %s8009_s24  ;;  %v1329_v59 = vrot.slane %v1316_v56, 2  ;;  %v1361_v48 = vmul.f32 %v5214_v22, %v5016_v54 }
 0x16f   :  { %v5704_v1 = vpop.permute.xlu1 %639  ;;  %v5706_v0 = vpop.permute.xlu0 %553  ;;  %v1330_v9 = vsel %vm1286_vm4, %v1327_v2, %v1329_v59  ;;  %v1373_v56 = vrot.slane %v1361_v48, 2  ;;  %v1408_v48 = vmul.f32 %v5208_v20, %v5016_v54 }
 0x170   :  { %8086 = vst [vmem:[#allocation37_spill] sm:$0xff] %v5704_v1  ;;  %8087 = vst [vmem:[#allocation38_spill] sm:$0xff] %v5706_v0  ;;  %v1379_v0 = vrot.slane %v5713_v34, 2  ;;  %v1409_v1 = vmul.f32 %v5208_v20, %v5023_v60 }
 0x171   :  { %1340 = vrot.lane.b32.xlu1 %v1333_v32, %s4802_s15  ;;  %1254 = vrot.lane.b32.xlu0 %v1247_v4, %s8013_s13  ;;  %v1319_v32 = vmul.f32 %v5201_v18, %v5287_v5  ;;  %v1375_v2 = vsel %vm1286_vm4, %v1373_v56, %v1374_v12  ;;  %v1412_v18 = vmul.f32 %v5208_v20, %v5040_v8 }
 0x172   :  { %v1380_v4 = vsel %vm1286_vm4, %v1378_v11, %v1379_v0  ;;  %v1456_v12 = vmul.f32 %v5220_v26, %v5023_v60 }
 0x173   :  { %v5720_v62 = vpop.permute.xlu1 %684  ;;  %v5722_v53 = vpop.permute.xlu0 %637  ;;  %v1334_v59 = vrot.slane %v1319_v32, 2  ;;  %v1426_v32 = vrot.slane %v1412_v18, 2 }
 0x174   :  { %8088 = vst [vmem:[#allocation39_spill] sm:$0xff] %v5720_v62  ;;  %8089 = vst [vmem:[#allocation40_spill] sm:$0xff] %v5722_v53  ;;  %v1421_v62 = vrot.slane %v1409_v1, 2  ;;  %v1423_v53 = vrot.slane %v1410_v7, 2  ;;  %v1425_v7 = vrot.slane %v1411_v42, 2  ;;  %v1468_v42 = vrot.slane %v1456_v12, 2 }
 0x175   :  { %1385 = vrot.lane.b32.xlu1 %v1377_v39, %s4803_s16  ;;  %1338 = vrot.lane.b32.xlu0 %v1330_v9, %s4802_s15  ;;  %v1457_v9 = vmul.f32 %v5220_v26, %v5252_v44  ;;  %v1335_v56 = vsel %vm1286_vm4, %v1332_v58, %v1334_v59  ;;  %v5771_v58 = vmul.f32 %v5220_v26, %v5040_v8 }
 0x176   :  { %v1424_v1 = vsel %vm1286_vm4, %v1421_v62, %v1423_v53  ;;  %v1427_v59 = vsel %vm1286_vm4, %v1425_v7, %v1426_v32 }
 0x177   :  { %v5735_v29 = vpop.permute.xlu1 %643  ;;  %v5737_v34 = vpop.permute.xlu0 %641 }
 0x178   :  { %8090 = vst [vmem:[#allocation41_spill] sm:$0xff] %v5735_v29  ;;  %8091 = vst [vmem:[#allocation42_spill] sm:$0xff] %v5737_v34  ;;  %v1420_v29 = vrot.slane %v1408_v48, 2  ;;  %v1458_v34 = vmul.f32 %v5220_v26, %v5028_v63  ;;  %v1455_v48 = vmul.f32 %v5220_v26, %v5016_v54 }
 0x179   :  { %1387 = vrot.lane.b32.xlu1 %v1380_v4, %s4803_s16  ;;  %1383 = vrot.lane.b32.xlu0 %v1375_v2, %s4803_s16  ;;  %v1366_v4 = vmul.f32 %v5214_v22, %v5287_v5 }
 0x17a   :  { %v1422_v22 = vsel %vm1286_vm4, %v1420_v29, %v1421_v62  ;;  %v1503_v62 = vmul.f32 %v5229_v31, %v5023_v60  ;;  %v1467_v7 = vrot.slane %v1455_v48, 2 }
 0x17b   :  { %v5749_v39 = vpop.permute.xlu1 %731  ;;  %v5751_v11 = vpop.permute.xlu0 %686  ;;  %v1381_v18 = vrot.slane %v1366_v4, 2  ;;  %v1504_v4 = vmul.f32 %v5229_v31, %v5252_v44 }
 0x17c   :  { %8092 = vst [vmem:[#allocation43_spill] sm:$0xff] %v5749_v39  ;;  %v1470_v39 = vrot.slane %v1457_v9, 2 }
 0x17d   :  { %1432 = vrot.lane.b32.xlu1 %v1424_v1, %s4804_s21  ;;  %1342 = vrot.lane.b32.xlu0 %v1335_v56, %s4802_s15  ;;  %v1472_v56 = vrot.slane %v1458_v34, 2  ;;  %v1382_v29 = vsel %vm1286_vm4, %v1379_v0, %v1381_v18  ;;  %v1505_v0 = vmul.f32 %v5229_v31, %v5028_v63  ;;  %v5803_v18 = vmul.f32 %v5229_v31, %v5040_v8 }
 0x17e   :  { %v1471_v9 = vsel %vm1286_vm4, %v1468_v42, %v1470_v39  ;;  %v1517_v48 = vrot.slane %v1504_v4, 2 }
 0x17f   :  { %v5763_v2 = vpop.permute.xlu1 %690  ;;  %v5765_v53 = vpop.permute.xlu0 %688 }
 0x180   :  { %8093 = vst [vmem:[#allocation44_spill] sm:$0xff] %v5763_v2  ;;  %8094 = vst [vmem:[#allocation45_spill] sm:$0xff] %v5765_v53  ;;  %v1473_v2 = vrot.slane %v5771_v58, 2 }
 0x181   :  { %1434 = vrot.lane.b32.xlu1 %v1427_v59, %s4804_s21  ;;  %1430 = vrot.lane.b32.xlu0 %v1422_v22, %s4804_s21  ;;  %v1413_v59 = vmul.f32 %v5208_v20, %v5287_v5  ;;  %v1515_v22 = vrot.slane %v1503_v62, 2  ;;  %v1469_v20 = vsel %vm1286_vm4, %v1467_v7, %v1468_v42  ;;  %v1551_v42 = vmul.f32 %v5233_v28, %v5252_v44 }
 0x182   :  { %v1474_v58 = vsel %vm1286_vm4, %v1472_v56, %v1473_v2 }
 0x183   :  { %v5779_v1 = vpop.permute.xlu1 %778  ;;  %v5781_v12 = vpop.permute.xlu0 %733  ;;  %v1518_v7 = vsel %vm1286_vm4, %v1515_v22, %v1517_v48  ;;  %v1564_v53 = vrot.slane %v1551_v42, 2  ;;  %v1552_v48 = vmul.f32 %v5233_v28, %v5028_v63 }
 0x184   :  { %8095 = vst [vmem:[#allocation46_spill] sm:$0xff] %v5779_v1  ;;  %v1550_v1 = vmul.f32 %v5233_v28, %v5023_v60 }
 0x185   :  { %1479 = vrot.lane.b32.xlu1 %v1471_v9, %s4805_s22  ;;  %1389 = vrot.lane.b32.xlu0 %v1382_v29, %s4803_s16  ;;  %v1428_v9 = vrot.slane %v1413_v59, 2  ;;  %v1502_v29 = vmul.f32 %v5229_v31, %v5016_v54  ;;  %v1566_v42 = vrot.slane %v1552_v48, 2 }
 0x187   :  { %v5794_v39 = vpop.permute.xlu1 %737  ;;  %v5796_v34 = vpop.permute.xlu0 %735  ;;  %v1429_v4 = vsel %vm1286_vm4, %v1426_v32, %v1428_v9  ;;  %v1514_v59 = vrot.slane %v1502_v29, 2  ;;  %v1549_v29 = vmul.f32 %v5233_v28, %v5016_v54 }
 0x188   :  { %8096 = vst [vmem:[#allocation47_spill] sm:$0xff] %v5794_v39  ;;  %8097 = vst [vmem:[#allocation48_spill] sm:$0xff] %v5796_v34  ;;  %v1519_v39 = vrot.slane %v1505_v0, 2  ;;  %v1520_v34 = vrot.slane %v5803_v18, 2 }
 0x189   :  { %1481 = vrot.lane.b32.xlu1 %v1474_v58, %s4805_s22  ;;  %1477 = vrot.lane.b32.xlu0 %v1469_v20, %s4805_s22  ;;  %v1460_v58 = vmul.f32 %v5220_v26, %v5287_v5  ;;  %v1516_v32 = vsel %vm1286_vm4, %v1514_v59, %v1515_v22  ;;  %v1553_v26 = vmul.f32 %v5233_v28, %v5040_v8 }
 0x18a   :  { %v1521_v20 = vsel %vm1286_vm4, %v1519_v39, %v1520_v34  ;;  %v1597_v22 = vmul.f32 %v5243_v37, %v5023_v60 }
 0x18b   :  { %v5810_v56 = vpop.permute.xlu1 %825  ;;  %v5812_v62 = vpop.permute.xlu0 %780  ;;  %v1475_v9 = vrot.slane %v1460_v58, 2  ;;  %v1567_v58 = vrot.slane %v1553_v26, 2 }
 0x18c   :  { %8098 = vst [vmem:[#allocation49_spill] sm:$0xff] %v5810_v56  ;;  %v1562_v56 = vrot.slane %v1550_v1, 2  ;;  %v1609_v48 = vrot.slane %v1597_v22, 2 }
 0x18d   :  { %1526 = vrot.lane.b32.xlu1 %v1518_v7, %s8040_s23  ;;  %1436 = vrot.lane.b32.xlu0 %v1429_v4, %s4804_s21  ;;  %v1598_v4 = vmul.f32 %v5243_v37, %v5252_v44  ;;  %v1476_v59 = vsel %vm1286_vm4, %v1473_v2, %v1475_v9  ;;  %v1600_v2 = vmul.f32 %v5243_v37, %v5040_v8 }
 0x18e   :  { %v1565_v39 = vsel %vm1286_vm4, %v1562_v56, %v1564_v53  ;;  %v1568_v9 = vsel %vm1286_vm4, %v1566_v42, %v1567_v58  ;;  %v1554_v42 = vmul.f32 %v5233_v28, %v5287_v5 }
 0x18f   :  { %v5825_v0 = vpop.permute.xlu1 %784  ;;  %v5827_v18 = vpop.permute.xlu0 %782 }
 0x190   :  { %8099 = vst [vmem:[#allocation50_spill] sm:$0xff] %v5825_v0  ;;  %8100 = vst [vmem:[#allocation51_spill] sm:$0xff] %v5827_v18  ;;  %v1561_v0 = vrot.slane %v1549_v29, 2  ;;  %v1599_v18 = vmul.f32 %v5243_v37, %v5028_v63  ;;  %v1596_v29 = vmul.f32 %v5243_v37, %v5016_v54  ;;  %v1569_v28 = vrot.slane %v1554_v42, 2 }
 0x191   :  { %1528 = vrot.lane.b32.xlu1 %v1521_v20, %s8040_s23  ;;  %1524 = vrot.lane.b32.xlu0 %v1516_v32, %s8040_s23  ;;  %v1507_v20 = vmul.f32 %v5229_v31, %v5287_v5 }
 0x192   :  { %v1563_v31 = vsel %vm1286_vm4, %v1561_v0, %v1562_v56  ;;  %v1608_v0 = vrot.slane %v1596_v29, 2 }
 0x193   :  { %v5839_v7 = vpop.permute.xlu1 %872  ;;  %v5841_v1 = vpop.permute.xlu0 %827  ;;  %v1522_v26 = vrot.slane %v1507_v20, 2  ;;  %v1644_v20 = vmul.f32 %v5392_v35, %v5023_v60 }
 0x194   :  { %8101 = vst [vmem:[#allocation52_spill] sm:$0xff] %v5839_v7  ;;  %v1611_v7 = vrot.slane %v1598_v4, 2 }
 0x195   :  { %1573 = vrot.lane.b32.xlu1 %v1565_v39, %s8038_s25  ;;  %1483 = vrot.lane.b32.xlu0 %v1476_v59, %s4805_s22  ;;  %v1613_v59 = vrot.slane %v1599_v18, 2  ;;  %v1523_v56 = vsel %vm1286_vm4, %v1520_v34, %v1522_v26  ;;  %v1646_v34 = vmul.f32 %v5392_v35, %v5028_v63  ;;  %v1610_v26 = vsel %vm1286_vm4, %v1608_v0, %v1609_v48 }
 0x196   :  { %v1612_v4 = vsel %vm1286_vm4, %v1609_v48, %v1611_v7  ;;  %v1656_v29 = vrot.slane %v1644_v20, 2  ;;  %v1601_v48 = vmul.f32 %v5243_v37, %v5287_v5 }
 0x197   :  { %v5853_v32 = vpop.permute.xlu1 %831  ;;  %v5855_v53 = vpop.permute.xlu0 %829 }
 0x198   :  { %8102 = vst [vmem:[#allocation53_spill] sm:$0xff] %v5853_v32  ;;  %8103 = vst [vmem:[#allocation54_spill] sm:$0xff] %v5855_v53  ;;  %v1614_v32 = vrot.slane %v1600_v2, 2  ;;  %v5890_v2 = vmul.f32 %v5392_v35, %v5040_v8  ;;  %v1616_v37 = vrot.slane %v1601_v48, 2  ;;  %v1695_v53 = vmul.f32 %v5448_v51, %v5287_v5 }
 0x199   :  { %1575 = vrot.lane.b32.xlu1 %v1568_v9, %s8038_s25  ;;  %1571 = vrot.lane.b32.xlu0 %v1563_v31, %s8038_s25  ;;  %v1645_v9 = vmul.f32 %v5392_v35, %v5252_v44 }
 0x19a   :  { %v1615_v7 = vsel %vm1286_vm4, %v1613_v59, %v1614_v32  ;;  %v1617_v48 = vsel %vm1286_vm4, %v1614_v32, %v1616_v37 }
 0x19b   :  { %v5867_v39 = vpop.permute.xlu1 %919  ;;  %v5869_v22 = vpop.permute.xlu0 %874 }
 0x19c   :  { %8104 = vst [vmem:[#allocation55_spill] sm:$0xff] %v5867_v39  ;;  %v1661_v39 = vrot.slane %v5890_v2, 2  ;;  %v1693_v2 = vmul.f32 %v5448_v51, %v5028_v63 }
 0x19d   :  { %1620 = vrot.lane.b32.xlu1 %v1612_v4, %s8036_s9  ;;  %1530 = vrot.lane.b32.xlu0 %v1523_v56, %s8040_s23  ;;  %v1658_v4 = vrot.slane %v1645_v9, 2  ;;  %v1643_v56 = vmul.f32 %v5392_v35, %v5016_v54  ;;  %v1691_v9 = vmul.f32 %v5448_v51, %v5023_v60  ;;  %s8245_s23 = smov 119  }
 0x19f   :  { %v5881_v31 = vpop.permute.xlu1 %878  ;;  %v5883_v18 = vpop.permute.xlu0 %876  ;;  %v1659_v0 = vsel %vm1286_vm4, %v1656_v29, %v1658_v4  ;;  %v1655_v20 = vrot.slane %v1643_v56, 2  ;;  %v1703_v56 = vrot.slane %v1691_v9, 2 }
 0x1a0   :  { %8105 = vst [vmem:[#allocation56_spill] sm:$0xff] %v5881_v31  ;;  %8106 = vst [vmem:[#allocation57_spill] sm:$0xff] %v5883_v18  ;;  %v1570_v31 = vsel %vm1286_vm4, %v1567_v58, %v1569_v28  ;;  %v1660_v18 = vrot.slane %v1646_v34, 2 }
 0x1a1   :  { %1622 = vrot.lane.b32.xlu1 %v1615_v7, %s8036_s9  ;;  %1618 = vrot.lane.b32.xlu0 %v1610_v26, %s8036_s9  ;;  %v1692_v7 = vmul.f32 %v5448_v51, %v5252_v44  ;;  %v1694_v26 = vmul.f32 %v5448_v51, %v5040_v8  ;;  %v1657_v4 = vsel %vm1286_vm4, %v1655_v20, %v1656_v29 }
 0x1a2   :  { %v1662_v34 = vsel %vm1286_vm4, %v1660_v18, %v1661_v39  ;;  %v1648_v29 = vmul.f32 %v5392_v35, %v5287_v5  ;;  %v1740_v35 = vmul.f32 %v5460_v52, %v5028_v63 }
 0x1a3   :  { %v5897_v59 = vpop.permute.xlu1 %966  ;;  %v5899_v42 = vpop.permute.xlu0 %921 }
 0x1a4   :  { %8107 = vst [vmem:[#allocation58_spill] sm:$0xff] %v5897_v59  ;;  %v1705_v59 = vrot.slane %v1692_v7, 2  ;;  %v1738_v7 = vmul.f32 %v5460_v52, %v5023_v60  ;;  %v1663_v37 = vrot.slane %v1648_v29, 2 }
 0x1a5   :  { %1667 = vrot.lane.b32.xlu1 %v1659_v0, %s8034_s28  ;;  %1577 = vrot.lane.b32.xlu0 %v1570_v31, %s8038_s25  ;;  %v1690_v31 = vmul.f32 %v5448_v51, %v5016_v54 }
 0x1a6   :  { %v1706_v20 = vsel %vm1286_vm4, %v1703_v56, %v1705_v59  ;;  %v1741_v59 = vmul.f32 %v5460_v52, %v5040_v8 }
 0x1a7   :  { %v5912_v58 = vpop.permute.xlu1 %925  ;;  %v5914_v28 = vpop.permute.xlu0 %923  ;;  %v1702_v9 = vrot.slane %v1690_v31, 2 }
 0x1a8   :  { %8108 = vst [vmem:[#allocation59_spill] sm:$0xff] %v5912_v58  ;;  %8109 = vst [vmem:[#allocation60_spill] sm:$0xff] %v5914_v28  ;;  %v1707_v58 = vrot.slane %v1693_v2, 2  ;;  %v1708_v28 = vrot.slane %v1694_v26, 2  ;;  %v1737_v2 = vmul.f32 %v5460_v52, %v5016_v54 }
 0x1a9   :  { %1669 = vrot.lane.b32.xlu1 %v1662_v34, %s8034_s28  ;;  %1665 = vrot.lane.b32.xlu0 %v1657_v4, %s8034_s28  ;;  %v1739_v34 = vmul.f32 %v5460_v52, %v5252_v44  ;;  %v1704_v31 = vsel %vm1286_vm4, %v1702_v9, %v1703_v56  ;;  %v1664_v56 = vsel %vm1286_vm4, %v1661_v39, %v1663_v37 }
 0x1aa   :  { %v1709_v26 = vsel %vm1286_vm4, %v1707_v58, %v1708_v28  ;;  %v1785_v9 = vmul.f32 %v5518_v49, %v5023_v60  ;;  %v1787_v39 = vmul.f32 %v5518_v49, %v5028_v63 }
 0x1ab   :  { %v5926_v0 = vpop.permute.xlu1 %1013  ;;  %v5928_v18 = vpop.permute.xlu0 %968 }
 0x1ac   :  { %8110 = vst [vmem:[#allocation61_spill] sm:$0xff] %v5926_v0  ;;  %8111 = vst [vmem:[#allocation62_spill] sm:$0xff] %v5928_v18  ;;  %v1755_v0 = vrot.slane %v1741_v59, 2  ;;  %v1749_v18 = vrot.slane %v1737_v2, 2  ;;  %v1710_v2 = vrot.slane %v1695_v53, 2  ;;  %v1797_v37 = vrot.slane %v1785_v9, 2 }
 0x1ad   :  { %1714 = vrot.lane.b32.xlu1 %v1706_v20, %s8032_s18  ;;  %1624 = vrot.lane.b32.xlu0 %v1617_v48, %s8036_s9  ;;  %v1750_v20 = vrot.slane %v1738_v7, 2  ;;  %v1752_v48 = vrot.slane %v1739_v34, 2  ;;  %v1786_v7 = vmul.f32 %v5518_v49, %v5252_v44  ;;  %s8223_s9 = smov 13  }
 0x1ae   :  { %v1711_v53 = vsel %vm1286_vm4, %v1708_v28, %v1710_v2 }
 0x1af   :  { %v5940_v4 = vpop.permute.xlu1 %972  ;;  %v5942_v32 = vpop.permute.xlu0 %970  ;;  %v1753_v58 = vsel %vm1286_vm4, %v1750_v20, %v1752_v48  ;;  %v1751_v59 = vsel %vm1286_vm4, %v1749_v18, %v1750_v20  ;;  %v1784_v48 = vmul.f32 %v5518_v49, %v5016_v54  ;;  %v1832_v18 = vmul.f32 %v5532_v61, %v5023_v60 }
 0x1b0   :  { %8112 = vst [vmem:[#allocation63_spill] sm:$0xff] %v5940_v4  ;;  %8113 = vst [vmem:[#allocation64_spill] sm:$0xff] %v5942_v32  ;;  %v1754_v32 = vrot.slane %v1740_v35, 2  ;;  %v1833_v20 = vmul.f32 %v5532_v61, %v5252_v44 }
 0x1b1   :  { %1716 = vrot.lane.b32.xlu1 %v1709_v26, %s8032_s18  ;;  %1712 = vrot.lane.b32.xlu0 %v1704_v31, %s8032_s18  ;;  %v1799_v26 = vrot.slane %v1786_v7, 2  ;;  %v1788_v31 = vmul.f32 %v5518_v49, %v5040_v8  ;;  %v1801_v7 = vrot.slane %v1787_v39, 2  ;;  %v1844_v2 = vrot.slane %v1832_v18, 2 }
 0x1b2   :  { %v1756_v51 = vsel %vm1286_vm4, %v1754_v32, %v1755_v0 }
 0x1b3   :  { %v5954_v29 = vpop.permute.xlu1 %1060  ;;  %v5956_v4 = vpop.permute.xlu0 %1015  ;;  %v1800_v9 = vsel %vm1286_vm4, %v1797_v37, %v1799_v26  ;;  %v1835_v26 = vmul.f32 %v5532_v61, %v5040_v8 }
 0x1b4   :  { %8114 = vst [vmem:[#allocation65_spill] sm:$0xff] %v5954_v29  ;;  %v1834_v29 = vmul.f32 %v5532_v61, %v5028_v63 }
 0x1b5   :  { %1761 = vrot.lane.b32.xlu1 %v1753_v58, %s8030_s30  ;;  %1671 = vrot.lane.b32.xlu0 %v1664_v56, %s8034_s28  ;;  %v1742_v56 = vmul.f32 %v5460_v52, %v5287_v5  ;;  %s8243_s28 = smov 121  }
 0x1b7   :  { %v5968_v34 = vpop.permute.xlu1 %1019  ;;  %v5970_v35 = vpop.permute.xlu0 %1017 }
 0x1b8   :  { %8115 = vst [vmem:[#allocation66_spill] sm:$0xff] %v5968_v34  ;;  %8116 = vst [vmem:[#allocation67_spill] sm:$0xff] %v5970_v35  ;;  %v1757_v35 = vrot.slane %v1742_v56, 2  ;;  %v1848_v56 = vrot.slane %v1834_v29, 2  ;;  %v1882_v29 = vmul.f32 %v5586_v45, %v5040_v8 }
 0x1b9   :  { %1763 = vrot.lane.b32.xlu1 %v1756_v51, %s8030_s30  ;;  %1759 = vrot.lane.b32.xlu0 %v1751_v59, %s8030_s30  ;;  %v1802_v51 = vrot.slane %v1788_v31, 2  ;;  %v1796_v59 = vrot.slane %v1784_v48, 2  ;;  %v1831_v31 = vmul.f32 %v5532_v61, %v5016_v54 }
 0x1bb   :  { %v5982_v58 = vpop.permute.xlu1 %1107  ;;  %v5984_v32 = vpop.permute.xlu0 %1062  ;;  %v1803_v52 = vsel %vm1286_vm4, %v1801_v7, %v1802_v51  ;;  %v1798_v39 = vsel %vm1286_vm4, %v1796_v59, %v1797_v37  ;;  %v1789_v37 = vmul.f32 %v5518_v49, %v5287_v5  ;;  %v1843_v7 = vrot.slane %v1831_v31, 2 }
 0x1bc   :  { %8117 = vst [vmem:[#allocation68_spill] sm:$0xff] %v5982_v58  ;;  %v1846_v58 = vrot.slane %v1833_v20, 2  ;;  %v1758_v20 = vsel %vm1286_vm4, %v1755_v0, %v1757_v35  ;;  %v1879_v59 = vmul.f32 %v5586_v45, %v5023_v60  ;;  %v1881_v49 = vmul.f32 %v5586_v45, %v5028_v63 }
 0x1bd   :  { %1808 = vrot.lane.b32.xlu1 %v1800_v9, %s8015_s12  ;;  %1718 = vrot.lane.b32.xlu0 %v1711_v53, %s8032_s18  ;;  %v1849_v9 = vrot.slane %v1835_v26, 2  ;;  %v1804_v0 = vrot.slane %v1789_v37, 2  ;;  %v1878_v35 = vmul.f32 %v5586_v45, %v5016_v54  ;;  %v1845_v31 = vsel %vm1286_vm4, %v1843_v7, %v1844_v2  ;;  %s8222_s18 = smov 11  }
 0x1be   :  { %v1847_v18 = vsel %vm1286_vm4, %v1844_v2, %v1846_v58  ;;  %v1926_v7 = vmul.f32 %v5632_v23, %v5023_v60 }
 0x1bf   :  { %v5996_v34 = vpop.permute.xlu1 %1066  ;;  %v5998_v28 = vpop.permute.xlu0 %1064  ;;  %v1850_v26 = vsel %vm1286_vm4, %v1848_v56, %v1849_v9  ;;  %v1805_v2 = vsel %vm1286_vm4, %v1802_v51, %v1804_v0  ;;  %v1928_v51 = vmul.f32 %v5632_v23, %v5028_v63 }
 0x1c0   :  { %8118 = vst [vmem:[#allocation69_spill] sm:$0xff] %v5996_v34  ;;  %8119 = vst [vmem:[#allocation70_spill] sm:$0xff] %v5998_v28  ;;  %v1890_v28 = vrot.slane %v1878_v35, 2  ;;  %v1938_v0 = vrot.slane %v1926_v7, 2 }
 0x1c1   :  { %1810 = vrot.lane.b32.xlu1 %v1803_v52, %s8015_s12  ;;  %1806 = vrot.lane.b32.xlu0 %v1798_v39, %s8015_s12  ;;  %v1880_v52 = vmul.f32 %v5586_v45, %v5252_v44 }
 0x1c3   :  { %v6010_v48 = vpop.permute.xlu1 %1154  ;;  %v6012_v53 = vpop.permute.xlu0 %1109 }
 0x1c4   :  { %8120 = vst [vmem:[#allocation71_spill] sm:$0xff] %v6010_v48  ;;  %v1896_v48 = vrot.slane %v1882_v29, 2 }
 0x1c5   :  { %1855 = vrot.lane.b32.xlu1 %v1847_v18, %s8011_s14  ;;  %1765 = vrot.lane.b32.xlu0 %v1758_v20, %s8030_s30  ;;  %v1891_v18 = vrot.slane %v1879_v59, 2  ;;  %v1893_v20 = vrot.slane %v1880_v52, 2  ;;  %v1927_v59 = vmul.f32 %v5632_v23, %v5252_v44  ;;  %s8221_s30 = smov 9  }
 0x1c7   :  { %v6024_v39 = vpop.permute.xlu1 %1271  ;;  %v6026_v58 = vpop.permute.xlu0 %1111  ;;  %v1894_v56 = vsel %vm1286_vm4, %v1891_v18, %v1893_v20  ;;  %v1892_v29 = vsel %vm1286_vm4, %v1890_v28, %v1891_v18  ;;  %v1925_v20 = vmul.f32 %v5632_v23, %v5016_v54 }
 0x1c8   :  { %8121 = vst [vmem:[#allocation72_spill] sm:$0xff] %v6024_v39  ;;  %8122 = vst [vmem:[#allocation73_spill] sm:$0xff] %v6026_v58  ;;  %v1895_v58 = vrot.slane %v1881_v49, 2  ;;  %v1836_v39 = vmul.f32 %v5532_v61, %v5287_v5 }
 0x1c9   :  { %1857 = vrot.lane.b32.xlu1 %v1850_v26, %s8011_s14  ;;  %1853 = vrot.lane.b32.xlu0 %v1845_v31, %s8011_s14  ;;  %v1940_v26 = vrot.slane %v1927_v59, 2  ;;  %v1929_v31 = vmul.f32 %v5632_v23, %v5040_v8  ;;  %v1937_v59 = vrot.slane %v1925_v20, 2 }
 0x1ca   :  { %v1897_v61 = vsel %vm1286_vm4, %v1895_v58, %v1896_v48  ;;  %v1851_v35 = vrot.slane %v1836_v39, 2  ;;  %v1883_v39 = vmul.f32 %v5586_v45, %v5287_v5  ;;  %v1930_v45 = vmul.f32 %v5632_v23, %v5287_v5 }
 0x1cb   :  { %v6038_v37 = vpop.permute.xlu1 %1158  ;;  %v6040_v34 = vpop.permute.xlu0 %1156  ;;  %v1941_v18 = vsel %vm1286_vm4, %v1938_v0, %v1940_v26  ;;  %v1943_v7 = vrot.slane %v1929_v31, 2 }
 0x1cc   :  { %v1852_v28 = vsel %vm1286_vm4, %v1849_v9, %v1851_v35  ;;  %v1939_v9 = vsel %vm1286_vm4, %v1937_v59, %v1938_v0  ;;  %v1898_v35 = vrot.slane %v1883_v39, 2  ;;  %v1945_v20 = vrot.slane %v1930_v45, 2  ;;  %v23_v59 = vld [vmem:[%s7996_s3] sm:$0xff] }
 0x1cd   :  { %1902 = vrot.lane.b32.xlu1 %v1894_v56, %s8009_s24  ;;  %1812 = vrot.lane.b32.xlu0 %v1805_v2, %s8015_s12  ;;  %v1942_v2 = vrot.slane %v1928_v51, 2  ;;  %s8244_s12 = smov 120  }
 0x1ce   :  { %v1899_v31 = vsel %vm1286_vm4, %v1896_v48, %v1898_v35  ;;  %v1946_v39 = vsel %vm1286_vm4, %v1943_v7, %v1945_v20  ;;  %v95_v35 = vmul.f32 %v5192_v15, %v5016_v54 }
 0x1cf   :  { %v6052_v52 = vpop.permute.xlu1 %1203  ;;  %v6054_v49 = vpop.permute.xlu0 %1113 }
 0x1d0   :  { %8123 = vst [vmem:[#allocation74_spill] sm:$0xff] %v6054_v49  ;;  %v1944_v49 = vsel %vm1286_vm4, %v1942_v2, %v1943_v7  ;;  %v24_v7 = vld [vmem:[%s7996_s3 + $0x8] sm:$0xff] }
 0x1d1   :  { %1904 = vrot.lane.b32.xlu1 %v1897_v61, %s8009_s24  ;;  %1900 = vrot.lane.b32.xlu0 %v1892_v29, %s8009_s24  ;;  %v6121_v20 = vpack.c.bf16 %v24_v7, %v23_v59 }
 0x1d3   :  { %v6066_v56 = vpop.permute.xlu1 %1205  ;;  %v6068_v58 = vpop.permute.xlu0 %1201  ;;  %8126 = vst [vmem:[#allocation77_spill] sm:$0xff] %v6121_v20 }
 0x1d5   :  { %1949 = vrot.lane.b32.xlu1 %v1941_v18, %s8013_s13  ;;  %1859 = vrot.lane.b32.xlu0 %v1852_v28, %s8011_s14  ;;  %v96_v18 = vmul.f32 %v5192_v15, %v5023_v60  ;;  %s8248_s14 = smov 116  }
 0x1d7   :  { %v6076_v61 = vpop.permute.xlu1 %1250  ;;  %v6078_v29 = vpop.permute.xlu0 %1160  ;;  %v133_v45 = vadd.f32 %v5258_v30, %v96_v18  ;;  %v132_v30 = vadd.f32 %v5245_v40, %v95_v35  ;;  %v27_v40 = vld [vmem:[%s7996_s3 + $0x20] sm:$0xff] }
 0x1d9   :  { %1951 = vrot.lane.b32.xlu1 %v1944_v49, %s8013_s13  ;;  %1947 = vrot.lane.b32.xlu0 %v1939_v9, %s8013_s13  ;;  %v25_v9 = vld [vmem:[%s7996_s3 + $0x10] sm:$0xff]  ;;  %v166_v18 = vadd.f32 %v5293_v10, %v133_v45  ;;  %v28_v10 = vld [vmem:[%s7996_s3 + $0x28] sm:$0xff]  ;;  %v165_v35 = vadd.f32 %v5256_v25, %v132_v30 }
 0x1da   :  { %v29_v25 = vld [vmem:[%s7996_s3 + $0x30] sm:$0xff] }
 0x1db   :  { %v6086_v51 = vpop.permute.xlu1 %1252  ;;  %v6088_v26 = vpop.permute.xlu0 %1248  ;;  %v199_v45 = vadd.f32 %v5291_v6, %v166_v18  ;;  %v30_v6 = vld [vmem:[%s7996_s3 + $0x38] sm:$0xff] }
 0x1dd   :  { %1906 = vrot.lane.b32.xlu0 %v1899_v31, %s8009_s24  ;;  %v8017_v31 = vmov 0.0|0.0   ;;  %v232_v30 = vadd.f32 %v5350_v21, %v199_v45 }
 0x1de   :  { %4672 = vmatprep.subr.bf16.mxu0 %v8017_v31  ;;  %4684 = vmatprep.subr.bf16.mxu1 %v8017_v31 }
 0x1df   :  { %v6092_v28 = vpop.permute.xlu1 %1336  ;;  %v6094_v0 = vpop.permute.xlu0 %1207  ;;  %4674 = vmatpush3.bf16.msra.mxu0 %v6121_v20  ;;  %4686 = vmatpush3.bf16.msra.mxu1 %v6121_v20 }
 0x1e1   :  { %1953 = vrot.lane.b32.xlu0 %v1946_v39, %s8013_s13  ;;  %v26_v39 = vld [vmem:[%s7996_s3 + $0x18] sm:$0xff]  ;;  %s8219_s13 = smov 7   ;;  %s8249_s3 = smov 115  }
 0x1e2   :  { %v6135_v59 = vpack.c.bf16 %v26_v39, %v25_v9  ;;  %v97_v9 = vmul.f32 %v5192_v15, %v5028_v63  ;;  %v198_v39 = vadd.f32 %v5322_v47, %v165_v35 }
 0x1e3   :  { %v6098_v23 = vpop.permute.xlu1 %1340  ;;  %v6100_v49 = vpop.permute.xlu0 %1254 }
 0x1e4   :  { %8124 = vst [vmem:[#allocation75_spill] sm:$0xff] %v6098_v23  ;;  %8125 = vst [vmem:[#allocation76_spill] sm:$0xff] %v6100_v49  ;;  %v8019_v23 = vmov 0.0   ;;  %v8129_v49 = vmov 0.0|0.0   ;;  %v134_v47 = vadd.f32 %v5274_v57, %v97_v9  ;;  %v231_v18 = vadd.f32 %v5320_v46, %v198_v39 }
 0x1e5   :  { %4612 = vmatprep.mubr.msk.f32.mxu0 %vm4817_vm5, %v8019_v23  ;;  %4631 = vmatprep.mubr.msk.f32.mxu1 %vm4817_vm5, %v8019_v23  ;;  %8127 = vst [vmem:[#allocation78_spill] sm:$0xff] %v6135_v59  ;;  %v6156_v23 = vpack.c.bf16 %v28_v10, %v27_v40  ;;  %v6175_v40 = vpack.c.bf16 %v30_v6, %v29_v25 }
 0x1e6   :  { %4675 = vmatprep.subr.bf16.mxu0 %v8129_v49  ;;  %4687 = vmatprep.subr.bf16.mxu1 %v8129_v49  ;;  %v98_v10 = vmul.f32 %v5192_v15, %v5040_v8  ;;  %v167_v57 = vadd.f32 %v5272_v55, %v134_v47  ;;  %v265_v46 = vadd.f32 %v5348_v27, %v232_v30  ;;  %v8135_v47 = vld [vmem:[#allocation6_spill] sm:$0xff] }
 0x1e7   :  { %v6104_v2 = vpop.permute.xlu1 %1385  ;;  %v6106_v48 = vpop.permute.xlu0 %1338  ;;  %4677 = vmatpush3.bf16.msra.mxu0 %v6135_v59  ;;  %4689 = vmatpush3.bf16.msra.mxu1 %v6135_v59  ;;  %8130 = vst [vmem:[#allocation80_spill] sm:$0xff] %v6156_v23  ;;  %8132 = vst [vmem:[#allocation82_spill] sm:$0xff] %v6175_v40  ;;  %v264_v21 = vadd.f32 %v5378_v17, %v231_v18 }
 0x1e8   :  { %4678 = vmatprep.subr.bf16.mxu0 %v8129_v49  ;;  %4690 = vmatprep.subr.bf16.mxu1 %v8129_v49  ;;  %v135_v9 = vadd.f32 %v5308_v38, %v98_v10  ;;  %v200_v45 = vadd.f32 %v5336_v43, %v167_v57  ;;  %v298_v15 = vadd.f32 %v5406_v19, %v265_v46  ;;  %v8134_v19 = vld [vmem:[#allocation14_spill] sm:$0xff]  ;;  %v8137_v57 = vld [vmem:[#allocation7_spill] sm:$0xff] }
 0x1e9   :  { %v297_v55 = vadd.f32 %v5376_v16, %v264_v21  ;;  %v8139_v21 = vld [vmem:[#allocation15_spill] sm:$0xff] }
 0x1ea   :  { %v331_v38 = vadd.f32 %v5418_v41, %v298_v15  ;;  %v168_v43 = vadd.f32 %v5306_v24, %v135_v9  ;;  %v233_v27 = vadd.f32 %v5334_v3, %v200_v45  ;;  %v8140_v15 = vld [vmem:[#allocation8_spill] sm:$0xff]  ;;  %v8141_v9 = vld [vmem:[#allocation18_spill] sm:$0xff] }
 0x1eb   :  { %v6137_v7 = vpop.permute.xlu1 %1387  ;;  %v6139_v31 = vpop.permute.xlu0 %1383  ;;  %4680 = vmatpush3.bf16.msra.mxu0 %v6156_v23  ;;  %4692 = vmatpush3.bf16.msra.mxu1 %v6156_v23  ;;  %v330_v17 = vadd.f32 %v5434_v33, %v297_v55  ;;  %v8142_v45 = vld [vmem:[#allocation22_spill] sm:$0xff]  ;;  %v8143_v55 = vld [vmem:[#allocation5_spill] sm:$0xff] }
 0x1ec   :  { %8128 = vst [vmem:[#allocation79_spill] sm:$0xff] %v6137_v7  ;;  %4681 = vmatprep.subr.bf16.mxu0 %v8129_v49  ;;  %4693 = vmatprep.subr.bf16.mxu1 %v8129_v49  ;;  %v364_v6 = vadd.f32 %v8134_v19, %v331_v38  ;;  %v201_v30 = vadd.f32 %v8135_v47, %v168_v43  ;;  %v8145_v47 = vld [vmem:[#allocation12_spill] sm:$0xff] }
 0x1ed   :  { %v266_v46 = vadd.f32 %v8137_v57, %v233_v27  ;;  %v8147_v57 = vld [vmem:[#allocation23_spill] sm:$0xff] }
 0x1ee   :  { %v397_v41 = vadd.f32 %v8139_v21, %v364_v6  ;;  %v234_v38 = vadd.f32 %v8143_v55, %v201_v30  ;;  %v8149_v21 = vld [vmem:[#allocation13_spill] sm:$0xff]  ;;  %v8152_v55 = vld [vmem:[#allocation10_spill] sm:$0xff] }
 0x1ef   :  { %v6158_v20 = vpop.permute.xlu1 %1432  ;;  %v6160_v7 = vpop.permute.xlu0 %1342  ;;  %4683 = vmatpush3.bf16.msra.mxu0 %v6175_v40  ;;  %4695 = vmatpush3.bf16.msra.mxu1 %v6175_v40  ;;  %v8138_v40 = vld [vmem:[#allocation11_spill] sm:$0xff]  ;;  %v299_v24 = vadd.f32 %v8140_v15, %v266_v46  ;;  %v576_v46 = vmul.f32 %v5601_v13, %v5023_v60 }
 0x1f0   :  { %8131 = vst [vmem:[#allocation81_spill] sm:$0xff] %v6160_v7  ;;  %4696 = vmatprep.subr.bf16.mxu0 %v8129_v49  ;;  %4708 = vmatprep.subr.bf16.mxu1 %v8129_v49  ;;  %v363_v16 = vadd.f32 %v8138_v40, %v330_v17  ;;  %v430_v33 = vadd.f32 %v8142_v45, %v397_v41  ;;  %v8146_v49 = vld [vmem:[#allocation19_spill] sm:$0xff]  ;;  %v8148_v17 = vld [vmem:[#allocation9_spill] sm:$0xff]  ;;  %v8150_v41 = vld [vmem:[#allocation26_spill] sm:$0xff] }
 0x1f1   :  { %v332_v23 = vadd.f32 %v8145_v47, %v299_v24  ;;  %v267_v6 = vadd.f32 %v8148_v17, %v234_v38  ;;  %v8155_v38 = vld [vmem:[#allocation20_spill] sm:$0xff] }
 0x1f2   :  { %v396_v3 = vadd.f32 %v8141_v9, %v363_v16  ;;  %v463_v40 = vadd.f32 %v8147_v57, %v430_v33  ;;  %v577_v16 = vmul.f32 %v5601_v13, %v5252_v44  ;;  %v8151_v9 = vld [vmem:[#allocation30_spill] sm:$0xff]  ;;  %v8156_v57 = vld [vmem:[#allocation27_spill] sm:$0xff] }
 0x1f3   :  { %v6179_v35 = vpop.permute.xlu1 %1434  ;;  %v6181_v59 = vpop.permute.xlu0 %1430  ;;  %v365_v30 = vadd.f32 %v8149_v21, %v332_v23  ;;  %v300_v24 = vadd.f32 %v8152_v55, %v267_v6  ;;  %v8157_v23 = vld [vmem:[#allocation16_spill] sm:$0xff]  ;;  %v8159_v6 = vld [vmem:[#allocation31_spill] sm:$0xff] }
 0x1f4   :  { %v429_v27 = vadd.f32 %v8146_v49, %v396_v3  ;;  %v496_v45 = vadd.f32 %v8151_v9, %v463_v40  ;;  %v575_v49 = vmul.f32 %v5601_v13, %v5016_v54  ;;  %v8158_v40 = vld [vmem:[#allocation21_spill] sm:$0xff] }
 0x1f5   :  { %v398_v47 = vadd.f32 %v8155_v38, %v365_v30  ;;  %v333_v21 = vadd.f32 %v8157_v23, %v300_v24  ;;  %v8164_v24 = vld [vmem:[#allocation24_spill] sm:$0xff] }
 0x1f6   :  { %v462_v15 = vadd.f32 %v8150_v41, %v429_v27  ;;  %v589_v27 = vrot.slane %v576_v46, 1  ;;  %v591_v41 = vrot.slane %v577_v16, 1  ;;  %v588_v7 = vrot.slane %v575_v49, 1 }
 0x1f7   :  { %v6193_v39 = vpop.permute.xlu1 %1479  ;;  %v6195_v25 = vpop.permute.xlu0 %1389  ;;  %v431_v9 = vadd.f32 %v8158_v40, %v398_v47  ;;  %v579_v16 = vmul.f32 %v5601_v13, %v5040_v8 }
 0x1f8   :  { %8133 = vst [vmem:[#allocation83_spill] sm:$0xff] %v6195_v25  ;;  %v495_v17 = vadd.f32 %v8156_v57, %v462_v15  ;;  %v8162_v15 = vld [vmem:[#allocation28_spill] sm:$0xff]  ;;  %v592_v47 = vsel %vm587_vm3, %v589_v27, %v591_v41  ;;  %v8166_v57 = vld [vmem:[#allocation25_spill] sm:$0xff]  ;;  %v590_v23 = vsel %vm587_vm3, %v588_v7, %v589_v27  ;;  %v580_v7 = vmul.f32 %v5601_v13, %v5287_v5 }
 0x1f9   :  { %v464_v38 = vadd.f32 %v8162_v15, %v431_v9  ;;  %v594_v41 = vrot.slane %v579_v16, 1  ;;  %v8171_v27 = vld [vmem:[#allocation32_spill] sm:$0xff] }
 0x1fa   :  { %v528_v55 = vadd.f32 %v8159_v6, %v495_v17  ;;  %v8167_v6 = vld [vmem:[#allocation29_spill] sm:$0xff] }
 0x1fb   :  { %v6206_v18 = vpop.permute.xlu1 %1481  ;;  %v6208_v10 = vpop.permute.xlu0 %1477 }
 0x1fc   :  { %8136 = vst [vmem:[#allocation14_spill] sm:$0xff] %v6206_v18  ;;  %v8160_v18 = vld [vmem:[#allocation17_spill] sm:$0xff] }
 0x1ff   :  { %v6217_v19 = vpop.permute.xlu1 %1526  ;;  %v6219_v43 = vpop.permute.xlu0 %1436 }
 0x200   :  { %8144 = vst [vmem:[#allocation6_spill] sm:$0xff] %v6219_v43  ;;  %v529_v43 = vadd.f32 %v5661_v14, %v496_v45  ;;  %v8163_v14 = vld [vmem:[#allocation34_spill] sm:$0xff] }
 0x201   :  { %v561_v45 = vadd.f32 %v8163_v14, %v528_v55  ;;  %v8168_v14 = vld [vmem:[#allocation37_spill] sm:$0xff] }
 0x202   :  { %v562_v25 = vadd.f32 %v5691_v50, %v529_v43  ;;  %v578_v50 = vmul.f32 %v5601_v13, %v5028_v63 }
 0x203   :  { %v6235_v3 = vpop.permute.xlu1 %1528  ;;  %v6237_v33 = vpop.permute.xlu0 %1524  ;;  %v602_v9 = vadd.f32 %v590_v23, %v561_v45  ;;  %v8172_v45 = vld [vmem:[#allocation35_spill] sm:$0xff] }
 0x204   :  { %8153 = vst [vmem:[#allocation7_spill] sm:$0xff] %v6235_v3  ;;  %8154 = vst [vmem:[#allocation11_spill] sm:$0xff] %v6237_v33  ;;  %v366_v3 = vadd.f32 %v8160_v18, %v333_v21  ;;  %v8165_v18 = vld [vmem:[#allocation33_spill] sm:$0xff]  ;;  %v603_v49 = vadd.f32 %v592_v47, %v562_v25  ;;  %v593_v15 = vrot.slane %v578_v50, 1  ;;  %v8170_v25 = vld [vmem:[#allocation40_spill] sm:$0xff] }
 0x205   :  { %v497_v43 = vadd.f32 %v8165_v18, %v464_v38  ;;  %v649_v47 = vadd.f32 %v8170_v25, %v602_v9  ;;  %v8176_v25 = vld [vmem:[#allocation43_spill] sm:$0xff] }
 0x206   :  { %v399_v46 = vadd.f32 %v8164_v24, %v366_v3  ;;  %v650_v24 = vadd.f32 %v8168_v14, %v603_v49  ;;  %v595_v50 = vsel %vm587_vm3, %v593_v15, %v594_v41 }
 0x207   :  { %v6247_v33 = vpop.permute.xlu1 %1573  ;;  %v6249_v30 = vpop.permute.xlu0 %1483  ;;  %v530_v3 = vadd.f32 %v5675_v36, %v497_v43  ;;  %v596_v43 = vrot.slane %v580_v7, 1  ;;  %v8177_v7 = vld [vmem:[#allocation45_spill] sm:$0xff] }
 0x208   :  { %8161 = vst [vmem:[#allocation15_spill] sm:$0xff] %v6249_v30  ;;  %v432_v17 = vadd.f32 %v8166_v57, %v399_v46  ;;  %v8169_v30 = vld [vmem:[#allocation38_spill] sm:$0xff]  ;;  %v697_v36 = vadd.f32 %v5751_v11, %v650_v24 }
 0x209   :  { %v563_v38 = vadd.f32 %v8169_v30, %v530_v3  ;;  %v8173_v30 = vld [vmem:[#allocation39_spill] sm:$0xff]  ;;  %v8174_v3 = vld [vmem:[#allocation36_spill] sm:$0xff]  ;;  %v597_v15 = vsel %vm587_vm3, %v594_v41, %v596_v43 }
 0x20a   :  { %v465_v55 = vadd.f32 %v8167_v6, %v432_v17  ;;  %v696_v17 = vadd.f32 %v8173_v30, %v649_v47  ;;  %v744_v23 = vadd.f32 %v5781_v12, %v697_v36  ;;  %v8182_v41 = vld [vmem:[#allocation51_spill] sm:$0xff] }
 0x20b   :  { %v6262_v21 = vpop.permute.xlu1 %1575  ;;  %v6264_v40 = vpop.permute.xlu0 %1571  ;;  %v604_v49 = vadd.f32 %v595_v50, %v563_v38 }
 0x20c   :  { %v498_v46 = vadd.f32 %v8171_v27, %v465_v55  ;;  %v8175_v55 = vld [vmem:[#allocation42_spill] sm:$0xff]  ;;  %v743_v11 = vadd.f32 %v8176_v25, %v696_v17  ;;  %v791_v24 = vadd.f32 %v5812_v62, %v744_v23  ;;  %v8181_v62 = vld [vmem:[#allocation41_spill] sm:$0xff] }
 0x20d   :  { %v651_v14 = vadd.f32 %v8175_v55, %v604_v49  ;;  %v8178_v27 = vld [vmem:[#allocation46_spill] sm:$0xff]  ;;  %v8180_v49 = vld [vmem:[#allocation49_spill] sm:$0xff] }
 0x20e   :  { %v531_v16 = vadd.f32 %v8172_v45, %v498_v46  ;;  %v790_v47 = vadd.f32 %v8178_v27, %v743_v11  ;;  %v838_v12 = vadd.f32 %v5841_v1, %v791_v24  ;;  %v8184_v1 = vld [vmem:[#allocation44_spill] sm:$0xff]  ;;  %v8185_v24 = vld [vmem:[#allocation54_spill] sm:$0xff] }
 0x20f   :  { %v6274_v18 = vpop.permute.xlu1 %1620  ;;  %v6276_v57 = vpop.permute.xlu0 %1530  ;;  %v698_v38 = vadd.f32 %v8177_v7, %v651_v14  ;;  %v8186_v7 = vld [vmem:[#allocation55_spill] sm:$0xff]  ;;  %v8187_v27 = vld [vmem:[#allocation62_spill] sm:$0xff] }
 0x210   :  { %v564_v13 = vadd.f32 %v8174_v3, %v531_v16  ;;  %v8179_v16 = vld [vmem:[#allocation48_spill] sm:$0xff]  ;;  %v837_v30 = vadd.f32 %v8180_v49, %v790_v47  ;;  %v885_v17 = vadd.f32 %v5869_v22, %v838_v12  ;;  %v8188_v47 = vld [vmem:[#allocation47_spill] sm:$0xff] }
 0x211   :  { %v745_v50 = vadd.f32 %v8179_v16, %v698_v38  ;;  %v8183_v3 = vld [vmem:[#allocation52_spill] sm:$0xff] }
 0x212   :  { %v605_v46 = vadd.f32 %v597_v15, %v564_v13  ;;  %v884_v55 = vadd.f32 %v8183_v3, %v837_v30  ;;  %v932_v14 = vadd.f32 %v5899_v42, %v885_v17  ;;  %v8191_v30 = vld [vmem:[#allocation50_spill] sm:$0xff]  ;;  %v8193_v3 = vld [vmem:[#allocation61_spill] sm:$0xff] }
 0x213   :  { %v6284_v9 = vpop.permute.xlu1 %1622  ;;  %v6286_v6 = vpop.permute.xlu0 %1618  ;;  %v792_v43 = vadd.f32 %v8182_v41, %v745_v50  ;;  %v8190_v50 = vld [vmem:[#allocation58_spill] sm:$0xff]  ;;  %v8192_v41 = vld [vmem:[#allocation60_spill] sm:$0xff] }
 0x214   :  { %v652_v23 = vadd.f32 %v8181_v62, %v605_v46  ;;  %v931_v38 = vadd.f32 %v8186_v7, %v884_v55  ;;  %v979_v22 = vadd.f32 %v8187_v27, %v932_v14  ;;  %v8189_v46 = vld [vmem:[#allocation57_spill] sm:$0xff]  ;;  %v8197_v27 = vld [vmem:[#allocation56_spill] sm:$0xff] }
 0x215   :  { %v839_v15 = vadd.f32 %v8185_v24, %v792_v43  ;;  %v8195_v24 = vld [vmem:[#allocation64_spill] sm:$0xff]  ;;  %v8196_v7 = vld [vmem:[#allocation65_spill] sm:$0xff] }
 0x216   :  { %v699_v13 = vadd.f32 %v8184_v1, %v652_v23  ;;  %v978_v49 = vadd.f32 %v8190_v50, %v931_v38  ;;  %v1026_v42 = vadd.f32 %v5956_v4, %v979_v22  ;;  %v8194_v1 = vld [vmem:[#allocation53_spill] sm:$0xff] }
 0x217   :  { %v6295_v36 = vpop.permute.xlu1 %1667  ;;  %v6297_v45 = vpop.permute.xlu0 %1577  ;;  %v886_v16 = vadd.f32 %v8189_v46, %v839_v15 }
 0x218   :  { %v746_v12 = vadd.f32 %v8188_v47, %v699_v13  ;;  %v1025_v55 = vadd.f32 %v8193_v3, %v978_v49  ;;  %v1073_v14 = vadd.f32 %v5984_v32, %v1026_v42  ;;  %v8198_v47 = vld [vmem:[#allocation72_spill] sm:$0xff]  ;;  %v8199_v32 = vld [vmem:[#allocation67_spill] sm:$0xff]  ;;  %v8202_v3 = vld [vmem:[#allocation70_spill] sm:$0xff] }
 0x219   :  { %v933_v43 = vadd.f32 %v8192_v41, %v886_v16  ;;  %v1276_v46 = vmul.f32 %v8198_v47, %v5252_v44  ;;  %v8200_v42 = vld [vmem:[#allocation68_spill] sm:$0xff]  ;;  %v8201_v41 = vld [vmem:[#allocation59_spill] sm:$0xff] }
 0x21a   :  { %v793_v17 = vadd.f32 %v8191_v30, %v746_v12  ;;  %v1072_v38 = vadd.f32 %v8196_v7, %v1025_v55  ;;  %v1120_v4 = vadd.f32 %v6012_v53, %v1073_v14  ;;  %v1275_v12 = vmul.f32 %v8198_v47, %v5023_v60  ;;  %v8203_v55 = vld [vmem:[#allocation71_spill] sm:$0xff] }
 0x21b   :  { %v6307_v25 = vpop.permute.xlu1 %1669  ;;  %v6309_v11 = vpop.permute.xlu0 %1665  ;;  %v980_v15 = vadd.f32 %v8195_v24, %v933_v43  ;;  %v1274_v43 = vmul.f32 %v8198_v47, %v5016_v54  ;;  %v1290_v7 = vrot.slane %v1276_v46, 2 }
 0x21c   :  { %v840_v13 = vadd.f32 %v8194_v1, %v793_v17  ;;  %v1119_v30 = vadd.f32 %v8200_v42, %v1072_v38  ;;  %v1167_v17 = vadd.f32 %v6040_v34, %v1120_v4  ;;  %v8204_v1 = vld [vmem:[#allocation63_spill] sm:$0xff]  ;;  %v1288_v24 = vrot.slane %v1275_v12, 2  ;;  %v8205_v34 = vld [vmem:[#allocation73_spill] sm:$0xff] }
 0x21d   :  { %v1027_v49 = vadd.f32 %v8199_v32, %v980_v15  ;;  %v1278_v12 = vmul.f32 %v8198_v47, %v5040_v8 }
 0x21e   :  { %v887_v22 = vadd.f32 %v8197_v27, %v840_v13  ;;  %v1166_v14 = vadd.f32 %v8203_v55, %v1119_v30  ;;  %v1214_v44 = vadd.f32 %v6052_v52, %v1167_v17  ;;  %v1277_v52 = vmul.f32 %v8198_v47, %v5028_v63  ;;  %v8207_v30 = vld [vmem:[#allocation69_spill] sm:$0xff] }
 0x21f   :  { %v6319_v62 = vpop.permute.xlu1 %1714  ;;  %v6321_v23 = vpop.permute.xlu0 %1624  ;;  %v1074_v60 = vadd.f32 %v8202_v3, %v1027_v49  ;;  %v1287_v49 = vrot.slane %v1274_v43, 2  ;;  %v8208_v3 = vld [vmem:[#allocation74_spill] sm:$0xff]  ;;  %v1293_v55 = vrot.slane %v1278_v12, 2 }
 0x220   :  { %v934_v53 = vadd.f32 %v8201_v41, %v887_v22  ;;  %v1213_v27 = vadd.f32 %v6068_v58, %v1166_v14  ;;  %v1261_v54 = vadd.f32 %v6076_v61, %v1214_v44  ;;  %v8206_v22 = vld [vmem:[#allocation66_spill] sm:$0xff]  ;;  %v1291_v41 = vsel %vm1286_vm4, %v1288_v24, %v1290_v7 }
 0x221   :  { %v1121_v4 = vadd.f32 %v8205_v34, %v1074_v60  ;;  %v1289_v60 = vsel %vm1286_vm4, %v1287_v49, %v1288_v24  ;;  %v1292_v8 = vrot.slane %v1277_v52, 2  ;;  %v1279_v44 = vmul.f32 %v8198_v47, %v5287_v5  ;;  %v8210_v5 = vld [vmem:[#allocation75_spill] sm:$0xff] }
 0x222   :  { %v981_v13 = vadd.f32 %v8204_v1, %v934_v53  ;;  %v1260_v42 = vadd.f32 %v6088_v26, %v1213_v27  ;;  %v1302_v43 = vadd.f32 %v1291_v41, %v1261_v54  ;;  %v8209_v54 = vld [vmem:[#allocation76_spill] sm:$0xff]  ;;  %v8211_v52 = vld [vmem:[#allocation79_spill] sm:$0xff] }
 0x223   :  { %v6335_v16 = vpop.permute.xlu1 %1716  ;;  %v6337_v50 = vpop.permute.xlu0 %1712  ;;  %v1168_v46 = vadd.f32 %v6038_v37, %v1121_v4  ;;  %v1294_v34 = vsel %vm1286_vm4, %v1292_v8, %v1293_v55  ;;  %v1295_v27 = vrot.slane %v1279_v44, 2  ;;  %v8217_v44 = vld [vmem:[#allocation6_spill] sm:$0xff] }
 0x224   :  { %v1028_v32 = vadd.f32 %v8206_v22, %v981_v13  ;;  %v1301_v26 = vadd.f32 %v1289_v60, %v1260_v42  ;;  %v1349_v14 = vadd.f32 %v6106_v48, %v1302_v43 }
 0x225   :  { %v1215_v53 = vadd.f32 %v6066_v56, %v1168_v46  ;;  %v1296_v12 = vsel %vm1286_vm4, %v1293_v55, %v1295_v27 }
 0x226   :  { %v1075_v17 = vadd.f32 %v8207_v30, %v1028_v32  ;;  %v1348_v24 = vadd.f32 %v6092_v28, %v1301_v26  ;;  %v8216_v26 = vld [vmem:[#allocation7_spill] sm:$0xff] }
 0x227   :  { %v6349_v15 = vpop.permute.xlu1 %1761  ;;  %v6351_v38 = vpop.permute.xlu0 %1671  ;;  %v1262_v37 = vadd.f32 %v6086_v51, %v1215_v53  ;;  %v1396_v51 = vadd.f32 %v6104_v2, %v1349_v14 }
 0x228   :  { %v1122_v63 = vadd.f32 %v8208_v3, %v1075_v17 }
 0x229   :  { %v1303_v4 = vadd.f32 %v1294_v34, %v1262_v37  ;;  %v1443_v49 = vadd.f32 %v6158_v20, %v1396_v51  ;;  %v8213_v20 = vld [vmem:[#allocation14_spill] sm:$0xff] }
 0x22a   :  { %v1169_v1 = vadd.f32 %v6078_v29, %v1122_v63  ;;  %v1395_v29 = vadd.f32 %v6139_v31, %v1348_v24  ;;  %v8212_v31 = vld [vmem:[#allocation81_spill] sm:$0xff]  ;;  %v8214_v63 = vld [vmem:[#allocation11_spill] sm:$0xff] }
 0x22b   :  { %v6365_v58 = vpop.permute.xlu1 %1763  ;;  %v6367_v61 = vpop.permute.xlu0 %1759  ;;  %v1350_v47 = vadd.f32 %v8210_v5, %v1303_v4  ;;  %v1490_v46 = vadd.f32 %v6193_v39, %v1443_v49  ;;  %v8218_v24 = vld [vmem:[#allocation15_spill] sm:$0xff] }
 0x22c   :  { %v1216_v56 = vadd.f32 %v6094_v0, %v1169_v1  ;;  %v1442_v28 = vadd.f32 %v6181_v59, %v1395_v29  ;;  %v8215_v59 = vld [vmem:[#allocation83_spill] sm:$0xff] }
 0x22d   :  { %v1397_v0 = vadd.f32 %v8211_v52, %v1350_v47  ;;  %v1537_v53 = vadd.f32 %v6217_v19, %v1490_v46 }
 0x22e   :  { %v1263_v48 = vadd.f32 %v8209_v54, %v1216_v56  ;;  %v1489_v41 = vadd.f32 %v6208_v10, %v1442_v28 }
 0x22f   :  { %v1809_v13 = vpop.permute.xlu1 %1808  ;;  %v6377_v7 = vpop.permute.xlu0 %1718  ;;  %v1444_v17 = vadd.f32 %v6179_v35, %v1397_v0  ;;  %v1584_v8 = vadd.f32 %v6247_v33, %v1537_v53 }
 0x230   :  { %v1304_v2 = vadd.f32 %v1296_v12, %v1263_v48  ;;  %v1536_v60 = vadd.f32 %v8214_v63, %v1489_v41 }
 0x231   :  { %v1491_v3 = vadd.f32 %v8213_v20, %v1444_v17  ;;  %v1631_v10 = vadd.f32 %v6274_v18, %v1584_v8 }
 0x232   :  { %v1351_v43 = vadd.f32 %v8212_v31, %v1304_v2  ;;  %v1583_v35 = vadd.f32 %v6264_v40, %v1536_v60 }
 0x233   :  { %v1811_v22 = vpop.permute.xlu1 %1810  ;;  %v1807_v32 = vpop.permute.xlu0 %1806  ;;  %v1538_v14 = vadd.f32 %v8216_v26, %v1491_v3  ;;  %v1678_v34 = vadd.f32 %v6295_v36, %v1631_v10 }
 0x234   :  { %v1398_v55 = vadd.f32 %v8215_v59, %v1351_v43  ;;  %v1630_v56 = vadd.f32 %v6286_v6, %v1583_v35 }
 0x235   :  { %v1585_v1 = vadd.f32 %v6262_v21, %v1538_v14  ;;  %v1725_v40 = vadd.f32 %v6319_v62, %v1678_v34 }
 0x236   :  { %v1445_v19 = vadd.f32 %v8217_v44, %v1398_v55  ;;  %v1677_v54 = vadd.f32 %v6309_v11, %v1630_v56 }
 0x237   :  { %v1856_v42 = vpop.permute.xlu1 %1855  ;;  %v1766_v30 = vpop.permute.xlu0 %1765  ;;  %v1632_v27 = vadd.f32 %v6284_v9, %v1585_v1  ;;  %v1772_v6 = vadd.f32 %v6349_v15, %v1725_v40 }
 0x238   :  { %v1492_v33 = vadd.f32 %v8218_v24, %v1445_v19  ;;  %v1724_v21 = vadd.f32 %v6337_v50, %v1677_v54 }
 0x239   :  { %v1679_v48 = vadd.f32 %v6307_v25, %v1632_v27  ;;  %v1819_v49 = vadd.f32 %v1809_v13, %v1772_v6  ;;  %v4471_v6 = vld [vmem:[%s7994_s1 + $0x31] ss:$0 sm:$0xff] }
 0x23a   :  { %v1539_v18 = vadd.f32 %v6276_v57, %v1492_v33  ;;  %v1771_v9 = vadd.f32 %v6367_v61, %v1724_v21  ;;  %v4475_v21 = vld [vmem:[%s7994_s1 + $0x33] ss:$0 sm:$0xff] }
 0x23b   :  { %v1858_v39 = vpop.permute.xlu1 %1857  ;;  %v1854_v37 = vpop.permute.xlu0 %1853  ;;  %v1726_v29 = vadd.f32 %v6335_v16, %v1679_v48  ;;  %v1866_v52 = vadd.f32 %v1856_v42, %v1819_v49  ;;  %v4481_v49 = vld [vmem:[%s7994_s1 + $0x36] ss:$0 sm:$0xff] }
 0x23c   :  { %v1586_v36 = vadd.f32 %v6297_v45, %v1539_v18  ;;  %v1818_v57 = vadd.f32 %v1807_v32, %v1771_v9  ;;  %v4487_v9 = vld [vmem:[%s7994_s1 + $0x39] ss:$0 sm:$0xff] }
 0x23d   :  { %v1773_v62 = vadd.f32 %v6365_v58, %v1726_v29  ;;  %v4477_v29 = vld [vmem:[%s7994_s1 + $0x34] ss:$0 sm:$0xff] }
 0x23e   :  { %v1633_v11 = vadd.f32 %v6321_v23, %v1586_v36  ;;  %v1865_v12 = vadd.f32 %v1854_v37, %v1818_v57  ;;  %v4479_v36 = vld [vmem:[%s7994_s1 + $0x35] ss:$0 sm:$0xff]  ;;  %v4495_v57 = vld [vmem:[%s7994_s1 + $0x3d] ss:$0 sm:$0xff] }
 0x23f   :  { %v1903_v4 = vpop.permute.xlu1 %1902  ;;  %v1813_v51 = vpop.permute.xlu0 %1812  ;;  %v1820_v15 = vadd.f32 %v1811_v22, %v1773_v62  ;;  %v4485_v62 = vld [vmem:[%s7994_s1 + $0x38] ss:$0 sm:$0xff] }
 0x240   :  { %v1680_v25 = vadd.f32 %v6351_v38, %v1633_v11  ;;  %v1913_v45 = vadd.f32 %v1903_v4, %v1866_v52  ;;  %v4491_v11 = vld [vmem:[%s7994_s1 + $0x3b] ss:$0 sm:$0xff]  ;;  %v4489_v52 = vld [vmem:[%s7994_s1 + $0x3a] ss:$0 sm:$0xff] }
 0x241   :  { %v1867_v46 = vadd.f32 %v1858_v39, %v1820_v15  ;;  %v4501_v15 = vld [vmem:[%s7994_s1 + $0x41] ss:$0 sm:$0xff] }
 0x242   :  { %v1727_v28 = vadd.f32 %v6377_v7, %v1680_v25  ;;  %v4497_v25 = vld [vmem:[%s7994_s1 + $0x3e] ss:$0 sm:$0xff] }
 0x243   :  { %v1905_v5 = vpop.permute.xlu1 %1904  ;;  %v1901_v47 = vpop.permute.xlu0 %1900 }
 0x244   :  { %v1912_v16 = vadd.f32 %v1901_v47, %v1865_v12  ;;  %v1774_v61 = vadd.f32 %v1766_v30, %v1727_v28  ;;  %v1914_v17 = vadd.f32 %v1905_v5, %v1867_v46  ;;  %v4473_v5 = vld [vmem:[%s7994_s1 + $0x32] ss:$0 sm:$0xff]  ;;  %v4483_v47 = vld [vmem:[%s7994_s1 + $0x37] ss:$0 sm:$0xff]  ;;  %v4509_v12 = vld [vmem:[%s7994_s1 + $0x45] ss:$0 sm:$0xff] }
 0x245   :  { %v4513_v28 = vld [vmem:[%s7994_s1 + $0x47] ss:$0 sm:$0xff]  ;;  %v4507_v46 = vld [vmem:[%s7994_s1 + $0x44] ss:$0 sm:$0xff] }
 0x246   :  { %v1821_v32 = vadd.f32 %v1813_v51, %v1774_v61  ;;  %v4511_v61 = vld [vmem:[%s7994_s1 + $0x46] ss:$0 sm:$0xff] }
 0x247   :  { %v1950_v50 = vpop.permute.xlu1 %1949  ;;  %v1860_v0 = vpop.permute.xlu0 %1859 }
 0x248   :  { %v6421_v2 = vadd.f32 %v1950_v50, %v1913_v45  ;;  %v1868_v53 = vadd.f32 %v1860_v0, %v1821_v32  ;;  %v4493_v50 = vld [vmem:[%s7994_s1 + $0x3c] ss:$0 sm:$0xff]  ;;  %v4505_v0 = vld [vmem:[%s7994_s1 + $0x43] ss:$0 sm:$0xff]  ;;  %v4503_v45 = vld [vmem:[%s7994_s1 + $0x42] ss:$0 sm:$0xff] }
 0x249   :  { %v4519_v32 = vld [vmem:[%s7994_s1 + $0x4a] ss:$0 sm:$0xff] }
 0x24a   :  { %v2055_v38 = vmul.f32 %v6421_v2, %v6421_v2  ;;  %v1965_v30 = vsel %vm1963_vm6, %v6421_v2, 0.0 }
 0x24b   :  { %v1952_v13 = vpop.permute.xlu1 %1951  ;;  %v1948_v23 = vpop.permute.xlu0 %1947 }
 0x24c   :  { %v6423_v58 = vadd.f32 %v1948_v23, %v1912_v16  ;;  %v6427_v22 = vadd.f32 %v1952_v13, %v1914_v17  ;;  %v2059_v20 = vsel %vm1963_vm6, %v2055_v38, 0.0  ;;  %v4517_v16 = vld [vmem:[%s7994_s1 + $0x49] ss:$0 sm:$0xff]  ;;  %v4521_v13 = vld [vmem:[%s7994_s1 + $0x4b] ss:$0 sm:$0xff] }
 0x24d   :  { %v4515_v23 = vld [vmem:[%s7994_s1 + $0x48] ss:$0 sm:$0xff]  ;;  %v4525_v17 = vld [vmem:[%s7994_s1 + $0x4d] ss:$0 sm:$0xff]  ;;  %v4531_v38 = vld [vmem:[%s7994_s1 + $0x51] ss:$0 sm:$0xff] }
 0x24e   :  { %v1964_v7 = vsel %vm1963_vm6, %v6423_v58, 0.0  ;;  %v2054_v42 = vmul.f32 %v6423_v58, %v6423_v58  ;;  %v2056_v3 = vmul.f32 %v6427_v22, %v6427_v22  ;;  %v1967_v59 = vsel %vm1963_vm6, %v6427_v22, 0.0 }
 0x24f   :  { %v1907_v41 = vpop.permute.xlu0 %1906  ;;  %v1966_v43 = vadd.f32 %v1965_v30, %v1964_v7  ;;  %v4523_v7 = vld [vmem:[%s7994_s1 + $0x4c] ss:$0 sm:$0xff]  ;;  %v4539_v30 = vld [vmem:[%s7994_s1 + $0x55] ss:$0 sm:$0xff] }
 0x250   :  { %v2058_v31 = vsel %vm1963_vm6, %v2054_v42, 0.0  ;;  %v1915_v63 = vadd.f32 %v1907_v41, %v1868_v53  ;;  %v2061_v37 = vsel %vm1963_vm6, %v2056_v3, 0.0  ;;  %v4533_v42 = vld [vmem:[%s7994_s1 + $0x52] ss:$0 sm:$0xff]  ;;  %v4527_v41 = vld [vmem:[%s7994_s1 + $0x4e] ss:$0 sm:$0xff] }
 0x251   :  { %v2060_v60 = vadd.f32 %v2059_v20, %v2058_v31  ;;  %v1968_v39 = vadd.f32 %v1967_v59, %v1966_v43  ;;  %v4469_v53 = vld [vmem:[%s7994_s1 + $0x30] ss:$0 sm:$0xff]  ;;  %v4535_v31 = vld [vmem:[%s7994_s1 + $0x53] ss:$0 sm:$0xff]  ;;  %v8224_v3 = vld [vmem:[#allocation77_spill] sm:$0xff] }
 0x252   :  { %v8228_v59 = vld [vmem:[#allocation80_spill] sm:$0xff] }
 0x253   :  { %v1954_v8 = vpop.permute.xlu0 %1953  ;;  %v2062_v35 = vadd.f32 %v2061_v37, %v2060_v60  ;;  %v8226_v60 = vmov 0.0|0.0   ;;  %v4537_v37 = vld [vmem:[%s7994_s1 + $0x54] ss:$0 sm:$0xff] }
 0x254   :  { %v6441_v55 = vadd.f32 %v1954_v8, %v1915_v63  ;;  %v8225_v63 = vmov 0.0   ;;  %v8227_v8 = vld [vmem:[#allocation78_spill] sm:$0xff] }
 0x256   :  { %v1969_v26 = vsel %vm1963_vm6, %v6441_v55, 0.0  ;;  %v2057_v14 = vmul.f32 %v6441_v55, %v6441_v55 }
 0x257   :  { %v1970_v10 = vadd.f32 %v1969_v26, %v1968_v39  ;;  %v8229_v39 = vld [vmem:[#allocation82_spill] sm:$0xff]  ;;  %v4543_v26 = vld [vmem:[%s7994_s1 + $0x57] ss:$0 sm:$0xff] }
 0x258   :  { %v2063_v44 = vsel %vm1963_vm6, %v2057_v14, 0.0  ;;  %v4541_v14 = vld [vmem:[%s7994_s1 + $0x56] ss:$0 sm:$0xff] }
 0x259   :  { %v1971_v19 = vrot.slane %v1970_v10, 4  ;;  %v2064_v1 = vadd.f32 %v2063_v44, %v2062_v35  ;;  %v4547_v35 = vld [vmem:[%s7994_s1 + $0x59] ss:$0 sm:$0xff]  ;;  %v4551_v44 = vld [vmem:[%s7994_s1 + $0x5b] ss:$0 sm:$0xff] }
 0x25b   :  { %v1972_v56 = vadd.f32 %v1971_v19, %v1970_v10  ;;  %v2065_v34 = vrot.slane %v2064_v1, 4  ;;  %v4545_v10 = vld [vmem:[%s7994_s1 + $0x58] ss:$0 sm:$0xff]  ;;  %v4549_v19 = vld [vmem:[%s7994_s1 + $0x5a] ss:$0 sm:$0xff] }
 0x25d   :  { %v1973_v24 = vrot.slane %v1972_v56, 2  ;;  %v2066_v33 = vadd.f32 %v2065_v34, %v2064_v1  ;;  %v4555_v1 = vld [vmem:[%s7994_s1 + $0x5d] ss:$0 sm:$0xff]  ;;  %v4557_v34 = vld [vmem:[%s7994_s1 + $0x5e] ss:$0 sm:$0xff] }
 0x25f   :  { %v1974_v4 = vadd.f32 %v1973_v24, %v1972_v56  ;;  %v2067_v51 = vrot.slane %v2066_v33, 2  ;;  %v4553_v56 = vld [vmem:[%s7994_s1 + $0x5c] ss:$0 sm:$0xff]  ;;  %v4499_v24 = vld [vmem:[%s7994_s1 + $0x40] ss:$0 sm:$0xff] }
 0x261   :  { %v1975_v27 = vrot.slane %v1974_v4, 1  ;;  %v2068_v54 = vadd.f32 %v2067_v51, %v2066_v33  ;;  %v4529_v33 = vld [vmem:[%s7994_s1 + $0x50] ss:$0 sm:$0xff] }
 0x263   :  { %v1976_v40 = vadd.f32 %v1975_v27, %v1974_v4  ;;  %v2069_v18 = vrot.slane %v2068_v54, 1 }
 0x265   :  { %1978 = vrot.lane.b32.xlu1 %v1976_v40, %s4802_s15  ;;  %v2070_v48 = vadd.f32 %v2069_v18, %v2068_v54 }
 0x267   :  { %2072 = vrot.lane.b32.xlu0 %v2070_v48, %s4802_s15 }
 0x269   :  { %2339 = vrot.lane.b32.xlu1 %v4475_v21, %s4791_s11 }
 0x26b   :  { %2273 = vrot.lane.b32.xlu0 %v4471_v6, %s4787_s19 }
 0x26d   :  { %2405 = vrot.lane.b32.xlu1 %v4479_v36, %s4793_s17 }
 0x26f   :  { %2306 = vrot.lane.b32.xlu0 %v4473_v5, %s4789_s29 }
 0x271   :  { %2471 = vrot.lane.b32.xlu1 %v4483_v47, %s4788_s26  ;;  %v2157_v47 = vlaneseq }
 0x273   :  { %2372 = vrot.lane.b32.xlu0 %v4477_v29, %s4790_s6 }
 0x275   :  { %2537 = vrot.lane.b32.xlu1 %v4487_v9, %s4796_s5  ;;  %v6657_v9 = vshrl.u32 %v2157_v47, 7 }
 0x277   :  { %2438 = vrot.lane.b32.xlu0 %v4481_v49, %s8219_s13  ;;  %8230 = vst [vmem:[#allocation8_spill] sm:$0xff] %v6657_v9 }
 0x279   :  { %2603 = vrot.lane.b32.xlu1 %v4491_v11, %s8220_s10  ;;  %v22_v11 = vld [vmem:[%s7995_s2] sm:$0xf] }
 0x27b   :  { %2504 = vrot.lane.b32.xlu0 %v4485_v62, %s8221_s30  ;;  %v2159_v62 = vsub.s32 0, %v6657_v9 }
 0x27d   :  { %2669 = vrot.lane.b32.xlu1 %v4495_v57, %s4799_s20 }
 0x27f   :  { %2570 = vrot.lane.b32.xlu0 %v4489_v52, %s8222_s18 }
 0x281   :  { %2702 = vrot.lane.b32.xlu1 %v4497_v25, %s4800_s27 }
 0x283   :  { %2636 = vrot.lane.b32.xlu0 %v4493_v50, %s8223_s9 }
 0x285   :  { %2869 = vrot.lane.b32.xlu1 %v4505_v0, %s4791_s11 }
 0x287   :  { %2775 = vrot.lane.b32.xlu0 %v4501_v15, %s4787_s19 }
 0x289   :  { %2963 = vrot.lane.b32.xlu1 %v4509_v12, %s4793_s17 }
 0x28b   :  { %2822 = vrot.lane.b32.xlu0 %v4503_v45, %s4789_s29  ;;  %v2171_v45 = vsub.s32 1, %v6657_v9 }
 0x28d   :  { %3057 = vrot.lane.b32.xlu1 %v4513_v28, %s4788_s26 }
 0x28f   :  { %2916 = vrot.lane.b32.xlu0 %v4507_v46, %s4790_s6 }
 0x291   :  { %3151 = vrot.lane.b32.xlu1 %v4517_v16, %s4796_s5 }
 0x293   :  { %3010 = vrot.lane.b32.xlu0 %v4511_v61, %s8219_s13 }
 0x295   :  { %3245 = vrot.lane.b32.xlu1 %v4521_v13, %s8220_s10 }
 0x297   :  { %3104 = vrot.lane.b32.xlu0 %v4515_v23, %s8221_s30 }
 0x299   :  { %3339 = vrot.lane.b32.xlu1 %v4525_v17, %s4799_s20 }
 0x29b   :  { %3198 = vrot.lane.b32.xlu0 %v4519_v32, %s8222_s18 }
 0x29d   :  { %3473 = vrot.lane.b32.xlu1 %v4531_v38, %s4787_s19  ;;  %s8246_s19 = smov 118  }
 0x29f   :  { %3292 = vrot.lane.b32.xlu0 %v4523_v7, %s8223_s9 }
 0x2a1   :  { %3520 = vrot.lane.b32.xlu1 %v4533_v42, %s4789_s29  ;;  %s8250_s29 = smov 114  }
 0x2a3   :  { %3386 = vrot.lane.b32.xlu0 %v4527_v41, %s4800_s27 }
 0x2a5   :  { %3661 = vrot.lane.b32.xlu1 %v4539_v30, %s4793_s17 }
 0x2a7   :  { %2256 = vrot.lane.b32.xlu0 %v4469_v53, %s4801_s8 }
 0x2a9   :  { %3755 = vrot.lane.b32.xlu1 %v4543_v26, %s4788_s26 }
 0x2ab   :  { %3567 = vrot.lane.b32.xlu0 %v4535_v31, %s4791_s11  ;;  %s4819_s11 = smov [#allocation2]  }
 0x2ac   :  { %s4380_s17 = sshll.u32 %s4819_s11, 4  ;;  %s4381_s17 = int_to_ptr.vmem [resolvable:$true] %s4380_s17 }
 0x2ad   :  { %3849 = vrot.lane.b32.xlu1 %v4547_v35, %s4796_s5  ;;  %s4763_s25 = scalar_lea.vmem %s4381_s17, 512  ;;  %p4768_p1 = scmp.lt.s32.totalorder %s4381_s17, %s4381_s17 }
 0x2ae   :  { %p4764_p0 = scmp.ne.s32.totalorder %s4381_s17, %s4763_s25  ;;  %p4769_p2 = scmp.lt.s32.totalorder %s4763_s25, %s4763_s25 }
 0x2af   :  { %3614 = vrot.lane.b32.xlu0 %v4537_v37, %s4790_s6  ;;  %s8247_s6 = smov 117  }
 0x2b0   :  { %p4770_p3 = por %p4769_p2, %p4768_p1 }
 0x2b1   :  { %3943 = vrot.lane.b32.xlu1 %v4551_v44, %s8220_s10 }
 0x2b2   :  { %p4771_p4 = pnand %p4770_p3, %p4764_p0 }
 0x2b3   :  { %3708 = vrot.lane.b32.xlu0 %v4541_v14, %s8219_s13 }
 0x2b5   :  { %4037 = vrot.lane.b32.xlu1 %v4555_v1, %s4799_s20 }
 0x2b7   :  { %3802 = vrot.lane.b32.xlu0 %v4545_v10, %s8221_s30 }
 0x2b9   :  { %4084 = vrot.lane.b32.xlu1 %v4557_v34, %s4800_s27  ;;  %s8241_s27 = smov 123  }
 0x2bb   :  { %3896 = vrot.lane.b32.xlu0 %v4549_v19, %s8222_s18 }
 0x2bf   :  { %3990 = vrot.lane.b32.xlu0 %v4553_v56, %s8223_s9  ;;  %s8242_s9 = smov 122  }
 0x2c3   :  { %2736 = vrot.lane.b32.xlu0 %v4499_v24, %s4801_s8 }
 0x2c7   :  { %3434 = vrot.lane.b32.xlu0 %v4529_v33, %s4801_s8 }
 0x2d7   :  { %v1979_v43 = vpop.permute.xlu1 %1978 }
 0x2d8   :  { %4613 = vmatmul.mubr.msk.f32.vlgmr.msra.gmra.mrb[0].mxu0 %vm1980_vm7, %v1979_v43 }
 0x2d9   :  { %v2073_v20 = vpop.permute.xlu0 %2072  ;;  %4698 = vmatpush3.bf16.msra.mxu0 %v8224_v3  ;;  %4650 = vmatprep.mubr.msk.f32.mxu0 %vm4817_vm5, %v8225_v63 }
 0x2da   :  { %4632 = vmatmul.mubr.msk.f32.vlgmr.msra.gmra.mrb[0].mxu1 %vm1980_vm7, %v2073_v20  ;;  %4699 = vmatprep.subr.bf16.mxu0 %v8226_v60 }
 0x2db   :  { %4710 = vmatpush3.bf16.msra.mxu1 %v8224_v3  ;;  %4669 = vmatprep.mubr.msk.f32.mxu1 %vm4817_vm5, %v8225_v63  ;;  %v6659_v49 = vpop.permute.xlu1 %2339 }
 0x2dc   :  { %4711 = vmatprep.subr.bf16.mxu1 %v8226_v60 }
 0x2dd   :  { %4701 = vmatpush3.bf16.msra.mxu0 %v8227_v8  ;;  %v6651_v51 = vpop.permute.xlu0 %2273 }
 0x2de   :  { %4702 = vmatprep.subr.bf16.mxu0 %v8226_v60 }
 0x2df   :  { %4713 = vmatpush3.bf16.msra.mxu1 %v8227_v8  ;;  %v6667_v50 = vpop.permute.xlu1 %2405 }
 0x2e0   :  { %4714 = vmatprep.subr.bf16.mxu1 %v8226_v60 }
 0x2e1   :  { %4704 = vmatpush3.bf16.msra.mxu0 %v8228_v59  ;;  %v6653_v36 = vpop.permute.xlu0 %2306 }
 0x2e2   :  { %4705 = vmatprep.subr.bf16.mxu0 %v8226_v60 }
 0x2e3   :  { %4716 = vmatpush3.bf16.msra.mxu1 %v8228_v59  ;;  %v6673_v16 = vpop.permute.xlu1 %2471 }
 0x2e4   :  { %4717 = vmatprep.subr.bf16.mxu1 %v8226_v60 }
 0x2e5   :  { %4707 = vmatpush3.bf16.msra.mxu0 %v8229_v39  ;;  %v6655_v29 = vpop.permute.xlu0 %2372 }
 0x2e7   :  { %4719 = vmatpush3.bf16.msra.mxu1 %v8229_v39  ;;  %v6678_v23 = vpop.permute.xlu1 %2537 }
 0x2e9   :  { %v6665_v57 = vpop.permute.xlu0 %2438 }
 0x2eb   :  { %v6682_v32 = vpop.permute.xlu1 %2603 }
 0x2ed   :  { %v6671_v28 = vpop.permute.xlu0 %2504 }
 0x2ef   :  { %v6686_v7 = vpop.permute.xlu1 %2669 }
 0x2f1   :  { %v6676_v13 = vpop.permute.xlu0 %2570 }
 0x2f3   :  { %v6690_v41 = vpop.permute.xlu1 %2702 }
 0x2f5   :  { %v6680_v17 = vpop.permute.xlu0 %2636 }
 0x2f7   :  { %v6694_v53 = vpop.permute.xlu1 %2869 }
 0x2f9   :  { %v6684_v38 = vpop.permute.xlu0 %2775 }
 0x2fb   :  { %v6698_v43 = vpop.permute.xlu1 %2963 }
 0x2fd   :  { %v6688_v42 = vpop.permute.xlu0 %2822 }
 0x2ff   :  { %v6702_v3 = vpop.permute.xlu1 %3057 }
 0x301   :  { %v6692_v30 = vpop.permute.xlu0 %2916 }
 0x303   :  { %v6706_v60 = vpop.permute.xlu1 %3151 }
 0x305   :  { %v6696_v31 = vpop.permute.xlu0 %3010 }
 0x307   :  { %v6710_v59 = vpop.permute.xlu1 %3245 }
 0x309   :  { %v6700_v20 = vpop.permute.xlu0 %3104 }
 0x30b   :  { %v6714_v37 = vpop.permute.xlu1 %3339 }
 0x30d   :  { %v6704_v63 = vpop.permute.xlu0 %3198 }
 0x30f   :  { %v6718_v14 = vpop.permute.xlu1 %3473 }
 0x311   :  { %v6708_v8 = vpop.permute.xlu0 %3292 }
 0x313   :  { %v6722_v10 = vpop.permute.xlu1 %3520 }
 0x315   :  { %v6712_v39 = vpop.permute.xlu0 %3386 }
 0x317   :  { %v6726_v19 = vpop.permute.xlu1 %3661 }
 0x319   :  { %v6716_v26 = vpop.permute.xlu0 %2256 }
 0x31b   :  { %v6730_v56 = vpop.permute.xlu1 %3755 }
 0x31c   :  { %8232 = vst [vmem:[#allocation22_spill] sm:$0xff] %v6730_v56 }
 0x31d   :  { %v6720_v35 = vpop.permute.xlu0 %3567 }
 0x31f   :  { %v6734_v24 = vpop.permute.xlu1 %3849 }
 0x320   :  { %8234 = vst [vmem:[#allocation12_spill] sm:$0xff] %v6734_v24 }
 0x321   :  { %v6724_v44 = vpop.permute.xlu0 %3614 }
 0x325   :  { %v6728_v1 = vpop.permute.xlu0 %3708 }
 0x326   :  { %8231 = vst [vmem:[#allocation18_spill] sm:$0xff] %v6728_v1 }
 0x329   :  { %v6732_v34 = vpop.permute.xlu0 %3802 }
 0x32a   :  { %8233 = vst [vmem:[#allocation5_spill] sm:$0xff] %v6732_v34 }
 0x32d   :  { %v6736_v33 = vpop.permute.xlu0 %3896 }
 0x32e   :  { %8235 = vst [vmem:[#allocation19_spill] sm:$0xff] %v6736_v33 }
 0x3ab   :  { %v2049_v4 = vpop.f32.mrb[0].mxu0 }
 0x3ac   :  { %v2053_v27 = vmul.f32 0.001953125, %v2049_v4  ;;  %v4614_v54 = vpop.f32.mrb[1].mxu0  ;;  %v6738_v4 = vpop.permute.xlu1 %3943 }
 0x3ad   :  { %v2142_v40 = vpop.f32.mrb[0].mxu1  ;;  %8236 = vst [vmem:[#allocation23_spill] sm:$0xff] %v6738_v4 }
 0x3ae   :  { %v2147_v18 = vmul.f32 %v2053_v27, %v2053_v27  ;;  %v2146_v48 = vmul.f32 0.001953125, %v2142_v40  ;;  %v4633_v21 = vpop.f32.mrb[1].mxu1 }
 0x3b0   :  { %v2148_v6 = vsub.f32 %v2146_v48, %v2147_v18  ;;  %v6742_v54 = vpop.permute.xlu1 %4037 }
 0x3b1   :  { %8238 = vst [vmem:[#allocation13_spill] sm:$0xff] %v6742_v54 }
 0x3b2   :  { %v2149_v5 = vadd.f32 1e-05, %v2148_v6 }
 0x3b4   :  { %4754 = vrsqrt.f32 %v2149_v5  ;;  %v6746_v18 = vpop.permute.xlu1 %4084 }
 0x3b5   :  { %8239 = vst [vmem:[#allocation26_spill] sm:$0xff] %v6746_v18 }
 0x3be   :  { %v4755_v52 = vpop.eup %4754 }
 0x3bf   :  { %v2151_v25 = vmul.f32 %v4755_v52, %v22_v11 }
 0x3c1   :  { %v2160_v0 = vrot.slane %v2151_v25, %v2159_v62  ;;  %v2152_v15 = vmul.f32 %v2151_v25, %v2053_v27  ;;  %v6740_v27 = vpop.permute.xlu0 %3990 }
 0x3c2   :  { %8237 = vst [vmem:[#allocation9_spill] sm:$0xff] %v6740_v27 }
 0x3c3   :  { %2162 = vrot.lane.b32.xlu1 %v2160_v0, %s4801_s8  ;;  %v2154_v12 = vrot.slane %v2152_v15, 7 }
 0x3c5   :  { %v2156_v46 = vsub.f32 %v22_v11, %v2154_v12  ;;  %v6744_v40 = vpop.permute.xlu0 %2736 }
 0x3c7   :  { %v2172_v61 = vrot.slane %v2156_v46, %v2171_v45 }
 0x3c9   :  { %2174 = vrot.lane.b32.xlu0 %v2172_v61, %s4801_s8  ;;  %v6748_v48 = vpop.permute.xlu0 %3434 }
 0x3ca   :  { %8240 = vst [vmem:[#allocation30_spill] sm:$0xff] %v6748_v48 }
 0x435   :  { %v2163_v21 = vpop.permute.xlu1 %2162 }
 0x436   :  { %v2165_v6 = vmul.f32 %v2163_v21, %v6423_v58  ;;  %v2166_v5 = vmul.f32 %v2163_v21, %v6421_v2  ;;  %v2167_v47 = vmul.f32 %v2163_v21, %v6427_v22  ;;  %v2168_v11 = vmul.f32 %v2163_v21, %v6441_v55 }
 0x43b   :  { %v2175_v62 = vpop.permute.xlu0 %2174 }
 0x43c   :  { %v2178_v52 = vadd.f32 %v2175_v62, %v2166_v5  ;;  %v2180_v25 = vadd.f32 %v2175_v62, %v2168_v11  ;;  %v2177_v0 = vadd.f32 %v2175_v62, %v2165_v6  ;;  %v2179_v15 = vadd.f32 %v2175_v62, %v2167_v47 }
 0x43e   :  { %v2184_v12 = vmax.f32 %v2180_v25, 0.0  ;;  %v2181_v45 = vmax.f32 %v2177_v0, 0.0  ;;  %v2182_v46 = vmax.f32 %v2178_v52, 0.0  ;;  %v2183_v48 = vmax.f32 %v2179_v15, 0.0 }
 0x440   :  { %v2193_v61 = vrot.slane %v2184_v12, 7  ;;  %v2189_v9 = vrot.slane %v2181_v45, 7  ;;  %v2190_v18 = vrot.slane %v2182_v46, 7  ;;  %v2192_v2 = vrot.slane %v2183_v48, 7 }
 0x442   :  { %2205 = vrot.lane.b32.xlu0 %v2193_v61, %s4802_s15  ;;  %2195 = vrot.lane.b32.xlu1 %v2189_v9, %s4802_s15  ;;  %v2191_v58 = vsel %vm35_vm0, %v2189_v9, %v2190_v18  ;;  %v2194_v22 = vsel %vm35_vm0, %v2192_v2, %v2193_v61 }
 0x446   :  { %2201 = vrot.lane.b32.xlu1 %v2192_v2, %s4802_s15  ;;  %2197 = vrot.lane.b32.xlu0 %v2191_v58, %s4802_s15 }
 0x44a   :  { %2199 = vrot.lane.b32.xlu1 %v2190_v18, %s4802_s15  ;;  %2203 = vrot.lane.b32.xlu0 %v2194_v22, %s4802_s15 }
 0x4b4   :  { %v2206_v55 = vpop.permute.xlu0 %2205  ;;  %v2196_v21 = vpop.permute.xlu1 %2195 }
 0x4b5   :  { %v2211_v6 = vsel %vm35_vm0, 0.0, %v2196_v21  ;;  %v2214_v62 = vsel %vm35_vm0, %v2206_v55, 0.0 }
 0x4b6   :  { %2219 = vrot.lane.b32.xlu1 %v2211_v6, %s4788_s26 }
 0x4b8   :  { %v2202_v5 = vpop.permute.xlu1 %2201  ;;  %v2198_v48 = vpop.permute.xlu0 %2197 }
 0x4b9   :  { %v2212_v9 = vsel %vm35_vm0, 0.0, %v2202_v5  ;;  %2221 = vrot.lane.b32.xlu0 %v2198_v48, %s4788_s26 }
 0x4ba   :  { %2225 = vrot.lane.b32.xlu1 %v2212_v9, %s4788_s26 }
 0x4bc   :  { %v2200_v47 = vpop.permute.xlu1 %2199  ;;  %v2204_v11 = vpop.permute.xlu0 %2203 }
 0x4bd   :  { %v2213_v18 = vsel %vm35_vm0, %v2200_v47, 0.0 }
 0x4be   :  { %2223 = vrot.lane.b32.xlu0 %v2213_v18, %s4788_s26  ;;  %2227 = vrot.lane.b32.xlu1 %v2204_v11, %s4788_s26 }
 0x4c2   :  { %2229 = vrot.lane.b32.xlu1 %v2214_v62, %s4788_s26 }
 0x528   :  { %v2220_v52 = vpop.permute.xlu1 %2219 }
 0x529   :  { %v2237_v25 = vsel %vm72_vm1, 0.0, %v2220_v52 }
 0x52a   :  { %v6774_v0 = vsel %vm79_vm2, %v2237_v25, 0.0 }
 0x52b   :  { %v2222_v15 = vpop.permute.xlu0 %2221  ;;  %v2276_v12 = vmul.f32 %v6651_v51, %v6774_v0  ;;  %v2309_v55 = vmul.f32 %v6653_v36, %v6774_v0  ;;  %v2342_v52 = vmul.f32 %v6659_v49, %v6774_v0  ;;  %v2375_v25 = vmul.f32 %v6655_v29, %v6774_v0 }
 0x52c   :  { %v2238_v45 = vsel %vm72_vm1, 0.0, %v2222_v15  ;;  %v2226_v46 = vpop.permute.xlu1 %2225 }
 0x52d   :  { %v6780_v61 = vsel %vm79_vm2, %v2238_v45, 0.0  ;;  %v2240_v2 = vsel %vm72_vm1, 0.0, %v2226_v46  ;;  %2284 = vrot.lane.b32.xlu0 %v2276_v12, %s4802_s15 }
 0x52e   :  { %v2277_v58 = vmul.f32 %v6651_v51, %v6780_v61  ;;  %v6787_v22 = vsel %vm79_vm2, %v2240_v2, 0.0  ;;  %v2310_v9 = vmul.f32 %v6653_v36, %v6780_v61  ;;  %v2343_v11 = vmul.f32 %v6659_v49, %v6780_v61 }
 0x52f   :  { %v2278_v6 = vmul.f32 %v6651_v51, %v6787_v22  ;;  %v2311_v5 = vmul.f32 %v6653_v36, %v6787_v22  ;;  %v2376_v15 = vmul.f32 %v6655_v29, %v6780_v61  ;;  %v2409_v12 = vmul.f32 %v6667_v50, %v6780_v61 }
 0x530   :  { %2286 = vrot.lane.b32.xlu1 %v2277_v58, %s4802_s15  ;;  %v2228_v21 = vpop.permute.xlu1 %2227  ;;  %v2408_v2 = vmul.f32 %v6667_v50, %v6774_v0  ;;  %v2441_v58 = vmul.f32 %v6665_v57, %v6774_v0 }
 0x531   :  { %2317 = vrot.lane.b32.xlu0 %v2309_v55, %s4803_s16  ;;  %v2241_v48 = vsel %vm72_vm1, 0.0, %v2228_v21  ;;  %v2442_v55 = vmul.f32 %v6665_v57, %v6780_v61  ;;  %v2475_v21 = vmul.f32 %v6673_v16, %v6780_v61 }
 0x532   :  { %v6803_v47 = vsel %vm79_vm2, %v2241_v48, 0.0  ;;  %v2474_v48 = vmul.f32 %v6673_v16, %v6774_v0 }
 0x533   :  { %v2279_v18 = vmul.f32 %v6651_v51, %v6803_v47  ;;  %v2312_v62 = vmul.f32 %v6653_v36, %v6803_v47  ;;  %v2344_v51 = vmul.f32 %v6659_v49, %v6787_v22  ;;  %v2377_v36 = vmul.f32 %v6655_v29, %v6787_v22 }
 0x534   :  { %2288 = vrot.lane.b32.xlu1 %v2278_v6, %s4802_s15  ;;  %v2345_v45 = vmul.f32 %v6659_v49, %v6803_v47  ;;  %v2378_v46 = vmul.f32 %v6655_v29, %v6803_v47  ;;  %v2410_v49 = vmul.f32 %v6667_v50, %v6787_v22  ;;  %v2443_v29 = vmul.f32 %v6665_v57, %v6787_v22 }
 0x535   :  { %2321 = vrot.lane.b32.xlu0 %v2311_v5, %s4803_s16  ;;  %v2411_v6 = vmul.f32 %v6667_v50, %v6803_v47  ;;  %v2444_v5 = vmul.f32 %v6665_v57, %v6803_v47  ;;  %v2476_v50 = vmul.f32 %v6673_v16, %v6787_v22  ;;  %v2509_v57 = vmul.f32 %v6671_v28, %v6787_v22 }
 0x538   :  { %2319 = vrot.lane.b32.xlu1 %v2310_v9, %s4803_s16  ;;  %v2507_v9 = vmul.f32 %v6671_v28, %v6774_v0 }
 0x539   :  { %2352 = vrot.lane.b32.xlu0 %v2343_v11, %s4804_s21  ;;  %v2508_v11 = vmul.f32 %v6671_v28, %v6780_v61 }
 0x53c   :  { %2290 = vrot.lane.b32.xlu1 %v2279_v18, %s4802_s15  ;;  %v2541_v18 = vmul.f32 %v6678_v23, %v6780_v61 }
 0x53d   :  { %2323 = vrot.lane.b32.xlu0 %v2312_v62, %s4803_s16  ;;  %v2477_v62 = vmul.f32 %v6673_v16, %v6803_v47  ;;  %v2542_v16 = vmul.f32 %v6678_v23, %v6787_v22 }
 0x540   :  { %2350 = vrot.lane.b32.xlu1 %v2342_v52, %s4804_s21  ;;  %v2510_v52 = vmul.f32 %v6671_v28, %v6803_v47  ;;  %v2575_v28 = vmul.f32 %v6676_v13, %v6787_v22 }
 0x541   :  { %2383 = vrot.lane.b32.xlu0 %v2375_v25, %s4805_s22  ;;  %v2540_v25 = vmul.f32 %v6678_v23, %v6774_v0 }
 0x544   :  { %2354 = vrot.lane.b32.xlu1 %v2344_v51, %s4804_s21  ;;  %v2573_v51 = vmul.f32 %v6676_v13, %v6774_v0 }
 0x545   :  { %2387 = vrot.lane.b32.xlu0 %v2377_v36, %s4805_s22  ;;  %v2574_v36 = vmul.f32 %v6676_v13, %v6780_v61 }
 0x548   :  { %2385 = vrot.lane.b32.xlu1 %v2376_v15, %s4805_s22  ;;  %v2607_v15 = vmul.f32 %v6682_v32, %v6780_v61 }
 0x549   :  { %2418 = vrot.lane.b32.xlu0 %v2409_v12, %s8241_s27  ;;  %v2543_v12 = vmul.f32 %v6678_v23, %v6803_v47  ;;  %v2608_v23 = vmul.f32 %v6682_v32, %v6787_v22 }
 0x54c   :  { %2356 = vrot.lane.b32.xlu1 %v2345_v45, %s4804_s21  ;;  %v2576_v45 = vmul.f32 %v6676_v13, %v6803_v47  ;;  %v2609_v13 = vmul.f32 %v6682_v32, %v6803_v47 }
 0x54d   :  { %2389 = vrot.lane.b32.xlu0 %v2378_v46, %s4805_s22  ;;  %v2606_v46 = vmul.f32 %v6682_v32, %v6774_v0  ;;  %v2642_v32 = vmul.f32 %v6680_v17, %v6803_v47 }
 0x550   :  { %2416 = vrot.lane.b32.xlu1 %v2408_v2, %s8241_s27  ;;  %v2639_v2 = vmul.f32 %v6680_v17, %v6774_v0 }
 0x551   :  { %2449 = vrot.lane.b32.xlu0 %v2441_v58, %s8242_s9  ;;  %v2640_v58 = vmul.f32 %v6680_v17, %v6780_v61 }
 0x554   :  { %2420 = vrot.lane.b32.xlu1 %v2410_v49, %s8241_s27  ;;  %v2672_v49 = vmul.f32 %v6686_v7, %v6774_v0 }
 0x555   :  { %2453 = vrot.lane.b32.xlu0 %v2443_v29, %s8242_s9  ;;  %v2641_v29 = vmul.f32 %v6680_v17, %v6787_v22  ;;  %v2674_v17 = vmul.f32 %v6686_v7, %v6787_v22 }
 0x558   :  { %2451 = vrot.lane.b32.xlu1 %v2442_v55, %s8242_s9  ;;  %v2224_v55 = vpop.permute.xlu0 %2223 }
 0x559   :  { %2484 = vrot.lane.b32.xlu0 %v2475_v21, %s8243_s28  ;;  %v2239_v21 = vsel %vm72_vm1, 0.0, %v2224_v55 }
 0x55c   :  { %2422 = vrot.lane.b32.xlu1 %v2411_v6, %s8241_s27  ;;  %v2673_v6 = vmul.f32 %v6686_v7, %v6780_v61 }
 0x55d   :  { %2455 = vrot.lane.b32.xlu0 %v2444_v5, %s8242_s9  ;;  %v2705_v5 = vmul.f32 %v6690_v41, %v6774_v0 }
 0x560   :  { %2482 = vrot.lane.b32.xlu1 %v2474_v48, %s8243_s28  ;;  %v6942_v48 = vsel %vm79_vm2, %v2239_v21, 0.0 }
 0x561   :  { %2515 = vrot.lane.b32.xlu0 %v2507_v9, %s8244_s12  ;;  %v2230_v9 = vpop.permute.xlu1 %2229  ;;  %v2827_v55 = vmul.f32 %v6688_v42, %v6942_v48 }
 0x564   :  { %2486 = vrot.lane.b32.xlu1 %v2476_v50, %s8243_s28  ;;  %v2675_v50 = vmul.f32 %v6686_v7, %v6803_v47 }
 0x565   :  { %2519 = vrot.lane.b32.xlu0 %v2509_v57, %s8244_s12  ;;  %v2780_v57 = vmul.f32 %v6684_v38, %v6942_v48 }
 0x567   :  { %v2793_v7 = vrot.slane %v2780_v57, 1  ;;  %v2840_v57 = vrot.slane %v2827_v55, 1  ;;  %v2876_v55 = vmul.f32 %v6694_v53, %v6803_v47 }
 0x568   :  { %2517 = vrot.lane.b32.xlu1 %v2508_v11, %s8244_s12  ;;  %v2242_v11 = vsel %vm72_vm1, 0.0, %v2230_v9 }
 0x569   :  { %2550 = vrot.lane.b32.xlu0 %v2541_v18, %s8245_s23  ;;  %v2706_v18 = vmul.f32 %v6690_v41, %v6780_v61 }
 0x56c   :  { %2488 = vrot.lane.b32.xlu1 %v2477_v62, %s8243_s28  ;;  %v2779_v62 = vmul.f32 %v6684_v38, %v6780_v61 }
 0x56d   :  { %2521 = vrot.lane.b32.xlu0 %v2510_v52, %s8244_s12  ;;  %v2708_v52 = vmul.f32 %v6690_v41, %v6803_v47 }
 0x570   :  { %2548 = vrot.lane.b32.xlu1 %v2540_v25, %s8245_s23  ;;  %v2826_v25 = vmul.f32 %v6688_v42, %v6780_v61 }
 0x571   :  { %2581 = vrot.lane.b32.xlu0 %v2573_v51, %s8246_s19  ;;  %v6964_v51 = vsel %vm79_vm2, %v2242_v11, 0.0  ;;  %v2829_v11 = vmul.f32 %v6688_v42, %v6803_v47 }
 0x574   :  { %2552 = vrot.lane.b32.xlu1 %v2542_v16, %s8245_s23  ;;  %v2778_v16 = vmul.f32 %v6684_v38, %v6774_v0 }
 0x575   :  { %2585 = vrot.lane.b32.xlu0 %v2575_v28, %s8246_s19  ;;  %v2707_v28 = vmul.f32 %v6690_v41, %v6787_v22  ;;  %v2781_v41 = vmul.f32 %v6684_v38, %v6787_v22 }
 0x578   :  { %2583 = vrot.lane.b32.xlu1 %v2574_v36, %s8246_s19  ;;  %v2791_v36 = vrot.slane %v2779_v62, 1 }
 0x579   :  { %2616 = vrot.lane.b32.xlu0 %v2607_v15, %s8247_s6  ;;  %v2825_v15 = vmul.f32 %v6688_v42, %v6774_v0 }
 0x57c   :  { %2554 = vrot.lane.b32.xlu1 %v2543_v12, %s8245_s23  ;;  %v2782_v12 = vmul.f32 %v6684_v38, %v6803_v47 }
 0x57d   :  { %2587 = vrot.lane.b32.xlu0 %v2576_v45, %s8246_s19  ;;  %v2794_v45 = vsel %vm587_vm3, %v2791_v36, %v2793_v7  ;;  %v2828_v7 = vmul.f32 %v6688_v42, %v6787_v22 }
 0x580   :  { %2614 = vrot.lane.b32.xlu1 %v2606_v46, %s8247_s6  ;;  %v2838_v46 = vrot.slane %v2826_v25, 1 }
 0x581   :  { %2647 = vrot.lane.b32.xlu0 %v2639_v2, %s8248_s14  ;;  %v2783_v2 = vmul.f32 %v6684_v38, %v6964_v51  ;;  %v2795_v38 = vrot.slane %v2781_v41, 1 }
 0x583   :  { %v2798_v21 = vrot.slane %v2783_v2, 1 }
 0x584   :  { %2618 = vrot.lane.b32.xlu1 %v2608_v23, %s8247_s6  ;;  %v2790_v23 = vrot.slane %v2778_v16, 1 }
 0x585   :  { %2620 = vrot.lane.b32.xlu0 %v2609_v13, %s8247_s6  ;;  %v2837_v13 = vrot.slane %v2825_v15, 1  ;;  %v2843_v15 = vrot.slane %v2829_v11, 1 }
 0x588   :  { %2649 = vrot.lane.b32.xlu1 %v2640_v58, %s8248_s14 }
 0x589   :  { %2680 = vrot.lane.b32.xlu0 %v2672_v49, %s8249_s3  ;;  %v2792_v49 = vsel %vm587_vm3, %v2790_v23, %v2791_v36  ;;  %v2841_v36 = vsel %vm587_vm3, %v2838_v46, %v2840_v57  ;;  %v2920_v23 = vmul.f32 %v6692_v30, %v6780_v61 }
 0x58c   :  { %2651 = vrot.lane.b32.xlu1 %v2641_v29, %s8248_s14  ;;  %v2796_v29 = vrot.slane %v2782_v12, 1  ;;  %v2874_v12 = vmul.f32 %v6694_v53, %v6942_v48 }
 0x58d   :  { %2653 = vrot.lane.b32.xlu0 %v2642_v32, %s8248_s14  ;;  %v2839_v32 = vsel %vm587_vm3, %v2837_v13, %v2838_v46  ;;  %v2919_v46 = vmul.f32 %v6692_v30, %v6774_v0 }
 0x590   :  { %2682 = vrot.lane.b32.xlu1 %v2673_v6, %s8249_s3  ;;  %v2873_v6 = vmul.f32 %v6694_v53, %v6780_v61 }
 0x591   :  { %2713 = vrot.lane.b32.xlu0 %v2705_v5, %s8250_s29 }
 0x592   :  { %v2885_v62 = vrot.slane %v2873_v6, 1  ;;  %v2877_v6 = vmul.f32 %v6694_v53, %v6964_v51 }
 0x594   :  { %2684 = vrot.lane.b32.xlu1 %v2674_v17, %s8249_s3  ;;  %v2872_v17 = vmul.f32 %v6694_v53, %v6774_v0 }
 0x595   :  { %2686 = vrot.lane.b32.xlu0 %v2675_v50, %s8249_s3  ;;  %v2797_v50 = vsel %vm587_vm3, %v2795_v38, %v2796_v29  ;;  %v2875_v38 = vmul.f32 %v6694_v53, %v6787_v22 }
 0x596   :  { %v2884_v16 = vrot.slane %v2872_v17, 1 }
 0x597   :  { %v2889_v53 = vrot.slane %v2875_v38, 1 }
 0x598   :  { %2715 = vrot.lane.b32.xlu1 %v2706_v18, %s8250_s29  ;;  %v2799_v18 = vsel %vm587_vm3, %v2796_v29, %v2798_v21  ;;  %v2887_v29 = vrot.slane %v2874_v12, 1  ;;  %v2932_v21 = vrot.slane %v2920_v23, 1  ;;  %v2923_v23 = vmul.f32 %v6692_v30, %v6803_v47 }
 0x599   :  { %2719 = vrot.lane.b32.xlu0 %v2708_v52, %s8250_s29  ;;  %v2830_v52 = vmul.f32 %v6688_v42, %v6964_v51  ;;  %v2842_v42 = vrot.slane %v2828_v7, 1 }
 0x59a   :  { %v2888_v11 = vsel %vm587_vm3, %v2885_v62, %v2887_v29  ;;  %v2922_v29 = vmul.f32 %v6692_v30, %v6787_v22 }
 0x59b   :  { %v2845_v2 = vrot.slane %v2830_v52, 1  ;;  %v2921_v52 = vmul.f32 %v6692_v30, %v6942_v48 }
 0x59c   :  { %2717 = vrot.lane.b32.xlu1 %v2707_v28, %s8250_s29 }
 0x59d   :  { %2802 = vrot.lane.b32.xlu0 %v2794_v45, %s4802_s15  ;;  %v2886_v45 = vsel %vm587_vm3, %v2884_v16, %v2885_v62  ;;  %v2892_v16 = vrot.slane %v2877_v6, 1  ;;  %v2966_v62 = vmul.f32 %v6698_v43, %v6774_v0 }
 0x59f   :  { %v6982_v58 = vpop.permute.xlu0 %2284 }
 0x5a0   :  { %2800 = vrot.lane.b32.xlu1 %v2792_v49, %s4802_s15  ;;  %v2844_v49 = vsel %vm587_vm3, %v2842_v42, %v2843_v15 }
 0x5a1   :  { %2847 = vrot.lane.b32.xlu0 %v2839_v32, %s4803_s16  ;;  %v2846_v32 = vsel %vm587_vm3, %v2843_v15, %v2845_v2  ;;  %v2934_v2 = vrot.slane %v2921_v52, 1 }
 0x5a2   :  { %v6992_v5 = vpop.permute.xlu1 %2286 }
 0x5a3   :  { %v6996_v9 = vpop.permute.xlu0 %2317  ;;  %v2935_v38 = vsel %vm587_vm3, %v2932_v21, %v2934_v2 }
 0x5a4   :  { %2804 = vrot.lane.b32.xlu1 %v2797_v50, %s4802_s15  ;;  %v2931_v50 = vrot.slane %v2919_v46, 1 }
 0x5a5   :  { %2806 = vrot.lane.b32.xlu0 %v2799_v18, %s4802_s15  ;;  %v2890_v18 = vrot.slane %v2876_v55, 1 }
 0x5a6   :  { %v7008_v25 = vpop.permute.xlu1 %2288  ;;  %v2933_v7 = vsel %vm587_vm3, %v2931_v50, %v2932_v21  ;;  %v2937_v50 = vrot.slane %v2923_v23, 1  ;;  %v3013_v21 = vmul.f32 %v6696_v31, %v6774_v0 }
 0x5a7   :  { %v7010_v28 = vpop.permute.xlu0 %2321  ;;  %v2893_v42 = vsel %vm587_vm3, %v2890_v18, %v2892_v16 }
 0x5a8   :  { %2849 = vrot.lane.b32.xlu1 %v2841_v36, %s4803_s16  ;;  %v2967_v36 = vmul.f32 %v6698_v43, %v6780_v61 }
 0x5a9   :  { %2894 = vrot.lane.b32.xlu0 %v2886_v45, %s4804_s21  ;;  %v2891_v45 = vsel %vm587_vm3, %v2889_v53, %v2890_v18 }
 0x5aa   :  { %v7020_v41 = vpop.permute.xlu1 %2319  ;;  %v2979_v46 = vrot.slane %v2967_v36, 1 }
 0x5ab   :  { %v7024_v13 = vpop.permute.xlu0 %2352 }
 0x5ac   :  { %2851 = vrot.lane.b32.xlu1 %v2844_v49, %s4803_s16  ;;  %v2924_v49 = vmul.f32 %v6692_v30, %v6964_v51  ;;  %v2936_v30 = vrot.slane %v2922_v29, 1 }
 0x5ad   :  { %2853 = vrot.lane.b32.xlu0 %v2846_v32, %s4803_s16  ;;  %v2978_v32 = vrot.slane %v2966_v62, 1 }
 0x5ae   :  { %v7036_v17 = vpop.permute.xlu1 %2290  ;;  %v2939_v52 = vrot.slane %v2924_v49, 1  ;;  %v2938_v53 = vsel %vm587_vm3, %v2936_v30, %v2937_v50  ;;  %v2969_v49 = vmul.f32 %v6698_v43, %v6787_v22  ;;  %v3061_v30 = vmul.f32 %v6702_v3, %v6780_v61 }
 0x5af   :  { %v7038_v57 = vpop.permute.xlu0 %2323  ;;  %v2980_v18 = vsel %vm587_vm3, %v2978_v32, %v2979_v46  ;;  %v3025_v32 = vrot.slane %v3013_v21, 1 }
 0x5b0   :  { %2896 = vrot.lane.b32.xlu1 %v2888_v11, %s4804_s21  ;;  %v2968_v11 = vmul.f32 %v6698_v43, %v6942_v48  ;;  %v2940_v2 = vsel %vm587_vm3, %v2937_v50, %v2939_v52  ;;  %v3015_v50 = vmul.f32 %v6696_v31, %v6942_v48 }
 0x5b1   :  { %2941 = vrot.lane.b32.xlu0 %v2933_v7, %s4805_s22  ;;  %v3014_v7 = vmul.f32 %v6696_v31, %v6780_v61 }
 0x5b2   :  { %v7048_v15 = vpop.permute.xlu1 %2350  ;;  %v2981_v62 = vrot.slane %v2968_v11, 1 }
 0x5b3   :  { %v7052_v12 = vpop.permute.xlu0 %2383  ;;  %v3026_v23 = vrot.slane %v3014_v7, 1 }
 0x5b4   :  { %2898 = vrot.lane.b32.xlu1 %v2891_v45, %s4804_s21  ;;  %v2970_v45 = vmul.f32 %v6698_v43, %v6803_v47  ;;  %v2982_v11 = vsel %vm587_vm3, %v2979_v46, %v2981_v62  ;;  %v3060_v46 = vmul.f32 %v6702_v3, %v6774_v0 }
 0x5b5   :  { %2900 = vrot.lane.b32.xlu0 %v2893_v42, %s4804_s21  ;;  %v2971_v42 = vmul.f32 %v6698_v43, %v6964_v51  ;;  %v3027_v52 = vsel %vm587_vm3, %v3025_v32, %v3026_v23  ;;  %v2983_v43 = vrot.slane %v2969_v49, 1  ;;  %v3073_v32 = vrot.slane %v3061_v30, 1 }
 0x5b6   :  { %v7064_v55 = vpop.permute.xlu1 %2354  ;;  %v3018_v49 = vmul.f32 %v6696_v31, %v6964_v51 }
 0x5b7   :  { %v7066_v6 = vpop.permute.xlu0 %2387  ;;  %v2986_v7 = vrot.slane %v2971_v42, 1 }
 0x5b8   :  { %2943 = vrot.lane.b32.xlu1 %v2935_v38, %s4805_s22  ;;  %v3033_v30 = vrot.slane %v3018_v49, 1 }
 0x5b9   :  { %2988 = vrot.lane.b32.xlu0 %v2980_v18, %s8241_s27  ;;  %v2984_v18 = vrot.slane %v2970_v45, 1  ;;  %v3028_v45 = vrot.slane %v3015_v50, 1 }
 0x5ba   :  { %v7076_v16 = vpop.permute.xlu1 %2385 }
 0x5bb   :  { %v7080_v36 = vpop.permute.xlu0 %2418  ;;  %v2985_v62 = vsel %vm587_vm3, %v2983_v43, %v2984_v18  ;;  %v2987_v42 = vsel %vm587_vm3, %v2984_v18, %v2986_v7  ;;  %v3072_v43 = vrot.slane %v3060_v46, 1  ;;  %v3029_v54 = vsel %vm587_vm3, %v3026_v23, %v3028_v45 }
 0x5bc   :  { %2945 = vrot.lane.b32.xlu1 %v2938_v53, %s4805_s22  ;;  %v3062_v18 = vmul.f32 %v6702_v3, %v6942_v48  ;;  %v3107_v23 = vmul.f32 %v6700_v20, %v6774_v0 }
 0x5bd   :  { %2947 = vrot.lane.b32.xlu0 %v2940_v2, %s4805_s22  ;;  %v3017_v2 = vmul.f32 %v6696_v31, %v6803_v47  ;;  %v3074_v7 = vsel %vm587_vm3, %v3072_v43, %v3073_v32 }
 0x5be   :  { %v7092_v29 = vpop.permute.xlu1 %2356 }
 0x5bf   :  { %v7094_v38 = vpop.permute.xlu0 %2389  ;;  %v3031_v27 = vrot.slane %v3017_v2, 1 }
 0x5c0   :  { %2990 = vrot.lane.b32.xlu1 %v2982_v11, %s8241_s27  ;;  %v3016_v11 = vmul.f32 %v6696_v31, %v6787_v22 }
 0x5c1   :  { %3035 = vrot.lane.b32.xlu0 %v3027_v52, %s8242_s9  ;;  %v3034_v49 = vsel %vm587_vm3, %v3031_v27, %v3033_v30 }
 0x5c2   :  { %v7104_v21 = vpop.permute.xlu1 %2416  ;;  %v3030_v31 = vrot.slane %v3016_v11, 1  ;;  %v3065_v11 = vmul.f32 %v6702_v3, %v6964_v51 }
 0x5c3   :  { %v7108_v53 = vpop.permute.xlu0 %2449 }
 0x5c4   :  { %2992 = vrot.lane.b32.xlu1 %v2985_v62, %s8241_s27  ;;  %v3108_v62 = vmul.f32 %v6700_v20, %v6780_v61  ;;  %v3032_v2 = vsel %vm587_vm3, %v3030_v31, %v3031_v27  ;;  %v3119_v31 = vrot.slane %v3107_v23, 1  ;;  %v3109_v27 = vmul.f32 %v6700_v20, %v6942_v48 }
 0x5c5   :  { %2994 = vrot.lane.b32.xlu0 %v2987_v42, %s8241_s27  ;;  %v3075_v42 = vrot.slane %v3062_v18, 1 }
 0x5c6   :  { %v7120_v52 = vpop.permute.xlu1 %2420  ;;  %v3120_v43 = vrot.slane %v3108_v62, 1  ;;  %v3080_v62 = vrot.slane %v3065_v11, 1 }
 0x5c7   :  { %v7122_v50 = vpop.permute.xlu0 %2453  ;;  %v3076_v33 = vsel %vm587_vm3, %v3073_v32, %v3075_v42  ;;  %v3154_v32 = vmul.f32 %v6706_v60, %v6774_v0 }
 0x5c8   :  { %8251 = vst [vmem:[#allocation10_spill] sm:$0xff] %v7122_v50  ;;  %3037 = vrot.lane.b32.xlu1 %v3029_v54, %s8242_s9  ;;  %v3064_v54 = vmul.f32 %v6702_v3, %v6803_v47  ;;  %v3121_v30 = vsel %vm587_vm3, %v3119_v31, %v3120_v43 }
 0x5c9   :  { %3082 = vrot.lane.b32.xlu0 %v3074_v7, %s8243_s28  ;;  %v3063_v7 = vmul.f32 %v6702_v3, %v6787_v22 }
 0x5ca   :  { %v7132_v46 = vpop.permute.xlu1 %2451  ;;  %v3078_v24 = vrot.slane %v3064_v54, 1 }
 0x5cb   :  { %v7136_v45 = vpop.permute.xlu0 %2484  ;;  %v3077_v3 = vrot.slane %v3063_v7, 1  ;;  %v3112_v7 = vmul.f32 %v6700_v20, %v6964_v51 }
 0x5cc   :  { %3039 = vrot.lane.b32.xlu1 %v3032_v2, %s8242_s9  ;;  %v3155_v2 = vmul.f32 %v6706_v60, %v6780_v61  ;;  %v3081_v11 = vsel %vm587_vm3, %v3078_v24, %v3080_v62 }
 0x5cd   :  { %3041 = vrot.lane.b32.xlu0 %v3034_v49, %s8242_s9  ;;  %v3079_v54 = vsel %vm587_vm3, %v3077_v3, %v3078_v24  ;;  %v3122_v49 = vrot.slane %v3109_v27, 1  ;;  %v3166_v3 = vrot.slane %v3154_v32, 1  ;;  %v3156_v24 = vmul.f32 %v6706_v60, %v6942_v48 }
 0x5ce   :  { %v7148_v4 = vpop.permute.xlu1 %2422  ;;  %v3167_v31 = vrot.slane %v3155_v2, 1  ;;  %v3127_v2 = vrot.slane %v3112_v7, 1 }
 0x5cf   :  { %v7150_v18 = vpop.permute.xlu0 %2455  ;;  %v3123_v56 = vsel %vm587_vm3, %v3120_v43, %v3122_v49  ;;  %v3201_v43 = vmul.f32 %v6704_v63, %v6774_v0 }
 0x5d0   :  { %3084 = vrot.lane.b32.xlu1 %v3076_v33, %s8243_s28  ;;  %v3111_v33 = vmul.f32 %v6700_v20, %v6803_v47  ;;  %v3168_v62 = vsel %vm587_vm3, %v3166_v3, %v3167_v31 }
 0x5d1   :  { %3129 = vrot.lane.b32.xlu0 %v3121_v30, %s8244_s12  ;;  %v3110_v30 = vmul.f32 %v6700_v20, %v6787_v22 }
 0x5d2   :  { %v7160_v23 = vpop.permute.xlu1 %2482  ;;  %v3125_v1 = vrot.slane %v3111_v33, 1 }
 0x5d3   :  { %v7164_v42 = vpop.permute.xlu0 %2515  ;;  %v3124_v20 = vrot.slane %v3110_v30, 1  ;;  %v3159_v30 = vmul.f32 %v6706_v60, %v6964_v51 }
 0x5d4   :  { %3086 = vrot.lane.b32.xlu1 %v3079_v54, %s8243_s28  ;;  %v3202_v54 = vmul.f32 %v6704_v63, %v6780_v61  ;;  %v3128_v7 = vsel %vm587_vm3, %v3125_v1, %v3127_v2 }
 0x5d5   :  { %3088 = vrot.lane.b32.xlu0 %v3081_v11, %s8243_s28  ;;  %v3126_v33 = vsel %vm587_vm3, %v3124_v20, %v3125_v1  ;;  %v3169_v11 = vrot.slane %v3156_v24, 1  ;;  %v3213_v20 = vrot.slane %v3201_v43, 1  ;;  %v3203_v1 = vmul.f32 %v6704_v63, %v6942_v48 }
 0x5d6   :  { %v7176_v34 = vpop.permute.xlu1 %2486  ;;  %v3214_v3 = vrot.slane %v3202_v54, 1  ;;  %v3174_v54 = vrot.slane %v3159_v30, 1 }
 0x5d7   :  { %8252 = vst [vmem:[#allocation20_spill] sm:$0xff] %v7176_v34  ;;  %v7178_v27 = vpop.permute.xlu0 %2519 }
 0x5d8   :  { %8253 = vst [vmem:[#allocation27_spill] sm:$0xff] %v7178_v27  ;;  %3131 = vrot.lane.b32.xlu1 %v3123_v56, %s8244_s12  ;;  %v3158_v56 = vmul.f32 %v6706_v60, %v6803_v47  ;;  %v3215_v2 = vsel %vm587_vm3, %v3213_v20, %v3214_v3 }
 0x5d9   :  { %3176 = vrot.lane.b32.xlu0 %v3168_v62, %s8245_s23  ;;  %v3157_v62 = vmul.f32 %v6706_v60, %v6787_v22 }
 0x5da   :  { %v7188_v32 = vpop.permute.xlu1 %2517  ;;  %v3172_v34 = vrot.slane %v3158_v56, 1 }
 0x5db   :  { %8254 = vst [vmem:[#allocation16_spill] sm:$0xff] %v7188_v32  ;;  %v7192_v49 = vpop.permute.xlu0 %2550  ;;  %v3171_v60 = vrot.slane %v3157_v62, 1  ;;  %v3206_v62 = vmul.f32 %v6704_v63, %v6964_v51 }
 0x5dc   :  { %8255 = vst [vmem:[#allocation21_spill] sm:$0xff] %v7192_v49  ;;  %3133 = vrot.lane.b32.xlu1 %v3126_v33, %s8244_s12  ;;  %v3170_v49 = vsel %vm587_vm3, %v3167_v31, %v3169_v11  ;;  %v3249_v33 = vmul.f32 %v6710_v59, %v6780_v61  ;;  %v3248_v31 = vmul.f32 %v6710_v59, %v6774_v0 }
 0x5dd   :  { %3135 = vrot.lane.b32.xlu0 %v3128_v7, %s8244_s12  ;;  %v3173_v56 = vsel %vm587_vm3, %v3171_v60, %v3172_v34  ;;  %v3216_v7 = vrot.slane %v3203_v1, 1  ;;  %v3175_v30 = vsel %vm587_vm3, %v3172_v34, %v3174_v54  ;;  %v3250_v34 = vmul.f32 %v6710_v59, %v6942_v48 }
 0x5de   :  { %v7204_v27 = vpop.permute.xlu1 %2488  ;;  %v3261_v20 = vrot.slane %v3249_v33, 1  ;;  %v3260_v60 = vrot.slane %v3248_v31, 1  ;;  %v3221_v33 = vrot.slane %v3206_v62, 1 }
 0x5df   :  { %v7206_v24 = vpop.permute.xlu0 %2521  ;;  %v3217_v32 = vsel %vm587_vm3, %v3214_v3, %v3216_v7  ;;  %v3295_v3 = vmul.f32 %v6708_v8, %v6774_v0 }
 0x5e0   :  { %3178 = vrot.lane.b32.xlu1 %v3170_v49, %s8245_s23  ;;  %v3205_v49 = vmul.f32 %v6704_v63, %v6803_v47  ;;  %v3262_v54 = vsel %vm587_vm3, %v3260_v60, %v3261_v20 }
 0x5e1   :  { %3223 = vrot.lane.b32.xlu0 %v3215_v2, %s8246_s19  ;;  %v3204_v2 = vmul.f32 %v6704_v63, %v6787_v22 }
 0x5e2   :  { %v7216_v43 = vpop.permute.xlu1 %2548 }
 0x5e3   :  { %v7220_v11 = vpop.permute.xlu0 %2581  ;;  %v3218_v63 = vrot.slane %v3204_v2, 1  ;;  %v7257_v2 = vmul.f32 %v6708_v8, %v6803_v47 }
 0x5e4   :  { %8256 = vst [vmem:[#allocation31_spill] sm:$0xff] %v7220_v11  ;;  %3180 = vrot.lane.b32.xlu1 %v3173_v56, %s8245_s23  ;;  %v3219_v11 = vrot.slane %v3205_v49, 1  ;;  %v3296_v56 = vmul.f32 %v6708_v8, %v6780_v61 }
 0x5e5   :  { %3182 = vrot.lane.b32.xlu0 %v3175_v30, %s8245_s23  ;;  %v3263_v30 = vrot.slane %v3250_v34, 1  ;;  %v3307_v34 = vrot.slane %v3295_v3, 1  ;;  %v3344_v3 = vmul.f32 %v6714_v37, %v6942_v48 }
 0x5e6   :  { %v7232_v50 = vpop.permute.xlu1 %2552  ;;  %v3220_v49 = vsel %vm587_vm3, %v3218_v63, %v3219_v11  ;;  %v3222_v62 = vsel %vm587_vm3, %v3219_v11, %v3221_v33  ;;  %v3308_v60 = vrot.slane %v3296_v56, 1  ;;  %v3298_v63 = vmul.f32 %v6708_v8, %v6787_v22 }
 0x5e7   :  { %8257 = vst [vmem:[#allocation17_spill] sm:$0xff] %v7232_v50  ;;  %v7234_v1 = vpop.permute.xlu0 %2585  ;;  %v3264_v11 = vsel %vm587_vm3, %v3261_v20, %v3263_v30  ;;  %v3297_v56 = vmul.f32 %v6708_v8, %v6942_v48  ;;  %v3343_v20 = vmul.f32 %v6714_v37, %v6780_v61 }
 0x5e8   :  { %8258 = vst [vmem:[#allocation28_spill] sm:$0xff] %v7234_v1  ;;  %3225 = vrot.lane.b32.xlu1 %v3217_v32, %s8246_s19  ;;  %v3252_v32 = vmul.f32 %v6710_v59, %v6803_v47 }
 0x5e9   :  { %3270 = vrot.lane.b32.xlu0 %v3262_v54, %s8247_s6  ;;  %v3251_v54 = vmul.f32 %v6710_v59, %v6787_v22 }
 0x5ea   :  { %v7244_v31 = vpop.permute.xlu1 %2583  ;;  %v3266_v33 = vrot.slane %v3252_v32, 1 }
 0x5eb   :  { %8259 = vst [vmem:[#allocation34_spill] sm:$0xff] %v7244_v31  ;;  %v7248_v7 = vpop.permute.xlu0 %2616  ;;  %v3265_v50 = vrot.slane %v3251_v54, 1  ;;  %v7290_v54 = vmul.f32 %v6714_v37, %v6803_v47 }
 0x5ec   :  { %8260 = vst [vmem:[#allocation24_spill] sm:$0xff] %v7248_v7  ;;  %3227 = vrot.lane.b32.xlu1 %v3220_v49, %s8246_s19  ;;  %v3309_v49 = vsel %vm587_vm3, %v3307_v34, %v3308_v60 }
 0x5ed   :  { %3229 = vrot.lane.b32.xlu0 %v3222_v62, %s8246_s19  ;;  %v3313_v62 = vrot.slane %v7257_v2, 1  ;;  %v3267_v32 = vsel %vm587_vm3, %v3265_v50, %v3266_v33  ;;  %v3253_v2 = vmul.f32 %v6710_v59, %v6964_v51  ;;  %v3345_v50 = vmul.f32 %v6714_v37, %v6787_v22 }
 0x5ee   :  { %v7262_v1 = vpop.permute.xlu1 %2554 }
 0x5ef   :  { %v7266_v7 = vpop.permute.xlu0 %2587 }
 0x5f0   :  { %8261 = vst [vmem:[#allocation33_spill] sm:$0xff] %v7266_v7  ;;  %3272 = vrot.lane.b32.xlu1 %v3264_v11, %s8247_s6  ;;  %v3312_v7 = vrot.slane %v3298_v63, 1  ;;  %v3310_v11 = vrot.slane %v3297_v56, 1 }
 0x5f1   :  { %3317 = vrot.lane.b32.xlu0 %v3309_v49, %s8248_s14  ;;  %v3357_v49 = vrot.slane %v3344_v3, 1  ;;  %v3360_v3 = vrot.slane %v7290_v54, 1 }
 0x5f2   :  { %v7277_v31 = vpop.permute.xlu1 %2614  ;;  %v3314_v34 = vsel %vm587_vm3, %v3312_v7, %v3313_v62  ;;  %v3311_v59 = vsel %vm587_vm3, %v3308_v60, %v3310_v11  ;;  %v3390_v60 = vmul.f32 %v6712_v39, %v6780_v61 }
 0x5f3   :  { %v7281_v30 = vpop.permute.xlu0 %2647 }
 0x5f4   :  { %8262 = vst [vmem:[#allocation25_spill] sm:$0xff] %v7281_v30  ;;  %3274 = vrot.lane.b32.xlu1 %v3267_v32, %s8247_s6  ;;  %v3355_v30 = vrot.slane %v3343_v20, 1  ;;  %v3268_v32 = vrot.slane %v3253_v2, 1  ;;  %v3342_v20 = vmul.f32 %v6714_v37, %v6774_v0 }
 0x5f5   :  { %3321 = vrot.lane.b32.xlu0 %v3314_v34, %s8248_s14  ;;  %v3391_v34 = vmul.f32 %v6712_v39, %v6942_v48 }
 0x5f6   :  { %v7293_v63 = vpop.permute.xlu1 %2618  ;;  %v3358_v7 = vsel %vm587_vm3, %v3355_v30, %v3357_v49  ;;  %v3269_v2 = vsel %vm587_vm3, %v3266_v33, %v3268_v32  ;;  %v3300_v49 = vmul.f32 %v6708_v8, %v6964_v51  ;;  %v3392_v33 = vmul.f32 %v6712_v39, %v6787_v22 }
 0x5f7   :  { %8263 = vst [vmem:[#allocation29_spill] sm:$0xff] %v7293_v63  ;;  %v7297_v56 = vpop.permute.xlu0 %2620 }
 0x5f8   :  { %8264 = vst [vmem:[#allocation37_spill] sm:$0xff] %v7297_v56  ;;  %3319 = vrot.lane.b32.xlu1 %v3311_v59, %s8248_s14  ;;  %v3359_v56 = vrot.slane %v3345_v50, 1  ;;  %v3404_v59 = vrot.slane %v3391_v34, 1  ;;  %v3354_v50 = vrot.slane %v3342_v20, 1  ;;  %v7336_v20 = vmul.f32 %v6718_v14, %v6780_v61 }
 0x5f9   :  { %3366 = vrot.lane.b32.xlu0 %v3358_v7, %s8249_s3  ;;  %v7321_v7 = vmul.f32 %v6712_v39, %v6803_v47 }
 0x5fa   :  { %v7308_v63 = vpop.permute.xlu1 %2649  ;;  %v3361_v54 = vsel %vm587_vm3, %v3359_v56, %v3360_v3  ;;  %v3356_v8 = vsel %vm587_vm3, %v3354_v50, %v3355_v30  ;;  %v3476_v30 = vmul.f32 %v6718_v14, %v6774_v0  ;;  %v7352_v50 = vmul.f32 %v6718_v14, %v6803_v47 }
 0x5fb   :  { %8265 = vst [vmem:[#allocation38_spill] sm:$0xff] %v7308_v63  ;;  %v7312_v11 = vpop.permute.xlu0 %2680  ;;  %v3407_v34 = vrot.slane %v7321_v7, 1  ;;  %v3347_v7 = vmul.f32 %v6714_v37, %v6964_v51 }
 0x5fc   :  { %8266 = vst [vmem:[#allocation40_spill] sm:$0xff] %v7312_v11  ;;  %3276 = vrot.lane.b32.xlu1 %v3269_v2, %s8247_s6  ;;  %v3402_v11 = vrot.slane %v3390_v60, 1  ;;  %v3315_v2 = vrot.slane %v3300_v49, 1  ;;  %v3389_v60 = vmul.f32 %v6712_v39, %v6774_v0 }
 0x5fd   :  { %3368 = vrot.lane.b32.xlu0 %v3361_v54, %s8249_s3 }
 0x5fe   :  { %v7324_v63 = vpop.permute.xlu1 %2651  ;;  %v3405_v56 = vsel %vm587_vm3, %v3402_v11, %v3404_v59  ;;  %v3316_v59 = vsel %vm587_vm3, %v3313_v62, %v3315_v2  ;;  %v3488_v2 = vrot.slane %v3476_v30, 2  ;;  %v3525_v30 = vmul.f32 %v6722_v10, %v6942_v48 }
 0x5ff   :  { %8267 = vst [vmem:[#allocation32_spill] sm:$0xff] %v7324_v63  ;;  %v7328_v32 = vpop.permute.xlu0 %2653  ;;  %v3406_v63 = vrot.slane %v3392_v33, 1  ;;  %v3489_v33 = vrot.slane %v7336_v20, 2  ;;  %v2259_v20 = vmul.f32 %v6716_v26, %v6774_v0 }
 0x600   :  { %8268 = vst [vmem:[#allocation35_spill] sm:$0xff] %v7328_v32  ;;  %3364 = vrot.lane.b32.xlu1 %v3356_v8, %s8249_s3  ;;  %v3362_v32 = vrot.slane %v3347_v7, 1 }
 0x601   :  { %3413 = vrot.lane.b32.xlu0 %v3405_v56, %s8250_s29  ;;  %v3408_v8 = vsel %vm587_vm3, %v3406_v63, %v3407_v34  ;;  %v3401_v56 = vrot.slane %v3389_v60, 1  ;;  %v3394_v63 = vmul.f32 %v6712_v39, %v6964_v51  ;;  %v3490_v60 = vsel %vm1286_vm4, %v3488_v2, %v3489_v33 }
 0x602   :  { %v7341_v54 = vpop.permute.xlu1 %2682  ;;  %v2296_v7 = vadd.f32 %v6982_v58, %v2259_v20  ;;  %v3524_v39 = vmul.f32 %v6722_v10, %v6780_v61  ;;  %v8274_v2 = vrot.slane %v7352_v50, 2  ;;  %v3538_v20 = vrot.slane %v3525_v30, 2 }
 0x603   :  { %8269 = vst [vmem:[#allocation39_spill] sm:$0xff] %v7341_v54  ;;  %v7345_v49 = vpop.permute.xlu0 %2713  ;;  %v3479_v54 = vmul.f32 %v6718_v14, %v6787_v22 }
 0x604   :  { %8270 = vst [vmem:[#allocation36_spill] sm:$0xff] %v7345_v49  ;;  %3323 = vrot.lane.b32.xlu1 %v3316_v59, %s8248_s14  ;;  %v3403_v49 = vsel %vm587_vm3, %v3401_v56, %v3402_v11  ;;  %v2262_v11 = vmul.f32 %v6716_v26, %v6803_v47 }
 0x605   :  { %3415 = vrot.lane.b32.xlu0 %v3408_v8, %s8250_s29  ;;  %v3493_v8 = vrot.slane %v3479_v54, 2  ;;  %v3478_v54 = vmul.f32 %v6718_v14, %v6942_v48 }
 0x606   :  { %v7360_v62 = vpop.permute.xlu1 %2684  ;;  %v2299_v58 = vadd.f32 %v7036_v17, %v2262_v11 }
 0x607   :  { %8271 = vst [vmem:[#allocation42_spill] sm:$0xff] %v7360_v62  ;;  %v7362_v37 = vpop.permute.xlu0 %2686  ;;  %v3495_v62 = vsel %vm1286_vm4, %v3493_v8, %v8274_v2  ;;  %v3526_v8 = vmul.f32 %v6722_v10, %v6787_v22  ;;  %v3491_v11 = vrot.slane %v3478_v54, 2 }
 0x608   :  { %8272 = vst [vmem:[#allocation43_spill] sm:$0xff] %v7362_v37  ;;  %3411 = vrot.lane.b32.xlu1 %v3403_v49, %s8250_s29  ;;  %v3363_v49 = vsel %vm587_vm3, %v3360_v3, %v3362_v32  ;;  %v2329_v37 = vadd.f32 %v6996_v9, %v2296_v7  ;;  %v2260_v9 = vmul.f32 %v6716_v26, %v6780_v61 }
 0x609   :  { %3498 = vrot.lane.b32.xlu0 %v3490_v60, %s4802_s15  ;;  %v3409_v60 = vrot.slane %v3394_v63, 1  ;;  %v3536_v63 = vrot.slane %v3524_v39, 2  ;;  %v3572_v7 = vmul.f32 %v6720_v35, %v6942_v48  ;;  %v3540_v54 = vrot.slane %v3526_v8, 2 }
 0x60a   :  { %v7378_v56 = vpop.permute.xlu1 %2715  ;;  %v2362_v3 = vadd.f32 %v7048_v15, %v2329_v37  ;;  %v2297_v39 = vadd.f32 %v6992_v5, %v2260_v9  ;;  %v3492_v9 = vsel %vm1286_vm4, %v3489_v33, %v3491_v11  ;;  %v3573_v11 = vmul.f32 %v6720_v35, %v6787_v22 }
 0x60b   :  { %8273 = vst [vmem:[#allocation45_spill] sm:$0xff] %v7378_v56  ;;  %v7382_v59 = vpop.permute.xlu0 %2719  ;;  %v7395_v56 = vmul.f32 %v6722_v10, %v6803_v47  ;;  %v3410_v30 = vsel %vm587_vm3, %v3407_v34, %v3409_v60  ;;  %v3539_v15 = vsel %vm1286_vm4, %v3536_v63, %v3538_v20  ;;  %v7420_v34 = vmul.f32 %v6720_v35, %v6780_v61 }
 0x60c   :  { %3370 = vrot.lane.b32.xlu1 %v3363_v49, %s8249_s3  ;;  %v3523_v49 = vmul.f32 %v6722_v10, %v6774_v0  ;;  %v2395_v2 = vadd.f32 %v7052_v12, %v2362_v3  ;;  %v2330_v5 = vadd.f32 %v7020_v41, %v2297_v39 }
 0x60d   :  { %3502 = vrot.lane.b32.xlu0 %v3495_v62, %s4802_s15  ;;  %v2332_v62 = vadd.f32 %v7038_v57, %v2299_v58  ;;  %v3541_v37 = vrot.slane %v7395_v56, 2  ;;  %v3481_v58 = vmul.f32 %v6718_v14, %v6964_v51  ;;  %v2261_v14 = vmul.f32 %v6716_v26, %v6787_v22  ;;  %v8276_v56 = vld [vmem:[#allocation31_spill] sm:$0xff] }
 0x60e   :  { %v7399_v32 = vpop.permute.xlu1 %2717  ;;  %v3535_v41 = vrot.slane %v3523_v49, 2  ;;  %v3583_v33 = vrot.slane %v7420_v34, 2 }
 0x60f   :  { %v7405_v17 = vpop.permute.xlu0 %2802  ;;  %v2365_v57 = vadd.f32 %v7092_v29, %v2332_v62  ;;  %v3542_v12 = vsel %vm1286_vm4, %v3540_v54, %v3541_v37  ;;  %v7439_v29 = vmul.f32 %v6720_v35, %v6803_v47  ;;  %v3496_v8 = vrot.slane %v3481_v58, 2 }
 0x610   :  { %3417 = vrot.lane.b32.xlu1 %v3410_v30, %s8250_s29  ;;  %v3585_v30 = vrot.slane %v3572_v7, 2  ;;  %v2298_v7 = vadd.f32 %v7008_v25, %v2261_v14  ;;  %v2363_v62 = vadd.f32 %v7024_v13, %v2330_v5  ;;  %v3537_v26 = vsel %vm1286_vm4, %v3535_v41, %v3536_v63 }
 0x611   :  { %3547 = vrot.lane.b32.xlu0 %v3539_v15, %s4803_s16  ;;  %v2428_v15 = vadd.f32 %v7104_v21, %v2395_v2  ;;  %v2398_v21 = vadd.f32 %v7094_v38, %v2365_v57  ;;  %v3588_v2 = vrot.slane %v7439_v29, 2  ;;  %v3619_v57 = vmul.f32 %v6724_v44, %v6942_v48  ;;  %v8288_v29 = vld [vmem:[#allocation27_spill] sm:$0xff] }
 0x612   :  { %v7424_v60 = vpop.permute.xlu1 %2800  ;;  %v3586_v49 = vsel %vm1286_vm4, %v3583_v33, %v3585_v30  ;;  %v2396_v25 = vadd.f32 %v7076_v16, %v2363_v62  ;;  %v3570_v13 = vmul.f32 %v6720_v35, %v6774_v0  ;;  %v3528_v58 = vmul.f32 %v6722_v10, %v6964_v51 }
 0x613   :  { %v7429_v20 = vpop.permute.xlu0 %2847  ;;  %v2461_v34 = vadd.f32 %v7108_v53, %v2428_v15  ;;  %v2431_v38 = vadd.f32 %v7148_v4, %v2398_v21  ;;  %v3587_v53 = vrot.slane %v3573_v11, 2  ;;  %v7471_v4 = vmul.f32 %v6724_v44, %v6780_v61 }
 0x614   :  { %3500 = vrot.lane.b32.xlu1 %v3492_v9, %s4802_s15  ;;  %v7477_v16 = vmul.f32 %v6744_v40, %v6780_v61  ;;  %v2331_v5 = vadd.f32 %v7010_v28, %v2298_v7  ;;  %v7487_v15 = vmul.f32 %v6724_v44, %v6803_v47  ;;  %v2741_v10 = vmul.f32 %v6744_v40, %v6942_v48 }
 0x615   :  { %3549 = vrot.lane.b32.xlu0 %v3542_v12, %s4803_s16  ;;  %v2494_v63 = vadd.f32 %v7160_v23, %v2461_v34  ;;  %v8275_v23 = vrot.slane %v7352_v50, 2  ;;  %v2464_v12 = vadd.f32 %v7150_v18, %v2431_v38  ;;  %v3589_v28 = vsel %vm1286_vm4, %v3587_v53, %v3588_v2 }
 0x616   :  { %v7446_v3 = vpop.permute.xlu1 %2804  ;;  %v3632_v14 = vrot.slane %v3619_v57, 2  ;;  %v2364_v50 = vadd.f32 %v7064_v55, %v2331_v5  ;;  %v2429_v41 = vadd.f32 %v7080_v36, %v2396_v25  ;;  %v3582_v21 = vrot.slane %v3570_v13, 2 }
 0x617   :  { %v7452_v39 = vpop.permute.xlu0 %2806  ;;  %v3497_v30 = vsel %vm1286_vm4, %v8275_v23, %v3496_v8  ;;  %v3620_v18 = vmul.f32 %v6724_v44, %v6787_v22  ;;  %v2527_v8 = vadd.f32 %v7164_v42, %v2494_v63  ;;  %v2497_v11 = vadd.f32 %v7204_v27, %v2464_v12 }
 0x618   :  { %3545 = vrot.lane.b32.xlu1 %v3537_v26, %s4803_s16  ;;  %v3630_v62 = vrot.slane %v7471_v4, 2  ;;  %v3543_v26 = vrot.slane %v3528_v58, 2  ;;  %v3584_v36 = vsel %vm1286_vm4, %v3582_v21, %v3583_v33  ;;  %v3635_v34 = vrot.slane %v7487_v15, 2 }
 0x619   :  { %3594 = vrot.lane.b32.xlu0 %v3586_v49, %s4804_s21  ;;  %v2462_v49 = vadd.f32 %v7132_v46, %v2429_v41  ;;  %v2560_v38 = vadd.f32 %v7216_v43, %v2527_v8  ;;  %v2752_v57 = vrot.slane %v7477_v16, 1  ;;  %v3666_v27 = vmul.f32 %v6726_v19, %v6942_v48  ;;  %v8278_v8 = vld [vmem:[#allocation10_spill] sm:$0xff] }
 0x61a   :  { %v7467_v54 = vpop.permute.xlu1 %2849  ;;  %v3633_v42 = vsel %vm1286_vm4, %v3630_v62, %v3632_v14  ;;  %v2397_v25 = vadd.f32 %v7066_v6, %v2364_v50  ;;  %v2754_v46 = vrot.slane %v2741_v10, 1  ;;  %v3634_v13 = vrot.slane %v3620_v18, 2 }
 0x61b   :  { %v7480_v9 = vpop.permute.xlu0 %2894  ;;  %v3617_v33 = vmul.f32 %v6724_v44, %v6774_v0  ;;  %v2530_v43 = vadd.f32 %v7206_v24, %v2497_v11  ;;  %v7524_v63 = vmul.f32 %v6744_v40, %v6774_v0  ;;  %v3544_v4 = vsel %vm1286_vm4, %v3541_v37, %v3543_v26 }
 0x61c   :  { %3504 = vrot.lane.b32.xlu1 %v3497_v30, %s4802_s15  ;;  %v7533_v6 = vmul.f32 %v6726_v19, %v6780_v61  ;;  %v2430_v58 = vadd.f32 %v7120_v52, %v2397_v25  ;;  %v2495_v5 = vadd.f32 %v7136_v45, %v2462_v49  ;;  %v3636_v24 = vsel %vm1286_vm4, %v3634_v13, %v3635_v34 }
 0x61d   :  { %3596 = vrot.lane.b32.xlu0 %v3589_v28, %s4804_s21  ;;  %v3575_v30 = vmul.f32 %v6720_v35, %v6964_v51  ;;  %v2593_v12 = vadd.f32 %v8276_v56, %v2560_v38  ;;  %v2563_v37 = vadd.f32 %v7262_v1, %v2530_v43  ;;  %v3679_v10 = vrot.slane %v3666_v27, 2  ;;  %v8277_v28 = vld [vmem:[#allocation16_spill] sm:$0xff] }
 0x61e   :  { %v7503_v7 = vpop.permute.xlu1 %2851  ;;  %v7549_v52 = vmul.f32 %v6726_v19, %v6803_v47  ;;  %v7553_v45 = vmul.f32 %v6744_v40, %v6803_v47  ;;  %v2528_v14 = vadd.f32 %v8277_v28, %v2495_v5  ;;  %v3629_v35 = vrot.slane %v3617_v33, 2  ;;  %v8281_v33 = vld [vmem:[#allocation20_spill] sm:$0xff]  ;;  %v8283_v5 = vld [vmem:[#allocation25_spill] sm:$0xff] }
 0x61f   :  { %v7507_v55 = vpop.permute.xlu0 %2853  ;;  %v2626_v50 = vadd.f32 %v7277_v31, %v2593_v12  ;;  %v7561_v1 = vsel %vm587_vm3, %v2752_v57, %v2754_v46  ;;  %v3677_v21 = vrot.slane %v7533_v6, 2  ;;  %v3667_v18 = vmul.f32 %v6726_v19, %v6787_v22  ;;  %v8279_v31 = vld [vmem:[#allocation18_spill] sm:$0xff] }
 0x620   :  { %3592 = vrot.lane.b32.xlu1 %v3584_v36, %s4804_s21  ;;  %v2463_v11 = vadd.f32 %v8278_v8, %v2430_v58  ;;  %v3631_v49 = vsel %vm1286_vm4, %v3629_v35, %v3630_v62  ;;  %v3590_v36 = vrot.slane %v3575_v30, 2  ;;  %v3713_v38 = vmul.f32 %v8279_v31, %v6942_v48 }
 0x621   :  { %3641 = vrot.lane.b32.xlu0 %v3633_v42, %s4805_s22  ;;  %v8280_v42 = vld [vmem:[#allocation33_spill] sm:$0xff]  ;;  %v2751_v25 = vrot.slane %v7524_v63, 1  ;;  %v3680_v46 = vsel %vm1286_vm4, %v3677_v21, %v3679_v10  ;;  %v3682_v13 = vrot.slane %v7549_v52, 2  ;;  %v2744_v62 = vmul.f32 %v6744_v40, %v6964_v51  ;;  %v8285_v10 = vld [vmem:[#allocation34_spill] sm:$0xff] }
 0x622   :  { %v7526_v53 = vpop.permute.xlu1 %2896  ;;  %v2596_v27 = vadd.f32 %v8280_v42, %v2563_v37  ;;  %v2496_v43 = vadd.f32 %v8281_v33, %v2463_v11  ;;  %v3664_v58 = vmul.f32 %v6726_v19, %v6774_v0  ;;  %v2659_v63 = vadd.f32 %v8283_v5, %v2626_v50  ;;  %v8286_v11 = vld [vmem:[#allocation40_spill] sm:$0xff]  ;;  %v8287_v42 = vld [vmem:[#allocation35_spill] sm:$0xff] }
 0x623   :  { %v7537_v23 = vpop.permute.xlu0 %2941  ;;  %v3681_v12 = vrot.slane %v3667_v18, 2  ;;  %v7592_v37 = vmul.f32 %v8279_v31, %v6780_v61  ;;  %v3591_v35 = vsel %vm1286_vm4, %v3588_v2, %v3590_v36  ;;  %v3726_v8 = vrot.slane %v3713_v38, 2  ;;  %v8289_v33 = vld [vmem:[#allocation36_spill] sm:$0xff] }
 0x624   :  { %3551 = vrot.lane.b32.xlu1 %v3544_v4, %s4803_s16  ;;  %v8282_v4 = vld [vmem:[#allocation21_spill] sm:$0xff]  ;;  %v3622_v50 = vmul.f32 %v6724_v44, %v6964_v51  ;;  %v2529_v2 = vadd.f32 %v8288_v29, %v2496_v43  ;;  %v2757_v36 = vrot.slane %v7553_v45, 1  ;;  %v2759_v38 = vrot.slane %v2744_v62, 1  ;;  %v8292_v43 = vld [vmem:[#allocation24_spill] sm:$0xff]  ;;  %v8294_v29 = vld [vmem:[#allocation38_spill] sm:$0xff] }
 0x625   :  { %3643 = vrot.lane.b32.xlu0 %v3636_v24, %s4805_s22  ;;  %v2561_v6 = vadd.f32 %v8282_v4, %v2528_v14  ;;  %v8284_v24 = vld [vmem:[#allocation37_spill] sm:$0xff]  ;;  %v3676_v44 = vrot.slane %v3664_v58, 2  ;;  %v3669_v16 = vmul.f32 %v6726_v19, %v6964_v51 }
 0x626   :  { %v7563_v41 = vpop.permute.xlu1 %2898  ;;  %v2629_v30 = vadd.f32 %v8284_v24, %v2596_v27  ;;  %v3683_v27 = vsel %vm1286_vm4, %v3681_v12, %v3682_v13  ;;  %v3724_v24 = vrot.slane %v7592_v37, 2  ;;  %v8291_v12 = vld [vmem:[#allocation17_spill] sm:$0xff]  ;;  %v3637_v58 = vrot.slane %v3622_v50, 2 }
 0x627   :  { %v7569_v26 = vpop.permute.xlu0 %2900  ;;  %v2594_v28 = vadd.f32 %v8285_v10, %v2561_v6  ;;  %v8290_v6 = vld [vmem:[#allocation43_spill] sm:$0xff]  ;;  %v2562_v10 = vadd.f32 %v8291_v12, %v2529_v2  ;;  %v3678_v62 = vsel %vm1286_vm4, %v3676_v44, %v3677_v21  ;;  %v2760_v21 = vsel %vm587_vm3, %v2757_v36, %v2759_v38 }
 0x628   :  { %3639 = vrot.lane.b32.xlu1 %v3631_v49, %s4805_s22  ;;  %v2692_v49 = vadd.f32 %v8286_v11, %v2659_v63  ;;  %v2662_v18 = vadd.f32 %v8287_v42, %v2629_v30  ;;  %v3714_v30 = vmul.f32 %v8279_v31, %v6787_v22  ;;  %v3727_v42 = vsel %vm1286_vm4, %v3724_v24, %v3726_v8 }
 0x629   :  { %3688 = vrot.lane.b32.xlu0 %v3680_v46, %s8241_s27  ;;  %v7610_v46 = vmul.f32 %v8279_v31, %v6803_v47  ;;  %v3638_v12 = vsel %vm1286_vm4, %v3635_v34, %v3637_v58 }
 0x62a   :  { %v7588_v56 = vpop.permute.xlu1 %2943  ;;  %v2725_v4 = vadd.f32 %v8289_v33, %v2692_v49  ;;  %v2695_v5 = vadd.f32 %v8290_v6, %v2662_v18  ;;  %v8293_v18 = vld [vmem:[#allocation22_spill] sm:$0xff]  ;;  %v3728_v44 = vrot.slane %v3714_v30, 2  ;;  %v8296_v6 = vld [vmem:[#allocation39_spill] sm:$0xff] }
 0x62b   :  { %v7595_v14 = vpop.permute.xlu0 %2988  ;;  %v3729_v37 = vrot.slane %v7610_v46, 2  ;;  %v3759_v33 = vmul.f32 %v8293_v18, %v6780_v61  ;;  %v3761_v58 = vmul.f32 %v8293_v18, %v6787_v22 }
 0x62c   :  { %3598 = vrot.lane.b32.xlu1 %v3591_v35, %s4804_s21  ;;  %v2627_v35 = vadd.f32 %v8292_v43, %v2594_v28  ;;  %v2728_v49 = vadd.f32 %v7382_v59, %v2695_v5  ;;  %v2753_v28 = vsel %vm587_vm3, %v2751_v25, %v2752_v57  ;;  %v3711_v59 = vmul.f32 %v8279_v31, %v6774_v0  ;;  %v8295_v57 = vld [vmem:[#allocation28_spill] sm:$0xff] }
 0x62d   :  { %3690 = vrot.lane.b32.xlu0 %v3683_v27, %s8241_s27  ;;  %v3760_v27 = vmul.f32 %v8293_v18, %v6942_v48  ;;  %v2765_v8 = vadd.f32 %v2753_v28, %v2725_v4  ;;  %v2595_v25 = vadd.f32 %v8295_v57, %v2562_v10  ;;  %v7656_v4 = vmul.f32 %v8293_v18, %v6803_v47 }
 0x62e   :  { %v7617_v63 = vpop.permute.xlu1 %2945  ;;  %v2660_v2 = vadd.f32 %v8294_v29, %v2627_v35  ;;  %v2768_v43 = vadd.f32 %v2760_v21, %v2728_v49  ;;  %v3730_v19 = vsel %vm1286_vm4, %v3728_v44, %v3729_v37  ;;  %v8297_v35 = vld [vmem:[#allocation29_spill] sm:$0xff]  ;;  %v3723_v34 = vrot.slane %v3711_v59, 2 }
 0x62f   :  { %v7624_v11 = vpop.permute.xlu0 %2947  ;;  %v2812_v30 = vadd.f32 %v7424_v60, %v2765_v8  ;;  %v3773_v10 = vrot.slane %v3760_v27, 2  ;;  %v2742_v60 = vmul.f32 %v6744_v40, %v6787_v22  ;;  %v3684_v28 = vrot.slane %v3669_v16, 2  ;;  %v8299_v27 = vld [vmem:[#allocation32_spill] sm:$0xff] }
 0x630   :  { %3686 = vrot.lane.b32.xlu1 %v3678_v62, %s8241_s27  ;;  %v2693_v5 = vadd.f32 %v8296_v6, %v2660_v2  ;;  %v2628_v62 = vadd.f32 %v8297_v35, %v2595_v25  ;;  %v2815_v49 = vadd.f32 %v7452_v39, %v2768_v43  ;;  %v3771_v2 = vrot.slane %v3759_v33, 2  ;;  %v8300_v33 = vld [vmem:[#allocation5_spill] sm:$0xff]  ;;  %v8301_v6 = vld [vmem:[#allocation42_spill] sm:$0xff] }
 0x631   :  { %3735 = vrot.lane.b32.xlu0 %v3727_v42, %s8242_s9  ;;  %v8298_v42 = vld [vmem:[#allocation45_spill] sm:$0xff]  ;;  %v3725_v44 = vsel %vm1286_vm4, %v3723_v34, %v3724_v24  ;;  %v3776_v57 = vrot.slane %v7656_v4, 2  ;;  %v3758_v59 = vmul.f32 %v8293_v18, %v6774_v0  ;;  %v2859_v25 = vadd.f32 %v7429_v20, %v2812_v30 }
 0x632   :  { %v7643_v50 = vpop.permute.xlu1 %2990  ;;  %v2726_v15 = vadd.f32 %v8298_v42, %v2693_v5  ;;  %v2661_v21 = vadd.f32 %v8299_v27, %v2628_v62  ;;  %v2862_v40 = vadd.f32 %v7507_v55, %v2815_v49  ;;  %v3774_v39 = vsel %vm1286_vm4, %v3771_v2, %v3773_v10 }
 0x633   :  { %v3036_v38 = vpop.permute.xlu0 %3035  ;;  %v3807_v16 = vmul.f32 %v8300_v33, %v6942_v48  ;;  %v7689_v43 = vmul.f32 %v8300_v33, %v6780_v61  ;;  %v2756_v20 = vrot.slane %v2742_v60, 1  ;;  %v2906_v55 = vadd.f32 %v7480_v9, %v2859_v25 }
 0x634   :  { %3645 = vrot.lane.b32.xlu1 %v3638_v12, %s4805_s22  ;;  %v2694_v5 = vadd.f32 %v8301_v6, %v2661_v21  ;;  %v2766_v24 = vadd.f32 %v7561_v1, %v2726_v15  ;;  %v3775_v12 = vrot.slane %v3761_v58, 2  ;;  %v2909_v30 = vadd.f32 %v7569_v26, %v2862_v40 }
 0x635   :  { %3737 = vrot.lane.b32.xlu0 %v3730_v19, %s8242_s9  ;;  %v3685_v10 = vsel %vm1286_vm4, %v3682_v13, %v3684_v28  ;;  %v3770_v42 = vrot.slane %v3758_v59, 2  ;;  %v3716_v15 = vmul.f32 %v8279_v31, %v6964_v51  ;;  %v2953_v9 = vadd.f32 %v7537_v23, %v2906_v55 }
 0x636   :  { %v7671_v29 = vpop.permute.xlu1 %2992  ;;  %v2727_v35 = vadd.f32 %v7399_v32, %v2694_v5  ;;  %v3777_v62 = vsel %vm1286_vm4, %v3775_v12, %v3776_v57  ;;  %v2956_v26 = vadd.f32 %v7624_v11, %v2909_v30  ;;  %v3820_v52 = vrot.slane %v3807_v16, 2 }
 0x637   :  { %v2995_v8 = vpop.permute.xlu0 %2994  ;;  %v7707_v13 = vmul.f32 %v8300_v33, %v6803_v47  ;;  %v2813_v32 = vadd.f32 %v7405_v17, %v2766_v24  ;;  %v2758_v34 = vsel %vm587_vm3, %v2756_v20, %v2757_v36  ;;  %v3818_v31 = vrot.slane %v7689_v43, 2  ;;  %v8302_v36 = vld [vmem:[#allocation12_spill] sm:$0xff] }
 0x638   :  { %3733 = vrot.lane.b32.xlu1 %v3725_v44, %s8242_s9  ;;  %v3000_v23 = vadd.f32 %v7595_v14, %v2953_v9  ;;  %v3003_v11 = vadd.f32 %v2995_v8, %v2956_v26  ;;  %v3772_v60 = vsel %vm1286_vm4, %v3770_v42, %v3771_v2  ;;  %v3808_v49 = vmul.f32 %v8300_v33, %v6787_v22  ;;  %v8303_v9 = vld [vmem:[#allocation19_spill] sm:$0xff] }
 0x639   :  { %3782 = vrot.lane.b32.xlu0 %v3774_v39, %s8243_s28  ;;  %v2767_v28 = vadd.f32 %v2758_v34, %v2727_v35  ;;  %v2860_v17 = vadd.f32 %v7467_v54, %v2813_v32  ;;  %v3731_v45 = vrot.slane %v3716_v15, 2  ;;  %v3854_v21 = vmul.f32 %v8302_v36, %v6942_v48 }
 0x63a   :  { %v3038_v19 = vpop.permute.xlu1 %3037  ;;  %v3047_v44 = vadd.f32 %v3036_v38, %v3000_v23  ;;  %v3821_v14 = vsel %vm1286_vm4, %v3818_v31, %v3820_v52  ;;  %v3823_v8 = vrot.slane %v7707_v13, 2  ;;  %v3805_v54 = vmul.f32 %v8300_v33, %v6774_v0 }
 0x63b   :  { %v3083_v1 = vpop.permute.xlu0 %3082  ;;  %v2814_v2 = vadd.f32 %v7446_v3, %v2767_v28  ;;  %v2907_v25 = vadd.f32 %v7526_v53, %v2860_v17  ;;  %v3822_v16 = vrot.slane %v3808_v49, 2  ;;  %v3853_v38 = vmul.f32 %v8302_v36, %v6780_v61 }
 0x63c   :  { %3692 = vrot.lane.b32.xlu1 %v3685_v10, %s8241_s27  ;;  %v3094_v40 = vadd.f32 %v3083_v1, %v3047_v44  ;;  %v3732_v3 = vsel %vm1286_vm4, %v3729_v37, %v3731_v45  ;;  %v3763_v53 = vmul.f32 %v8293_v18, %v6964_v51  ;;  %v3867_v20 = vrot.slane %v3854_v21, 2 }
 0x63d   :  { %3784 = vrot.lane.b32.xlu0 %v3777_v62, %s8243_s28  ;;  %v2861_v6 = vadd.f32 %v7503_v7, %v2814_v2  ;;  %v2954_v5 = vadd.f32 %v7588_v56, %v2907_v25  ;;  %v3824_v43 = vsel %vm1286_vm4, %v3822_v16, %v3823_v8  ;;  %v7745_v7 = vmul.f32 %v8302_v36, %v6803_v47 }
 0x63e   :  { %v3040_v58 = vpop.permute.xlu1 %3039  ;;  %v3817_v37 = vrot.slane %v3805_v54, 2  ;;  %v3865_v55 = vrot.slane %v3853_v38, 2  ;;  %v3855_v30 = vmul.f32 %v8302_v36, %v6787_v22  ;;  %v3778_v42 = vrot.slane %v3763_v53, 2 }
 0x63f   :  { %v3042_v27 = vpop.permute.xlu0 %3041  ;;  %v2908_v56 = vadd.f32 %v7563_v41, %v2861_v6  ;;  %v3001_v46 = vadd.f32 %v7643_v50, %v2954_v5  ;;  %v3870_v50 = vrot.slane %v7745_v7, 2  ;;  %v3901_v26 = vmul.f32 %v8303_v9, %v6942_v48 }
 0x640   :  { %v3050_v59 = vadd.f32 %v3042_v27, %v3003_v11  ;;  %3780 = vrot.lane.b32.xlu1 %v3772_v60, %s8243_s28  ;;  %v3819_v62 = vsel %vm1286_vm4, %v3817_v37, %v3818_v31  ;;  %v3868_v41 = vsel %vm1286_vm4, %v3865_v55, %v3867_v20  ;;  %v3869_v34 = vrot.slane %v3855_v30, 2 }
 0x641   :  { %3829 = vrot.lane.b32.xlu0 %v3821_v14, %s8244_s12  ;;  %v2955_v10 = vadd.f32 %v7617_v63, %v2908_v56  ;;  %v3048_v35 = vadd.f32 %v3038_v19, %v3001_v46  ;;  %v3852_v63 = vmul.f32 %v8302_v36, %v6774_v0  ;;  %v3900_v31 = vmul.f32 %v8303_v9, %v6780_v61 }
 0x642   :  { %v3085_v39 = vpop.permute.xlu1 %3084  ;;  %v3779_v49 = vsel %vm1286_vm4, %v3776_v57, %v3778_v42  ;;  %v3871_v17 = vsel %vm1286_vm4, %v3869_v34, %v3870_v50  ;;  %v3914_v27 = vrot.slane %v3901_v26, 2  ;;  %v3899_v38 = vmul.f32 %v8303_v9, %v6774_v0 }
 0x643   :  { %v3130_v24 = vpop.permute.xlu0 %3129  ;;  %v3002_v52 = vadd.f32 %v7671_v29, %v2955_v10  ;;  %v3095_v32 = vadd.f32 %v3085_v39, %v3048_v35  ;;  %v3810_v29 = vmul.f32 %v8300_v33, %v6964_v51  ;;  %v3864_v4 = vrot.slane %v3852_v63, 2  ;;  %v8304_v39 = vld [vmem:[#allocation23_spill] sm:$0xff] }
 0x644   :  { %v3141_v12 = vadd.f32 %v3130_v24, %v3094_v40  ;;  %3739 = vrot.lane.b32.xlu1 %v3732_v3, %s8242_s9  ;;  %v3912_v21 = vrot.slane %v3900_v31, 2  ;;  %v3902_v33 = vmul.f32 %v8303_v9, %v6787_v22  ;;  %v3948_v16 = vmul.f32 %v8304_v39, %v6942_v48 }
 0x645   :  { %3831 = vrot.lane.b32.xlu0 %v3824_v43, %s8244_s12  ;;  %v3049_v23 = vadd.f32 %v3040_v58, %v3002_v52  ;;  %v7776_v58 = vmul.f32 %v8303_v9, %v6803_v47  ;;  %v3866_v14 = vsel %vm1286_vm4, %v3864_v4, %v3865_v55  ;;  %v3825_v2 = vrot.slane %v3810_v29, 2 }
 0x646   :  { %v3087_v18 = vpop.permute.xlu1 %3086  ;;  %v3915_v54 = vsel %vm1286_vm4, %v3912_v21, %v3914_v27  ;;  %v3916_v5 = vrot.slane %v3902_v33, 2  ;;  %v3947_v24 = vmul.f32 %v8304_v39, %v6780_v61  ;;  %v3857_v43 = vmul.f32 %v8302_v36, %v6964_v51 }
 0x647   :  { %v3089_v1 = vpop.permute.xlu0 %3088  ;;  %v3096_v45 = vadd.f32 %v3087_v18, %v3049_v23  ;;  %v3917_v40 = vrot.slane %v7776_v58, 2  ;;  %v3961_v46 = vrot.slane %v3948_v16, 2  ;;  %v7803_v37 = vmul.f32 %v8304_v39, %v6803_v47 }
 0x648   :  { %v3097_v15 = vadd.f32 %v3089_v1, %v3050_v59  ;;  %3827 = vrot.lane.b32.xlu1 %v3819_v62, %s8244_s12  ;;  %v3911_v13 = vrot.slane %v3899_v38, 2  ;;  %v3949_v36 = vmul.f32 %v8304_v39, %v6787_v22  ;;  %v3872_v35 = vrot.slane %v3857_v43, 2 }
 0x649   :  { %3876 = vrot.lane.b32.xlu0 %v3868_v41, %s8245_s23  ;;  %v3918_v56 = vsel %vm1286_vm4, %v3916_v5, %v3917_v40  ;;  %v3964_v42 = vrot.slane %v7803_v37, 2  ;;  %v3946_v26 = vmul.f32 %v8304_v39, %v6774_v0  ;;  %v3904_v23 = vmul.f32 %v8303_v9, %v6964_v51 }
 0x64a   :  { %v3132_v19 = vpop.permute.xlu1 %3131  ;;  %v3913_v10 = vsel %vm1286_vm4, %v3911_v13, %v3912_v21  ;;  %v3873_v31 = vsel %vm1286_vm4, %v3870_v50, %v3872_v35  ;;  %v3951_v5 = vmul.f32 %v8304_v39, %v6964_v51 }
 0x64b   :  { %v3142_v11 = vadd.f32 %v3132_v19, %v3095_v32  ;;  %v3177_v60 = vpop.permute.xlu0 %3176  ;;  %v3963_v32 = vrot.slane %v3949_v36, 2  ;;  %v3958_v7 = vrot.slane %v3946_v26, 2  ;;  %v3919_v4 = vrot.slane %v3904_v23, 2  ;;  %v8307_v36 = vld [vmem:[#allocation26_spill] sm:$0xff] }
 0x64c   :  { %v3188_v28 = vadd.f32 %v3177_v60, %v3141_v12  ;;  %3786 = vrot.lane.b32.xlu1 %v3779_v49, %s8243_s28  ;;  %v3826_v12 = vsel %vm1286_vm4, %v3823_v8, %v3825_v2  ;;  %v3959_v8 = vrot.slane %v3947_v24, 2  ;;  %v3966_v13 = vrot.slane %v3951_v5, 2 }
 0x64d   :  { %3878 = vrot.lane.b32.xlu0 %v3871_v17, %s8245_s23  ;;  %v3965_v60 = vsel %vm1286_vm4, %v3963_v32, %v3964_v42  ;;  %v4090_v37 = vmul.f32 %v8307_v36, %v6787_v22 }
 0x64e   :  { %v3134_v57 = vpop.permute.xlu1 %3133  ;;  %v3962_v62 = vsel %vm1286_vm4, %v3959_v8, %v3961_v46 }
 0x64f   :  { %v3143_v44 = vadd.f32 %v3134_v57, %v3096_v45  ;;  %v3136_v59 = vpop.permute.xlu0 %3135  ;;  %v3960_v45 = vsel %vm1286_vm4, %v3958_v7, %v3959_v8 }
 0x650   :  { %v3144_v25 = vadd.f32 %v3136_v59, %v3097_v15  ;;  %3874 = vrot.lane.b32.xlu1 %v3866_v14, %s8245_s23  ;;  %v8305_v15 = vld [vmem:[#allocation9_spill] sm:$0xff] }
 0x651   :  { %3923 = vrot.lane.b32.xlu0 %v3915_v54, %s8246_s19  ;;  %v3995_v41 = vmul.f32 %v8305_v15, %v6942_v48  ;;  %v3994_v63 = vmul.f32 %v8305_v15, %v6780_v61  ;;  %v7830_v29 = vmul.f32 %v8305_v15, %v6803_v47  ;;  %v3996_v9 = vmul.f32 %v8305_v15, %v6787_v22 }
 0x652   :  { %v3179_v6 = vpop.permute.xlu1 %3178  ;;  %v3993_v14 = vmul.f32 %v8305_v15, %v6774_v0  ;;  %v3998_v32 = vmul.f32 %v8305_v15, %v6964_v51 }
 0x653   :  { %v3189_v3 = vadd.f32 %v3179_v6, %v3142_v11  ;;  %v3224_v53 = vpop.permute.xlu0 %3223  ;;  %v4008_v49 = vrot.slane %v3995_v41, 2  ;;  %v4006_v50 = vrot.slane %v3994_v63, 2  ;;  %v4011_v33 = vrot.slane %v7830_v29, 2 }
 0x654   :  { %v3235_v20 = vadd.f32 %v3224_v53, %v3188_v28  ;;  %3833 = vrot.lane.b32.xlu1 %v3826_v12, %s8244_s12  ;;  %v3920_v6 = vsel %vm1286_vm4, %v3917_v40, %v3919_v4  ;;  %v4005_v58 = vrot.slane %v3993_v14, 2  ;;  %v4013_v7 = vrot.slane %v3998_v32, 2 }
 0x655   :  { %3925 = vrot.lane.b32.xlu0 %v3918_v56, %s8246_s19  ;;  %v4009_v21 = vsel %vm1286_vm4, %v4006_v50, %v4008_v49 }
 0x656   :  { %v3181_v18 = vpop.permute.xlu1 %3180  ;;  %v4007_v46 = vsel %vm1286_vm4, %v4005_v58, %v4006_v50 }
 0x657   :  { %v3190_v55 = vadd.f32 %v3181_v18, %v3143_v44  ;;  %v3183_v30 = vpop.permute.xlu0 %3182  ;;  %v8306_v44 = vld [vmem:[#allocation13_spill] sm:$0xff] }
 0x658   :  { %v3191_v1 = vadd.f32 %v3183_v30, %v3144_v25  ;;  %3921 = vrot.lane.b32.xlu1 %v3913_v10, %s8246_s19  ;;  %v4042_v59 = vmul.f32 %v8306_v44, %v6942_v48  ;;  %v4010_v25 = vrot.slane %v3996_v9, 2  ;;  %v4041_v54 = vmul.f32 %v8306_v44, %v6780_v61 }
 0x659   :  { %3970 = vrot.lane.b32.xlu0 %v3962_v62, %s8247_s6  ;;  %v7857_v12 = vmul.f32 %v8306_v44, %v6803_v47  ;;  %v4043_v39 = vmul.f32 %v8306_v44, %v6787_v22  ;;  %v4040_v10 = vmul.f32 %v8306_v44, %v6774_v0  ;;  %v4088_v62 = vmul.f32 %v8307_v36, %v6780_v61 }
 0x65a   :  { %v3226_v52 = vpop.permute.xlu1 %3225  ;;  %v4055_v53 = vrot.slane %v4042_v59, 2  ;;  %v4053_v40 = vrot.slane %v4041_v54, 2  ;;  %v4045_v59 = vmul.f32 %v8306_v44, %v6964_v51 }
 0x65b   :  { %v3236_v19 = vadd.f32 %v3226_v52, %v3189_v3  ;;  %v3271_v34 = vpop.permute.xlu0 %3270  ;;  %v4012_v3 = vsel %vm1286_vm4, %v4010_v25, %v4011_v33  ;;  %v4058_v8 = vrot.slane %v7857_v12, 2  ;;  %v3967_v52 = vsel %vm1286_vm4, %v3964_v42, %v3966_v13  ;;  %v8308_v25 = vld [vmem:[#allocation30_spill] sm:$0xff] }
 0x65c   :  { %v3282_v11 = vadd.f32 %v3271_v34, %v3235_v20  ;;  %3880 = vrot.lane.b32.xlu1 %v3873_v31, %s8245_s23  ;;  %v4056_v18 = vsel %vm1286_vm4, %v4053_v40, %v4055_v53  ;;  %v4091_v34 = vmul.f32 %v8307_v36, %v6803_v47  ;;  %v4052_v23 = vrot.slane %v4040_v10, 2 }
 0x65d   :  { %3972 = vrot.lane.b32.xlu0 %v3965_v60, %s8247_s6  ;;  %v4100_v60 = vrot.slane %v4088_v62, 2  ;;  %v3438_v54 = vmul.f32 %v8308_v25, %v6780_v61  ;;  %v3440_v44 = vmul.f32 %v8308_v25, %v6787_v22  ;;  %v4092_v61 = vmul.f32 %v8307_v36, %v6964_v51 }
 0x65e   :  { %v3228_v28 = vpop.permute.xlu1 %3227  ;;  %v4054_v15 = vsel %vm1286_vm4, %v4052_v23, %v4053_v40  ;;  %v4105_v9 = vrot.slane %v4091_v34, 2 }
 0x65f   :  { %v3237_v17 = vadd.f32 %v3228_v28, %v3190_v55  ;;  %v3230_v27 = vpop.permute.xlu0 %3229  ;;  %v4089_v55 = vmul.f32 %v8307_v36, %v6942_v48  ;;  %v3450_v12 = vrot.slane %v3438_v54, 2  ;;  %v3454_v22 = vrot.slane %v3440_v44, 2 }
 0x660   :  { %v3238_v57 = vadd.f32 %v3230_v27, %v3191_v1  ;;  %3968 = vrot.lane.b32.xlu1 %v3960_v45, %s8247_s6  ;;  %v4057_v1 = vrot.slane %v4043_v39, 2  ;;  %v4104_v45 = vrot.slane %v4090_v37, 2 }
 0x661   :  { %4017 = vrot.lane.b32.xlu0 %v4009_v21, %s8248_s14 }
 0x662   :  { %v3273_v2 = vpop.permute.xlu1 %3272  ;;  %v4059_v63 = vsel %vm1286_vm4, %v4057_v1, %v4058_v8 }
 0x663   :  { %v3283_v16 = vadd.f32 %v3273_v2, %v3236_v19  ;;  %v3318_v38 = vpop.permute.xlu0 %3317  ;;  %v4102_v19 = vrot.slane %v4089_v55, 2  ;;  %v4106_v2 = vsel %vm1286_vm4, %v4104_v45, %v4105_v9 }
 0x664   :  { %v3329_v24 = vadd.f32 %v3318_v38, %v3282_v11  ;;  %3927 = vrot.lane.b32.xlu1 %v3920_v6, %s8246_s19  ;;  %v3441_v38 = vmul.f32 %v8308_v25, %v6803_v47 }
 0x665   :  { %4019 = vrot.lane.b32.xlu0 %v4012_v3, %s8248_s14  ;;  %v4103_v50 = vsel %vm1286_vm4, %v4100_v60, %v4102_v19  ;;  %v4060_v3 = vrot.slane %v4045_v59, 2 }
 0x666   :  { %v3275_v43 = vpop.permute.xlu1 %3274  ;;  %v3455_v47 = vrot.slane %v3441_v38, 2 }
 0x667   :  { %v3284_v20 = vadd.f32 %v3275_v43, %v3237_v17  ;;  %v3322_v56 = vpop.permute.xlu0 %3321  ;;  %v4087_v17 = vmul.f32 %v8307_v36, %v6774_v0  ;;  %v4061_v39 = vsel %vm1286_vm4, %v4058_v8, %v4060_v3 }
 0x668   :  { %4015 = vrot.lane.b32.xlu1 %v4007_v46, %s8248_s14  ;;  %v3439_v46 = vmul.f32 %v8308_v25, %v6942_v48  ;;  %v3442_v48 = vmul.f32 %v8308_v25, %v6964_v51 }
 0x669   :  { %v3331_v30 = vadd.f32 %v3322_v56, %v3284_v20  ;;  %4064 = vrot.lane.b32.xlu0 %v4056_v18, %s8249_s3  ;;  %v4107_v20 = vrot.slane %v4092_v61, 2  ;;  %v3456_v18 = vsel %vm1286_vm4, %v3454_v22, %v3455_v47 }
 0x66a   :  { %v3320_v35 = vpop.permute.xlu1 %3319  ;;  %v3452_v62 = vrot.slane %v3439_v46, 2 }
 0x66b   :  { %v3330_v41 = vadd.f32 %v3320_v35, %v3283_v16  ;;  %v3367_v26 = vpop.permute.xlu0 %3366  ;;  %v4099_v16 = vrot.slane %v4087_v17, 2  ;;  %v4108_v1 = vsel %vm1286_vm4, %v4105_v9, %v4107_v20 }
 0x66c   :  { %3974 = vrot.lane.b32.xlu1 %v3967_v52, %s8247_s6  ;;  %v3453_v32 = vsel %vm1286_vm4, %v3450_v12, %v3452_v62 }
 0x66d   :  { %v3377_v31 = vadd.f32 %v3367_v26, %v3330_v41  ;;  %4066 = vrot.lane.b32.xlu0 %v4059_v63, %s8249_s3 }
 0x66e   :  { %v3277_v11 = vpop.permute.xlu1 %3276 }
 0x66f   :  { %v3285_v42 = vadd.f32 %v3277_v11, %v3238_v57  ;;  %v3369_v49 = vpop.permute.xlu0 %3368  ;;  %v4014_v57 = vsel %vm1286_vm4, %v4011_v33, %v4013_v7  ;;  %v3437_v33 = vmul.f32 %v8308_v25, %v6774_v0  ;;  %v3457_v11 = vrot.slane %v3442_v48, 2 }
 0x670   :  { %v3378_v28 = vadd.f32 %v3369_v49, %v3331_v30  ;;  %4062 = vrot.lane.b32.xlu1 %v4054_v15, %s8249_s3 }
 0x671   :  { %4111 = vrot.lane.b32.xlu0 %v4103_v50, %s8250_s29  ;;  %v3449_v43 = vrot.slane %v3437_v33, 2  ;;  %v3458_v7 = vsel %vm1286_vm4, %v3455_v47, %v3457_v11 }
 0x672   :  { %v3365_v27 = vpop.permute.xlu1 %3364 }
 0x673   :  { %v3376_v4 = vadd.f32 %v3365_v27, %v3329_v24  ;;  %v3414_v21 = vpop.permute.xlu0 %3413  ;;  %v4101_v24 = vsel %vm1286_vm4, %v4099_v16, %v4100_v60  ;;  %v3451_v56 = vsel %vm1286_vm4, %v3449_v43, %v3450_v12 }
 0x674   :  { %v3424_v14 = vadd.f32 %v3414_v21, %v3377_v31  ;;  %4021 = vrot.lane.b32.xlu1 %v4014_v57, %s8248_s14 }
 0x675   :  { %4113 = vrot.lane.b32.xlu0 %v4106_v2, %s8250_s29 }
 0x676   :  { %v3324_v29 = vpop.permute.xlu1 %3323  ;;  %v3464_v63 = vadd.f32 %v3453_v32, %v3424_v14 }
 0x677   :  { %v3332_v6 = vadd.f32 %v3324_v29, %v3285_v42  ;;  %v3416_v5 = vpop.permute.xlu0 %3415 }
 0x678   :  { %v3425_v53 = vadd.f32 %v3416_v5, %v3378_v28  ;;  %4109 = vrot.lane.b32.xlu1 %v4101_v24, %s8250_s29 }
 0x67a   :  { %v3412_v58 = vpop.permute.xlu1 %3411  ;;  %v3465_v55 = vadd.f32 %v3456_v18, %v3425_v53 }
 0x67b   :  { %v3423_v40 = vadd.f32 %v3412_v58, %v3376_v4  ;;  %v3499_v0 = vpop.permute.xlu0 %3498 }
 0x67c   :  { %4068 = vrot.lane.b32.xlu1 %v4061_v39, %s8249_s3 }
 0x67d   :  { %v3463_v13 = vadd.f32 %v3451_v56, %v3423_v40 }
 0x67e   :  { %v3371_v36 = vpop.permute.xlu1 %3370 }
 0x67f   :  { %v3510_v30 = vadd.f32 %v3499_v0, %v3463_v13  ;;  %v3379_v10 = vadd.f32 %v3371_v36, %v3332_v6  ;;  %v3503_v35 = vpop.permute.xlu0 %3502 }
 0x680   :  { %v3512_v8 = vadd.f32 %v3503_v35, %v3465_v55  ;;  %4115 = vrot.lane.b32.xlu1 %v4108_v1, %s8250_s29 }
 0x682   :  { %v3418_v41 = vpop.permute.xlu1 %3417 }
 0x683   :  { %v3426_v26 = vadd.f32 %v3418_v41, %v3379_v10  ;;  %v3548_v52 = vpop.permute.xlu0 %3547 }
 0x685   :  { %v3466_v28 = vadd.f32 %v3458_v7, %v3426_v26 }
 0x686   :  { %v3501_v19 = vpop.permute.xlu1 %3500 }
 0x687   :  { %v3511_v34 = vadd.f32 %v3501_v19, %v3464_v63  ;;  %v3550_v31 = vpop.permute.xlu0 %3549 }
 0x688   :  { %v3559_v23 = vadd.f32 %v3550_v31, %v3512_v8 }
 0x689   :  { %v3558_v60 = vadd.f32 %v3548_v52, %v3511_v34 }
 0x68a   :  { %v3546_v37 = vpop.permute.xlu1 %3545 }
 0x68b   :  { %v3557_v42 = vadd.f32 %v3546_v37, %v3510_v30  ;;  %v3595_v49 = vpop.permute.xlu0 %3594 }
 0x68c   :  { %v3605_v15 = vadd.f32 %v3595_v49, %v3558_v60 }
 0x68e   :  { %v3505_v50 = vpop.permute.xlu1 %3504 }
 0x68f   :  { %v3513_v9 = vadd.f32 %v3505_v50, %v3466_v28  ;;  %v3597_v17 = vpop.permute.xlu0 %3596 }
 0x690   :  { %v3606_v27 = vadd.f32 %v3597_v17, %v3559_v23 }
 0x692   :  { %v3593_v45 = vpop.permute.xlu1 %3592 }
 0x693   :  { %v3604_v51 = vadd.f32 %v3593_v45, %v3557_v42  ;;  %v3642_v4 = vpop.permute.xlu0 %3641 }
 0x694   :  { %v3652_v10 = vadd.f32 %v3642_v4, %v3605_v15 }
 0x696   :  { %v3552_v21 = vpop.permute.xlu1 %3551 }
 0x697   :  { %v3560_v57 = vadd.f32 %v3552_v21, %v3513_v9  ;;  %v3644_v59 = vpop.permute.xlu0 %3643 }
 0x698   :  { %v3653_v62 = vadd.f32 %v3644_v59, %v3606_v27 }
 0x69a   :  { %v3640_v14 = vpop.permute.xlu1 %3639 }
 0x69b   :  { %v3651_v2 = vadd.f32 %v3640_v14, %v3604_v51  ;;  %v3689_v25 = vpop.permute.xlu0 %3688 }
 0x69c   :  { %v3699_v1 = vadd.f32 %v3689_v25, %v3652_v10 }
 0x69e   :  { %v3599_v54 = vpop.permute.xlu1 %3598 }
 0x69f   :  { %v3691_v16 = vpop.permute.xlu0 %3690  ;;  %v3607_v34 = vadd.f32 %v3599_v54, %v3560_v57 }
 0x6a0   :  { %v3700_v32 = vadd.f32 %v3691_v16, %v3653_v62 }
 0x6a2   :  { %v3687_v38 = vpop.permute.xlu1 %3686 }
 0x6a3   :  { %v3736_v29 = vpop.permute.xlu0 %3735  ;;  %v3698_v41 = vadd.f32 %v3687_v38, %v3651_v2 }
 0x6a4   :  { %v3746_v26 = vadd.f32 %v3736_v29, %v3699_v1 }
 0x6a6   :  { %v3646_v33 = vpop.permute.xlu1 %3645 }
 0x6a7   :  { %v3738_v44 = vpop.permute.xlu0 %3737  ;;  %v3654_v60 = vadd.f32 %v3646_v33, %v3607_v34 }
 0x6a8   :  { %v3747_v31 = vadd.f32 %v3738_v44, %v3700_v32 }
 0x6aa   :  { %v3734_v6 = vpop.permute.xlu1 %3733 }
 0x6ab   :  { %v3783_v5 = vpop.permute.xlu0 %3782  ;;  %v3745_v48 = vadd.f32 %v3734_v6, %v3698_v41 }
 0x6ac   :  { %v3793_v63 = vadd.f32 %v3783_v5, %v3746_v26 }
 0x6ae   :  { %v3693_v24 = vpop.permute.xlu1 %3692 }
 0x6af   :  { %v3785_v3 = vpop.permute.xlu0 %3784  ;;  %v3701_v28 = vadd.f32 %v3693_v24, %v3654_v60 }
 0x6b0   :  { %v3794_v42 = vadd.f32 %v3785_v3, %v3747_v31 }
 0x6b2   :  { %v3781_v61 = vpop.permute.xlu1 %3780 }
 0x6b3   :  { %v3830_v53 = vpop.permute.xlu0 %3829  ;;  %v3792_v23 = vadd.f32 %v3781_v61, %v3745_v48 }
 0x6b4   :  { %v3840_v11 = vadd.f32 %v3830_v53, %v3793_v63 }
 0x6b6   :  { %v3740_v12 = vpop.permute.xlu1 %3739 }
 0x6b7   :  { %v3832_v47 = vpop.permute.xlu0 %3831  ;;  %v3748_v27 = vadd.f32 %v3740_v12, %v3701_v28 }
 0x6b8   :  { %v3841_v50 = vadd.f32 %v3832_v47, %v3794_v42 }
 0x6ba   :  { %v3828_v58 = vpop.permute.xlu1 %3827 }
 0x6bb   :  { %v3877_v43 = vpop.permute.xlu0 %3876  ;;  %v3839_v49 = vadd.f32 %v3828_v58, %v3792_v23 }
 0x6bc   :  { %v3887_v15 = vadd.f32 %v3877_v43, %v3840_v11 }
 0x6be   :  { %v3787_v40 = vpop.permute.xlu1 %3786 }
 0x6bf   :  { %v3879_v0 = vpop.permute.xlu0 %3878  ;;  %v3795_v59 = vadd.f32 %v3787_v40, %v3748_v27 }
 0x6c0   :  { %v3888_v51 = vadd.f32 %v3879_v0, %v3841_v50 }
 0x6c2   :  { %v3875_v39 = vpop.permute.xlu1 %3874 }
 0x6c3   :  { %v3924_v22 = vpop.permute.xlu0 %3923  ;;  %v3886_v9 = vadd.f32 %v3875_v39, %v3839_v49 }
 0x6c4   :  { %v3934_v17 = vadd.f32 %v3924_v22, %v3887_v15 }
 0x6c6   :  { %v3834_v20 = vpop.permute.xlu1 %3833 }
 0x6c7   :  { %v3926_v56 = vpop.permute.xlu0 %3925  ;;  %v3842_v54 = vadd.f32 %v3834_v20, %v3795_v59 }
 0x6c8   :  { %v3935_v14 = vadd.f32 %v3926_v56, %v3888_v51 }
 0x6ca   :  { %v3922_v46 = vpop.permute.xlu1 %3921 }
 0x6cb   :  { %v3971_v13 = vpop.permute.xlu0 %3970  ;;  %v3933_v4 = vadd.f32 %v3922_v46, %v3886_v9 }
 0x6cc   :  { %v3981_v21 = vadd.f32 %v3971_v13, %v3934_v17 }
 0x6ce   :  { %v3881_v18 = vpop.permute.xlu1 %3880 }
 0x6cf   :  { %v3973_v36 = vpop.permute.xlu0 %3972  ;;  %v3889_v44 = vadd.f32 %v3881_v18, %v3842_v54  ;;  %v8309_v54 = vld [vmem:[#allocation8_spill] sm:$0xff] }
 0x6d0   :  { %v3982_v38 = vadd.f32 %v3973_v36, %v3935_v14 }
 0x6d2   :  { %v3969_v55 = vpop.permute.xlu1 %3968 }
 0x6d3   :  { %v4018_v30 = vpop.permute.xlu0 %4017  ;;  %v3980_v2 = vadd.f32 %v3969_v55, %v3933_v4 }
 0x6d4   :  { %v4028_v25 = vadd.f32 %v4018_v30, %v3981_v21 }
 0x6d6   :  { %v3928_v35 = vpop.permute.xlu1 %3927 }
 0x6d7   :  { %v4020_v8 = vpop.permute.xlu0 %4019  ;;  %v3936_v3 = vadd.f32 %v3928_v35, %v3889_v44 }
 0x6d8   :  { %v4029_v6 = vadd.f32 %v4020_v8, %v3982_v38  ;;  %v4758_v38 = vld [vmem:[%s7995_s2] sm:$0xf] }
 0x6da   :  { %v4016_v52 = vpop.permute.xlu1 %4015 }
 0x6db   :  { %v4065_v19 = vpop.permute.xlu0 %4064  ;;  %v4027_v29 = vadd.f32 %v4016_v52, %v3980_v2 }
 0x6dc   :  { %v4075_v33 = vadd.f32 %v4065_v19, %v4028_v25 }
 0x6de   :  { %v3975_v37 = vpop.permute.xlu1 %3974 }
 0x6df   :  { %v4067_v7 = vpop.permute.xlu0 %4066  ;;  %v3983_v58 = vadd.f32 %v3975_v37, %v3936_v3  ;;  %v4337_v3 = vsub.s32 3, %v8309_v54 }
 0x6e0   :  { %v4076_v12 = vadd.f32 %v4067_v7, %v4029_v6 }
 0x6e2   :  { %v4063_v45 = vpop.permute.xlu1 %4062 }
 0x6e3   :  { %v4112_v57 = vpop.permute.xlu0 %4111  ;;  %v4074_v5 = vadd.f32 %v4063_v45, %v4027_v29 }
 0x6e4   :  { %v7923_v24 = vadd.f32 %v4112_v57, %v4075_v33 }
 0x6e6   :  { %v4022_v16 = vpop.permute.xlu1 %4021  ;;  %v4215_v43 = vmul.f32 %v7923_v24, %v7923_v24  ;;  %v4126_v20 = vsel %vm1963_vm6, %v7923_v24, 0.0 }
 0x6e7   :  { %v4114_v61 = vpop.permute.xlu0 %4113  ;;  %v4030_v56 = vadd.f32 %v4022_v16, %v3983_v58  ;;  %v4325_v16 = vsub.s32 2, %v8309_v54 }
 0x6e8   :  { %v7929_v40 = vadd.f32 %v4114_v61, %v4076_v12  ;;  %v4219_v18 = vsel %vm1963_vm6, %v4215_v43, 0.0 }
 0x6ea   :  { %v4110_v53 = vpop.permute.xlu1 %4109  ;;  %v4216_v36 = vmul.f32 %v7929_v40, %v7929_v40  ;;  %v4128_v35 = vsel %vm1963_vm6, %v7929_v40, 0.0 }
 0x6eb   :  { %v7925_v47 = vadd.f32 %v4110_v53, %v4074_v5 }
 0x6ec   :  { %v4221_v62 = vsel %vm1963_vm6, %v4216_v36, 0.0 }
 0x6ed   :  { %v4125_v0 = vsel %vm1963_vm6, %v7925_v47, 0.0  ;;  %v4214_v39 = vmul.f32 %v7925_v47, %v7925_v47 }
 0x6ee   :  { %v4069_v22 = vpop.permute.xlu1 %4068  ;;  %v4127_v13 = vadd.f32 %v4126_v20, %v4125_v0 }
 0x6ef   :  { %v4218_v46 = vsel %vm1963_vm6, %v4214_v39, 0.0  ;;  %v4077_v55 = vadd.f32 %v4069_v22, %v4030_v56 }
 0x6f0   :  { %v4220_v30 = vadd.f32 %v4219_v18, %v4218_v46  ;;  %v4129_v8 = vadd.f32 %v4128_v35, %v4127_v13 }
 0x6f2   :  { %v4116_v10 = vpop.permute.xlu1 %4115  ;;  %v4222_v32 = vadd.f32 %v4221_v62, %v4220_v30 }
 0x6f3   :  { %v4124_v1 = vadd.f32 %v4116_v10, %v4077_v55 }
 0x6f5   :  { %v4130_v41 = vsel %vm1963_vm6, %v4124_v1, 0.0  ;;  %v4217_v26 = vmul.f32 %v4124_v1, %v4124_v1 }
 0x6f6   :  { %v4131_v52 = vadd.f32 %v4130_v41, %v4129_v8  ;;  %v4761_v8 = vld [vmem:[%s7993_s0 + $0x18] sm:$0xff]  ;;  %v4762_v41 = vld [vmem:[%s7993_s0 + $0x10] sm:$0xff] }
 0x6f7   :  { %v4223_v48 = vsel %vm1963_vm6, %v4217_v26, 0.0 }
 0x6f8   :  { %v4132_v63 = vrot.slane %v4131_v52, 4  ;;  %v4224_v19 = vadd.f32 %v4223_v48, %v4222_v32 }
 0x6fa   :  { %v4133_v34 = vadd.f32 %v4132_v63, %v4131_v52  ;;  %v4225_v31 = vrot.slane %v4224_v19, 4 }
 0x6fc   :  { %v4134_v23 = vrot.slane %v4133_v34, 2  ;;  %v4226_v11 = vadd.f32 %v4225_v31, %v4224_v19 }
 0x6fe   :  { %v4135_v60 = vadd.f32 %v4134_v23, %v4133_v34  ;;  %v4227_v37 = vrot.slane %v4226_v11, 2 }
 0x700   :  { %v4136_v42 = vrot.slane %v4135_v60, 1  ;;  %v4228_v49 = vadd.f32 %v4227_v37, %v4226_v11 }
 0x702   :  { %v4137_v15 = vadd.f32 %v4136_v42, %v4135_v60  ;;  %v4229_v7 = vrot.slane %v4228_v49, 1 }
 0x704   :  { %4139 = vrot.lane.b32.xlu0 %v4137_v15, %s4802_s15  ;;  %v4230_v28 = vadd.f32 %v4229_v7, %v4228_v49 }
 0x706   :  { %4232 = vrot.lane.b32.xlu1 %v4230_v28, %s4802_s15 }
 0x776   :  { %v4140_v50 = vpop.permute.xlu0 %4139 }
 0x777   :  { %4651 = vmatmul.mubr.msk.f32.vlgmr.msra.gmra.mrb[2].mxu0 %vm1980_vm7, %v4140_v50 }
 0x778   :  { %v4233_v9 = vpop.permute.xlu1 %4232 }
 0x779   :  { %4670 = vmatmul.mubr.msk.f32.vlgmr.msra.gmra.mrb[2].mxu1 %vm1980_vm7, %v4233_v9 }
 0x84a   :  { %v4209_v17 = vpop.f32.mrb[2].mxu0 }
 0x84b   :  { %v4213_v27 = vmul.f32 0.001953125, %v4209_v17  ;;  %v4652_v45 = vpop.f32.mrb[3].mxu0 }
 0x84c   :  { %v4302_v51 = vpop.f32.mrb[2].mxu1 }
 0x84d   :  { %v4307_v4 = vmul.f32 %v4213_v27, %v4213_v27  ;;  %v4306_v21 = vmul.f32 0.001953125, %v4302_v51  ;;  %v4671_v59 = vpop.f32.mrb[3].mxu1 }
 0x84f   :  { %v4308_v57 = vsub.f32 %v4306_v21, %v4307_v4 }
 0x851   :  { %v4309_v14 = vadd.f32 1e-05, %v4308_v57 }
 0x853   :  { %4756 = vrsqrt.f32 %v4309_v14 }
 0x85d   :  { %v4757_v2 = vpop.eup %4756 }
 0x85e   :  { %v4312_v25 = vrot.slane %v4757_v2, 6 }
 0x860   :  { %v4314_v29 = vmul.f32 %v4758_v38, %v4312_v25 }
 0x862   :  { %v4316_v33 = vrot.slane %v4314_v29, 2  ;;  %v4326_v44 = vrot.slane %v4314_v29, %v4325_v16 }
 0x864   :  { %4328 = vrot.lane.b32.xlu0 %v4326_v44, %s4801_s8  ;;  %v4318_v6 = vmul.f32 %v4316_v33, %v4213_v27 }
 0x866   :  { %v4320_v5 = vrot.slane %v4318_v6, 5 }
 0x868   :  { %v4322_v61 = vsub.f32 %v4758_v38, %v4320_v5 }
 0x86a   :  { %v4338_v53 = vrot.slane %v4322_v61, %v4337_v3 }
 0x86c   :  { %4340 = vrot.lane.b32.xlu1 %v4338_v53, %s4801_s8 }
 0x8d6   :  { %v4329_v12 = vpop.permute.xlu0 %4328 }
 0x8d7   :  { %v4331_v58 = vmul.f32 %v4329_v12, %v7925_v47  ;;  %v4332_v43 = vmul.f32 %v4329_v12, %v7923_v24  ;;  %v4333_v20 = vmul.f32 %v4329_v12, %v7929_v40  ;;  %v4334_v56 = vmul.f32 %v4329_v12, %v4124_v1  ;;  %v4759_v24 = vld [vmem:[%s7993_s0 + $0x8] sm:$0xff]  ;;  %v4760_v40 = vld [vmem:[%s7993_s0] sm:$0xff] }
 0x8de   :  { %v4341_v0 = vpop.permute.xlu1 %4340 }
 0x8df   :  { %v4343_v39 = vadd.f32 %v4341_v0, %v4331_v58  ;;  %v4344_v22 = vadd.f32 %v4341_v0, %v4332_v43  ;;  %v4345_v46 = vadd.f32 %v4341_v0, %v4333_v20  ;;  %v4346_v13 = vadd.f32 %v4341_v0, %v4334_v56 }
 0x8e1   :  { %4353 = vrot.lane.b32.xlu1 %v4344_v22, %s4802_s15  ;;  %4351 = vrot.lane.b32.xlu0 %v4343_v39, %s4802_s15 }
 0x8e5   :  { %4357 = vrot.lane.b32.xlu1 %v4346_v13, %s4802_s15  ;;  %4355 = vrot.lane.b32.xlu0 %v4345_v46, %s4802_s15 }
 0x953   :  { %v4354_v18 = vpop.permute.xlu1 %4353  ;;  %v4352_v47 = vpop.permute.xlu0 %4351 }
 0x954   :  { %v4364_v36 = vadd.f32 %v4759_v24, %v4354_v18  ;;  %v4363_v55 = vadd.f32 %v4760_v40, %v4352_v47 }
 0x956   :  { %v4368_v30 = vmax.f32 %v4364_v36, 0.0  ;;  %v4367_v10 = vmax.f32 %v4363_v55, 0.0 }
 0x957   :  { %v4358_v35 = vpop.permute.xlu1 %4357  ;;  %v4356_v1 = vpop.permute.xlu0 %4355 }
 0x958   :  { %4372 = vst.msk [vmem:[#allocation2 + $0x8] sm:$0xff] %vm1980_vm7, %v4368_v30  ;;  %4371 = vst.msk [vmem:[#allocation2] sm:$0xff] %vm1980_vm7, %v4367_v10  ;;  %v4366_v62 = vadd.f32 %v4761_v8, %v4358_v35  ;;  %v4365_v26 = vadd.f32 %v4762_v41, %v4356_v1 }
 0x95a   :  { %v4370_v52 = vmax.f32 %v4366_v62, 0.0  ;;  %v4369_v32 = vmax.f32 %v4365_v26, 0.0 }
 0x95c   :  { %4374 = vst.msk [vmem:[#allocation2 + $0x18] sm:$0xff] %vm1980_vm7, %v4370_v52  ;;  %4373 = vst.msk [vmem:[#allocation2 + $0x10] sm:$0xff] %vm1980_vm7, %v4369_v32 }
 0x95d   :  { %4774 = shalt.err (!%p4771_p4)
}
 0x95e   :  { %s4775_s7 = scalar_lea.hbm %s7997_s4, 512 }
 0x95f   :  { %p4776_p5 = scmp.ne.s32.totalorder %s7997_s4, %s4775_s7  ;;  %p4779_p6 = scmp.lt.u32.totalorder %s4775_s7, %s7997_s4 }
 0x961   :  { %p4781_p7 = pnand %p4779_p6, %p4776_p5 }
 0x963   :  { %4784 = shalt.err (!%p4781_p7)
}
 0x964   :  { %s4820_s9 = smov 128  }
 0x965   :  { %4386 = dma.vmem_to_hbm [thread:$0]  %s4381_s17, 512, %s7997_s4, [#allocation3], %s4820_s9, %s4820_s9, %s4788_s26  }
 0x966   :  { %4785 = dma.done.wait [#allocation3], 512  }
 0x967   :  { %4786 = vsyncadd [#allocation3], 4294966784 }
 0x968   :  { %4390 = vsyncpa [#allocation3], 1 }

</bundles_post_ra>
